<compile_context>
chip_gen: v7x
topology: tpu7x:2x2x1
jax: 0.10.0
libtpu: 0.0.40
codegen_flags: <defaults>
</compile_context>

<pallas_src>
import functools

import jax
import jax.numpy as jnp
from jax.experimental import pallas as pl
from jax.experimental.pallas import tpu as pltpu

SUB = 8      # sublane width
LANE = 128   # lane width


def _round_up(x, m):
    return (x + m - 1) // m * m


# ----------------------------------------------------------------------------
# Probe (run once, eagerly) whether single-buffered resident blocks are
# supported by this Pallas build.  Falls back to default double-buffering.
# ----------------------------------------------------------------------------
def _probe_kernel(x_ref, o_ref):
    o_ref[...] = x_ref[...] + 1.0


@functools.lru_cache(maxsize=None)
def _single_buffer_supported():
    if not hasattr(pl, "Buffered"):
        return False
    try:
        spec = pl.BlockSpec((8, 128), lambda i: (0, 0),
                            pipeline_mode=pl.Buffered(1))
        fn = pl.pallas_call(
            _probe_kernel,
            out_shape=jax.ShapeDtypeStruct((8, 128), jnp.float32),
            grid=(2,),
            in_specs=[spec],
            out_specs=pl.BlockSpec((8, 128), lambda i: (0, 0)),
        )
        jax.block_until_ready(fn(jnp.zeros((8, 128), jnp.float32)))
        return True
    except Exception:
        return False


# ----------------------------------------------------------------------------
# Fused kernel: precomputed layer-0 gates -> 2-layer LSTM -> deferred linear.
# Grid = (batch_chunks [parallel], time_chunks [arbitrary]).
# ----------------------------------------------------------------------------
def fused_lstm_kernel(xg_ref, wh0_ref, wx1_ref, wh1_ref, b1_ref, wl_ref, bl_ref,
                      logits_ref, hn_ref, cn_ref, h1_hist):
    s = pl.program_id(1)               # time-chunk index (sequential carry)
    U, B, _ = xg_ref.shape             # timesteps per chunk, batch block
    H = wh0_ref.shape[0]               # padded hidden (multiple of 128)
    cdt = wh0_ref.dtype                # matmul compute dtype (bf16 or f32)

    @pl.when(s == 0)
    def _():
        # hidden=None in the PyTorch forward -> zero-initialized h_0 / c_0.
        hn_ref[...] = jnp.zeros_like(hn_ref)
        cn_ref[...] = jnp.zeros_like(cn_ref)

    # Weights are VMEM-resident (constant-index specs); hoisted once per chunk.
    wh0 = wh0_ref[...]                 # (H, 4H)
    wx1 = wx1_ref[...]                 # (H, 4H)
    wh1 = wh1_ref[...]                 # (H, 4H)
    b1 = b1_ref[...]                   # (1, 4H) f32 -- implicit broadcast in add

    def lstm_gates(g, c_prev):
        i_g = jax.nn.sigmoid(g[:, 0 * H:1 * H])
        f_g = jax.nn.sigmoid(g[:, 1 * H:2 * H])
        g_g = jnp.tanh(g[:, 2 * H:3 * H])
        o_g = jax.nn.sigmoid(g[:, 3 * H:4 * H])
        c_new = f_g * c_prev + i_g * g_g
        return o_g * jnp.tanh(c_new), c_new

    def body(t, carry):
        h0, c0, h1, c1 = carry                              # f32 state
        # Layer 0: x-projection + biases precomputed in xg; only h@W_hh left.
        g0 = xg_ref[t].astype(jnp.float32) + jnp.dot(
            h0.astype(cdt), wh0, preferred_element_type=jnp.float32)
        h0n, c0n = lstm_gates(g0, c0)
        # Layer 1: two matmuls accumulated in f32 (no concat copy).
        g1 = (jnp.dot(h0n.astype(cdt), wx1, preferred_element_type=jnp.float32)
              + jnp.dot(h1.astype(cdt), wh1, preferred_element_type=jnp.float32)
              + b1)
        h1n, c1n = lstm_gates(g1, c1)
        h1_hist[t] = h1n.astype(cdt)                        # for deferred projection
        return h0n, c0n, h1n, c1n

    carry0 = (hn_ref[0], cn_ref[0], hn_ref[1], cn_ref[1])
    h0, c0, h1, c1 = jax.lax.fori_loop(0, U, body, carry0,
                                       unroll=True if U <= 8 else 4)

    # State lives in the constant-index, VMEM-resident output blocks.
    hn_ref[0] = h0
    cn_ref[0] = c0
    hn_ref[1] = h1
    cn_ref[1] = c1

    # Deferred vocab projection: one (U*B, H) x (H, V) matmul for the whole
    # chunk, one lane-dense slab store (instead of U tiny M=B matmuls/stores).
    h1_all = h1_hist[...].reshape(U * B, H)
    logits = jnp.dot(h1_all, wl_ref[...],
                     preferred_element_type=jnp.float32) + bl_ref[...]
    logits_ref[...] = logits.reshape(U, B, -1).astype(logits_ref.dtype)


def fused_lstm_forward(xg, wh0, wx1, wh1, b1, wl, bl, *, block_T, b_chunks):
    """xg: (T, B_pad, 4*H_pad) precomputed layer-0 gates; weights pre-padded."""
    T, B_pad, _ = xg.shape
    H_pad = wh0.shape[0]
    V_pad = wl.shape[1]
    cdt = wh0.dtype
    B_blk = B_pad // b_chunks
    n_steps = T // block_T
    single = _single_buffer_supported()

    def w_spec(shape):
        idx = lambda b, s: (0,) * len(shape)
        if single:
            return pl.BlockSpec(shape, idx, pipeline_mode=pl.Buffered(1))
        return pl.BlockSpec(shape, idx)

    # Explicit VMEM budget (v7x: 64 MiB physical, 32 MiB default scoped limit).
    itm = jnp.dtype(cdt).itemsize
    w_bufs = 1 if single else 2
    resident = (
        w_bufs * itm * (3 * H_pad * 4 * H_pad + H_pad * V_pad)   # weights
        + w_bufs * 4 * (4 * H_pad + V_pad)                        # biases (f32)
        + 2 * block_T * B_blk * 4 * H_pad * itm                   # xg (dbl-buf)
        + 2 * block_T * B_blk * V_pad * itm                       # logits (dbl-buf)
        + 4 * 2 * B_blk * H_pad * 4                               # hn/cn blocks
        + block_T * B_blk * H_pad * itm)                          # h1 history scratch
    vmem_limit = int(max(4 << 20, min(2 * resident + (2 << 20), 60 << 20)))

    return pl.pallas_call(
        fused_lstm_kernel,
        out_shape=(jax.ShapeDtypeStruct((T, B_pad, V_pad), cdt),
                   jax.ShapeDtypeStruct((2, B_pad, H_pad), jnp.float32),
                   jax.ShapeDtypeStruct((2, B_pad, H_pad), jnp.float32)),
        grid_spec=pltpu.PrefetchScalarGridSpec(
            num_scalar_prefetch=0,
            grid=(b_chunks, n_steps),
            in_specs=[
                pl.BlockSpec((block_T, B_blk, 4 * H_pad), lambda b, s: (s, b, 0)),
                w_spec((H_pad, 4 * H_pad)),
                w_spec((H_pad, 4 * H_pad)),
                w_spec((H_pad, 4 * H_pad)),
                w_spec((1, 4 * H_pad)),
                w_spec((H_pad, V_pad)),
                w_spec((1, V_pad)),
            ],
            out_specs=[
                pl.BlockSpec((block_T, B_blk, V_pad), lambda b, s: (s, b, 0)),
                pl.BlockSpec((2, B_blk, H_pad), lambda b, s: (0, b, 0)),
                pl.BlockSpec((2, B_blk, H_pad), lambda b, s: (0, b, 0)),
            ],
            scratch_shapes=[pltpu.VMEM((block_T, B_blk, H_pad), cdt)],
        ),
        compiler_params=pltpu.CompilerParams(
            dimension_semantics=("parallel", "arbitrary"),   # batch || , time carry
            vmem_limit_bytes=vmem_limit),
    )(xg, wh0, wx1, wh1, b1, wl, bl)


# ----------------------------------------------------------------------------
# Parameter preparation: PyTorch-layout weights -> fused/padded kernel weights.
# Zero padding keeps the un-padded slice of the result exact.
# ----------------------------------------------------------------------------
def _pad_axis(x, axis, new_size):
    pad = [(0, 0)] * x.ndim
    pad[axis] = (0, new_size - x.shape[axis])
    return jnp.pad(x, pad)


def _pad_gate_cols(w_t, H, H_pad):
    """w_t: (Din, 4H) -> (Din, 4H_pad), padding each gate block independently."""
    Din = w_t.shape[0]
    return _pad_axis(w_t.reshape(Din, 4, H), 2, H_pad).reshape(Din, 4 * H_pad)


def prepare_params(raw, compute_dtype=jnp.bfloat16):
    _single_buffer_supported()          # prime the probe outside any jit trace
    H = raw["w_hh0"].shape[1]
    H_pad = _round_up(H, LANE)
    V_pad = _round_up(raw["w_lin"].shape[0], LANE)

    # Layer-0 input projection + biases folded into the embedding table (f32
    # precompute, stored in compute dtype).  One gather replaces embed lookup,
    # the padded-K x-matmul, and the layer-0 bias add.
    xg_table = (raw["embed"] @ raw["w_ih0"].T + raw["b_ih0"] + raw["b_hh0"])
    xg_table = _pad_gate_cols(xg_table, H, H_pad).astype(compute_dtype)

    def hh(w):
        return _pad_axis(_pad_gate_cols(w.T, H, H_pad), 0, H_pad).astype(compute_dtype)

    wh0 = hh(raw["w_hh0"])
    wx1 = hh(raw["w_ih1"])
    wh1 = hh(raw["w_hh1"])
    b1 = _pad_gate_cols((raw["b_ih1"] + raw["b_hh1"])[None, :], H, H_pad)   # f32
    wl = _pad_axis(_pad_axis(raw["w_lin"].T, 0, H_pad), 1, V_pad).astype(compute_dtype)
    bl = _pad_axis(raw["b_lin"][None, :], 1, V_pad)                          # f32
    return {"xg_table": xg_table, "wh0": wh0, "wx1": wx1, "wh1": wh1,
            "b1": b1, "wl": wl, "bl": bl}


def _choose_block_T(T, B_blk, H_pad, V_pad, cdt):
    """Largest time chunk whose per-chunk blocks fit a conservative VMEM budget."""
    itm = jnp.dtype(cdt).itemsize
    budget = 8 << 20
    for cand in (64, 32, 16, 8, 4, 2, 1):
        if T % cand:
            continue
        per = cand * B_blk * itm * (2 * 4 * H_pad + 2 * V_pad + H_pad)
        if per <= budget:
            return cand
    return 1


# ----------------------------------------------------------------------------
# Full model forward.
# ----------------------------------------------------------------------------
def lstm_model_forward(tokens, kp, *, hidden_dim, vocab_size):
    """tokens: (T, B) int32 -> (logits (T*B, V), (h_n (2,B,H), c_n (2,B,H))).

    Logits are returned in the compute dtype (bf16 by default) to halve the
    HBM writeback; h_n / c_n stay float32.
    """
    T, B = tokens.shape
    H_pad = kp["wh0"].shape[0]
    V_pad = kp["wl"].shape[1]
    cdt = kp["wh0"].dtype

    B_pad = _round_up(max(B, SUB), SUB)
    # Split the padded batch across TensorCores (v7x megacore) when possible.
    b_chunks = 2 if (B_pad >= 2 * SUB and B_pad % (2 * SUB) == 0) else 1
    B_blk = B_pad // b_chunks

    tok_p = jnp.pad(tokens, ((0, 0), (0, B_pad - B)))
    # Embedding + layer-0 x-projection + layer-0 bias: one table gather.
    xg = jnp.take(kp["xg_table"], tok_p, axis=0)            # (T, B_pad, 4H_pad)

    block_T = _choose_block_T(T, B_blk, H_pad, V_pad, cdt)
    logits_p, h_n_p, c_n_p = fused_lstm_forward(
        xg, kp["wh0"], kp["wx1"], kp["wh1"], kp["b1"], kp["wl"], kp["bl"],
        block_T=block_T, b_chunks=b_chunks)

    logits = logits_p[:, :B, :vocab_size].reshape(T * B, vocab_size)
    h_n = h_n_p[:, :B, :hidden_dim]
    c_n = c_n_p[:, :B, :hidden_dim]
    return logits, (h_n, c_n)


# ----------------------------------------------------------------------------
# Pure-JAX f32 reference (PyTorch nn.LSTM semantics, gate order i,f,g,o).
# ----------------------------------------------------------------------------
def reference_forward(tokens, raw):
    T, B = tokens.shape
    x = jnp.take(raw["embed"], tokens, axis=0)

    def run_layer(x, w_ih, w_hh, b_ih, b_hh):
        H = w_hh.shape[1]
        h = jnp.zeros((B, H), jnp.float32)
        c = jnp.zeros((B, H), jnp.float32)
        ys = []
        for t in range(T):
            g = x[t] @ w_ih.T + h @ w_hh.T + b_ih + b_hh
            i = jax.nn.sigmoid(g[:, 0 * H:1 * H])
            f = jax.nn.sigmoid(g[:, 1 * H:2 * H])
            gg = jnp.tanh(g[:, 2 * H:3 * H])
            o = jax.nn.sigmoid(g[:, 3 * H:4 * H])
            c = f * c + i * gg
            h = o * jnp.tanh(c)
            ys.append(h)
        return jnp.stack(ys), h, c

    y0, h0, c0 = run_layer(x, raw["w_ih0"], raw["w_hh0"], raw["b_ih0"], raw["b_hh0"])
    y1, h1, c1 = run_layer(y0, raw["w_ih1"], raw["w_hh1"], raw["b_ih1"], raw["b_hh1"])
    logits = y1.reshape(T * B, -1) @ raw["w_lin"].T + raw["b_lin"]
    return logits, (jnp.stack([h0, h1]), jnp.stack([c0, c1]))


# ----------------------------------------------------------------------------
# Deterministic synthetic parameters in PyTorch layouts.
# ----------------------------------------------------------------------------
def init_raw_params(key, vocab_size, embed_dim, hidden_dim):
    ks = jax.random.split(key, 12)
    k = 1.0 / jnp.sqrt(hidden_dim)

    def unif(key, shape):
        return jax.random.uniform(key, shape, jnp.float32, -k, k)

    return {
        "embed": jax.random.normal(ks[0], (vocab_size, embed_dim), jnp.float32),
        "w_ih0": unif(ks[1], (4 * hidden_dim, embed_dim)),
        "w_hh0": unif(ks[2], (4 * hidden_dim, hidden_dim)),
        "b_ih0": unif(ks[3], (4 * hidden_dim,)),
        "b_hh0": unif(ks[4], (4 * hidden_dim,)),
        "w_ih1": unif(ks[5], (4 * hidden_dim, hidden_dim)),
        "w_hh1": unif(ks[6], (4 * hidden_dim, hidden_dim)),
        "b_ih1": unif(ks[7], (4 * hidden_dim,)),
        "b_hh1": unif(ks[8], (4 * hidden_dim,)),
        "w_lin": unif(ks[9], (vocab_size, hidden_dim)),
        "b_lin": unif(ks[10], (vocab_size,)),
    }


if __name__ == "__main__":
    VOCAB, EMBED, HIDDEN = 50, 16, 32
    SEQ, BATCH = 8, 2

    key = jax.random.PRNGKey(0)
    k_tok, k_par = jax.random.split(key)

    tokens = jax.random.randint(k_tok, (SEQ, BATCH), 0, VOCAB, dtype=jnp.int32)
    raw = init_raw_params(k_par, VOCAB, EMBED, HIDDEN)
    ref_logits, (ref_h, ref_c) = reference_forward(tokens, raw)

    # Default bf16 matmul/logits path (loose tol); f32 fallback path (tight tol).
    for cdt, atol, rtol in ((jnp.bfloat16, 5e-2, 5e-2),
                            (jnp.float32, 2e-4, 2e-4)):
        kp = prepare_params(raw, compute_dtype=cdt)
        fwd = jax.jit(functools.partial(lstm_model_forward,
                                        hidden_dim=HIDDEN, vocab_size=VOCAB))
        logits, (h_n, c_n) = jax.block_until_ready(fwd(tokens, kp))

        assert logits.shape == (SEQ * BATCH, VOCAB)
        assert h_n.shape == (2, BATCH, HIDDEN) and c_n.shape == (2, BATCH, HIDDEN)
        logits32 = jnp.asarray(logits, jnp.float32)
        assert jnp.allclose(logits32, ref_logits, atol=atol, rtol=rtol), cdt
        assert jnp.allclose(h_n, ref_h, atol=atol, rtol=rtol), cdt
        assert jnp.allclose(c_n, ref_c, atol=atol, rtol=rtol), cdt

    print("KERNEL_OK")
</pallas_src>

<mosaic_0001>
module attributes {stable_mosaic.version = 11 : i64} {
  func.func @_probe_kernel(%arg0: i32, %arg1: memref<8x128xf32, #tpu.memory_space<vmem>>, %arg2: memref<8x128xf32, #tpu.memory_space<vmem>>) attributes {dimension_semantics = [#tpu.dimension_semantics<arbitrary>], iteration_bounds = array<i64: 2>, scalar_prefetch = 0 : i64, scratch_operands = 0 : i64, tpu.core_type = #tpu.core_type<tc>, window_params = [{pipeline_mode = #tpu.pipeline_mode<synchronous>, transform_indices = @transform_0, window_bounds = array<i64: 8, 128>}, {pipeline_mode = #tpu.pipeline_mode<synchronous>, transform_indices = @transform_1, window_bounds = array<i64: 8, 128>}]} {
    %c0 = arith.constant 0 : index
    %c0_0 = arith.constant 0 : index
    %0 = vector.load %arg1[%c0, %c0_0] : memref<8x128xf32, #tpu.memory_space<vmem>>, vector<8x128xf32>
    %cst = arith.constant 1.000000e+00 : f32
    %1 = vector.broadcast %cst : f32 to vector<8x128xf32>
    %2 = arith.addf %0, %1 : vector<8x128xf32>
    %c0_1 = arith.constant 0 : index
    %c0_2 = arith.constant 0 : index
    %3 = vector.load %arg2[%c0_1, %c0_2] : memref<8x128xf32, #tpu.memory_space<vmem>>, vector<8x128xf32>
    tpu.vector_store %arg2[%c0_1, %c0_2], %2 {strides = array<i32>} : memref<8x128xf32, #tpu.memory_space<vmem>>, vector<8x128xf32>,
    return
  }
  func.func @transform_0(%arg0: i32) -> (i32, i32) {
    %c0_i32 = arith.constant 0 : i32
    %c0_i32_0 = arith.constant 0 : i32
    %c0_i32_1 = arith.constant 0 : i32
    return %c0_i32, %c0_i32_0 : i32, i32
  }
  func.func @transform_1(%arg0: i32) -> (i32, i32) {
    %c0_i32 = arith.constant 0 : i32
    %c0_i32_0 = arith.constant 0 : i32
    %c0_i32_1 = arith.constant 0 : i32
    return %c0_i32, %c0_i32_0 : i32, i32
  }
}

module attributes {stable_mosaic.version = 11 : i64} {
  func.func @fused_lstm_kernel(%arg0: i32, %arg1: i32, %arg2: memref<8x8x512xbf16, #tpu.memory_space<vmem>>, %arg3: memref<128x512xbf16, #tpu.memory_space<vmem>>, %arg4: memref<128x512xbf16, #tpu.memory_space<vmem>>, %arg5: memref<128x512xbf16, #tpu.memory_space<vmem>>, %arg6: memref<1x512xf32, #tpu.memory_space<vmem>>, %arg7: memref<128x128xbf16, #tpu.memory_space<vmem>>, %arg8: memref<1x128xf32, #tpu.memory_space<vmem>>, %arg9: memref<8x8x128xbf16, #tpu.memory_space<vmem>>, %arg10: memref<2x8x128xf32, #tpu.memory_space<vmem>>, %arg11: memref<2x8x128xf32, #tpu.memory_space<vmem>>, %arg12: memref<8x8x128xbf16, #tpu.memory_space<vmem>>) attributes {dimension_semantics = [#tpu.dimension_semantics<parallel>, #tpu.dimension_semantics<arbitrary>], iteration_bounds = array<i64: 1, 1>, scalar_prefetch = 0 : i64, scratch_operands = 1 : i64, tpu.core_type = #tpu.core_type<tc>, window_params = [{transform_indices = @transform_0, window_bounds = array<i64: 8, 8, 512>}, {pipeline_mode = #tpu.pipeline_mode<synchronous>, transform_indices = @transform_1, window_bounds = array<i64: 128, 512>}, {pipeline_mode = #tpu.pipeline_mode<synchronous>, transform_indices = @transform_2, window_bounds = array<i64: 128, 512>}, {pipeline_mode = #tpu.pipeline_mode<synchronous>, transform_indices = @transform_3, window_bounds = array<i64: 128, 512>}, {pipeline_mode = #tpu.pipeline_mode<synchronous>, transform_indices = @transform_4, window_bounds = array<i64: 1, 512>}, {pipeline_mode = #tpu.pipeline_mode<synchronous>, transform_indices = @transform_5, window_bounds = array<i64: 128, 128>}, {pipeline_mode = #tpu.pipeline_mode<synchronous>, transform_indices = @transform_6, window_bounds = array<i64: 1, 128>}, {transform_indices = @transform_7, window_bounds = array<i64: 8, 8, 128>}, {transform_indices = @transform_8, window_bounds = array<i64: 2, 8, 128>}, {transform_indices = @transform_9, window_bounds = array<i64: 2, 8, 128>}]} {
    %c0_i32 = arith.constant 0 : i32
    %0 = arith.cmpi eq, %arg1, %c0_i32 : i32
    %1 = arith.extui %0 : i1 to i32
    %c0_i32_0 = arith.constant 0 : i32
    %2 = arith.cmpi ne, %1, %c0_i32_0 : i32
    scf.if %2 {
      %cst_146 = arith.constant 0.000000e+00 : f32
      %589 = vector.broadcast %cst_146 : f32 to vector<2x8x128xf32>
      %c0_147 = arith.constant 0 : index
      %c0_148 = arith.constant 0 : index
      %c0_149 = arith.constant 0 : index
      %590 = vector.load %arg10[%c0_147, %c0_148, %c0_149] : memref<2x8x128xf32, #tpu.memory_space<vmem>>, vector<2x8x128xf32>
      tpu.vector_store %arg10[%c0_147, %c0_148, %c0_149], %589 {strides = array<i32>} : memref<2x8x128xf32, #tpu.memory_space<vmem>>, vector<2x8x128xf32>,
      %cst_150 = arith.constant 0.000000e+00 : f32
      %591 = vector.broadcast %cst_150 : f32 to vector<2x8x128xf32>
      %c0_151 = arith.constant 0 : index
      %c0_152 = arith.constant 0 : index
      %c0_153 = arith.constant 0 : index
      %592 = vector.load %arg11[%c0_151, %c0_152, %c0_153] : memref<2x8x128xf32, #tpu.memory_space<vmem>>, vector<2x8x128xf32>
      tpu.vector_store %arg11[%c0_151, %c0_152, %c0_153], %591 {strides = array<i32>} : memref<2x8x128xf32, #tpu.memory_space<vmem>>, vector<2x8x128xf32>,
    } else {
    }
    %c0 = arith.constant 0 : index
    %c0_1 = arith.constant 0 : index
    %3 = vector.load %arg3[%c0, %c0_1] : memref<128x512xbf16, #tpu.memory_space<vmem>>, vector<128x512xbf16>
    %c0_2 = arith.constant 0 : index
    %c0_3 = arith.constant 0 : index
    %4 = vector.load %arg4[%c0_2, %c0_3] : memref<128x512xbf16, #tpu.memory_space<vmem>>, vector<128x512xbf16>
    %c0_4 = arith.constant 0 : index
    %c0_5 = arith.constant 0 : index
    %5 = vector.load %arg5[%c0_4, %c0_5] : memref<128x512xbf16, #tpu.memory_space<vmem>>, vector<128x512xbf16>
    %c0_6 = arith.constant 0 : index
    %c0_7 = arith.constant 0 : index
    %6 = vector.load %arg6[%c0_6, %c0_7] : memref<1x512xf32, #tpu.memory_space<vmem>>, vector<1x512xf32>
    %c0_8 = arith.constant 0 : index
    %c0_9 = arith.constant 0 : index
    %c0_10 = arith.constant 0 : index
    %7 = vector.load %arg10[%c0_8, %c0_9, %c0_10] : memref<2x8x128xf32, #tpu.memory_space<vmem>>, vector<1x8x128xf32>
    %8 = vector.shape_cast %7 : vector<1x8x128xf32> to vector<8x128xf32>
    %c0_11 = arith.constant 0 : index
    %c0_12 = arith.constant 0 : index
    %c0_13 = arith.constant 0 : index
    %9 = vector.load %arg11[%c0_11, %c0_12, %c0_13] : memref<2x8x128xf32, #tpu.memory_space<vmem>>, vector<1x8x128xf32>
    %10 = vector.shape_cast %9 : vector<1x8x128xf32> to vector<8x128xf32>
    %c1 = arith.constant 1 : index
    %c0_14 = arith.constant 0 : index
    %c0_15 = arith.constant 0 : index
    %11 = vector.load %arg10[%c1, %c0_14, %c0_15] : memref<2x8x128xf32, #tpu.memory_space<vmem>>, vector<1x8x128xf32>
    %12 = vector.shape_cast %11 : vector<1x8x128xf32> to vector<8x128xf32>
    %c1_16 = arith.constant 1 : index
    %c0_17 = arith.constant 0 : index
    %c0_18 = arith.constant 0 : index
    %13 = vector.load %arg11[%c1_16, %c0_17, %c0_18] : memref<2x8x128xf32, #tpu.memory_space<vmem>>, vector<1x8x128xf32>
    %14 = vector.shape_cast %13 : vector<1x8x128xf32> to vector<8x128xf32>
    %c0_i32_19 = arith.constant 0 : i32
    %15 = arith.index_cast %c0_i32_19 : i32 to index
    %c0_20 = arith.constant 0 : index
    %c0_21 = arith.constant 0 : index
    %16 = vector.load %arg2[%15, %c0_20, %c0_21] : memref<8x8x512xbf16, #tpu.memory_space<vmem>>, vector<1x8x512xbf16>
    %17 = vector.shape_cast %16 : vector<1x8x512xbf16> to vector<8x512xbf16>
    %18 = arith.extf %17 : vector<8x512xbf16> to vector<8x512xf32>
    %19 = arith.truncf %8 : vector<8x128xf32> to vector<8x128xbf16>
    %cst = arith.constant dense<0.000000e+00> : vector<8x512xf32>
    %20 = tpu.matmul %19, %3, %cst {dimension_numbers = #tpu.dot_dimension_numbers<[1], [0], [0], [1], [0, 0, 1, 1], [], []>} : vector<8x128xbf16>, vector<128x512xbf16>, vector<8x512xf32> -> vector<8x512xf32>
    %21 = arith.addf %18, %20 : vector<8x512xf32>
    %22 = vector.extract_strided_slice %21 {offsets = [0, 0], sizes = [8, 128], strides = [1, 1]} : vector<8x512xf32> to vector<8x128xf32>
    %23 = arith.negf %22 : vector<8x128xf32>
    %24 = math.exp %23 : vector<8x128xf32>
    %cst_22 = arith.constant 1.000000e+00 : f32
    %25 = vector.broadcast %cst_22 : f32 to vector<8x128xf32>
    %26 = arith.addf %25, %24 : vector<8x128xf32>
    %27 = arith.divf %25, %26 : vector<8x128xf32>
    %28 = vector.extract_strided_slice %21 {offsets = [0, 128], sizes = [8, 128], strides = [1, 1]} : vector<8x512xf32> to vector<8x128xf32>
    %29 = arith.negf %28 : vector<8x128xf32>
    %30 = math.exp %29 : vector<8x128xf32>
    %cst_23 = arith.constant 1.000000e+00 : f32
    %31 = vector.broadcast %cst_23 : f32 to vector<8x128xf32>
    %32 = arith.addf %31, %30 : vector<8x128xf32>
    %33 = arith.divf %31, %32 : vector<8x128xf32>
    %34 = vector.extract_strided_slice %21 {offsets = [0, 256], sizes = [8, 128], strides = [1, 1]} : vector<8x512xf32> to vector<8x128xf32>
    %35 = math.tanh %34 : vector<8x128xf32>
    %36 = vector.extract_strided_slice %21 {offsets = [0, 384], sizes = [8, 128], strides = [1, 1]} : vector<8x512xf32> to vector<8x128xf32>
    %37 = arith.negf %36 : vector<8x128xf32>
    %38 = math.exp %37 : vector<8x128xf32>
    %cst_24 = arith.constant 1.000000e+00 : f32
    %39 = vector.broadcast %cst_24 : f32 to vector<8x128xf32>
    %40 = arith.addf %39, %38 : vector<8x128xf32>
    %41 = arith.divf %39, %40 : vector<8x128xf32>
    %42 = arith.mulf %33, %10 : vector<8x128xf32>
    %43 = arith.mulf %27, %35 : vector<8x128xf32>
    %44 = arith.addf %42, %43 : vector<8x128xf32>
    %45 = math.tanh %44 : vector<8x128xf32>
    %46 = arith.mulf %41, %45 : vector<8x128xf32>
    %47 = arith.truncf %46 : vector<8x128xf32> to vector<8x128xbf16>
    %cst_25 = arith.constant dense<0.000000e+00> : vector<8x512xf32>
    %48 = tpu.matmul %47, %4, %cst_25 {dimension_numbers = #tpu.dot_dimension_numbers<[1], [0], [0], [1], [0, 0, 1, 1], [], []>} : vector<8x128xbf16>, vector<128x512xbf16>, vector<8x512xf32> -> vector<8x512xf32>
    %49 = arith.truncf %12 : vector<8x128xf32> to vector<8x128xbf16>
    %cst_26 = arith.constant dense<0.000000e+00> : vector<8x512xf32>
    %50 = tpu.matmul %49, %5, %cst_26 {dimension_numbers = #tpu.dot_dimension_numbers<[1], [0], [0], [1], [0, 0, 1, 1], [], []>} : vector<8x128xbf16>, vector<128x512xbf16>, vector<8x512xf32> -> vector<8x512xf32>
    %51 = arith.addf %48, %50 : vector<8x512xf32>
    %52 = vector.broadcast %6 : vector<1x512xf32> to vector<8x512xf32>
    %53 = arith.addf %51, %52 : vector<8x512xf32>
    %54 = vector.extract_strided_slice %53 {offsets = [0, 0], sizes = [8, 128], strides = [1, 1]} : vector<8x512xf32> to vector<8x128xf32>
    %55 = arith.negf %54 : vector<8x128xf32>
    %56 = math.exp %55 : vector<8x128xf32>
    %cst_27 = arith.constant 1.000000e+00 : f32
    %57 = vector.broadcast %cst_27 : f32 to vector<8x128xf32>
    %58 = arith.addf %57, %56 : vector<8x128xf32>
    %59 = arith.divf %57, %58 : vector<8x128xf32>
    %60 = vector.extract_strided_slice %53 {offsets = [0, 128], sizes = [8, 128], strides = [1, 1]} : vector<8x512xf32> to vector<8x128xf32>
    %61 = arith.negf %60 : vector<8x128xf32>
    %62 = math.exp %61 : vector<8x128xf32>
    %cst_28 = arith.constant 1.000000e+00 : f32
    %63 = vector.broadcast %cst_28 : f32 to vector<8x128xf32>
    %64 = arith.addf %63, %62 : vector<8x128xf32>
    %65 = arith.divf %63, %64 : vector<8x128xf32>
    %66 = vector.extract_strided_slice %53 {offsets = [0, 256], sizes = [8, 128], strides = [1, 1]} : vector<8x512xf32> to vector<8x128xf32>
    %67 = math.tanh %66 : vector<8x128xf32>
    %68 = vector.extract_strided_slice %53 {offsets = [0, 384], sizes = [8, 128], strides = [1, 1]} : vector<8x512xf32> to vector<8x128xf32>
    %69 = arith.negf %68 : vector<8x128xf32>
    %70 = math.exp %69 : vector<8x128xf32>
    %cst_29 = arith.constant 1.000000e+00 : f32
    %71 = vector.broadcast %cst_29 : f32 to vector<8x128xf32>
    %72 = arith.addf %71, %70 : vector<8x128xf32>
    %73 = arith.divf %71, %72 : vector<8x128xf32>
    %74 = arith.mulf %65, %14 : vector<8x128xf32>
    %75 = arith.mulf %59, %67 : vector<8x128xf32>
    %76 = arith.addf %74, %75 : vector<8x128xf32>
    %77 = math.tanh %76 : vector<8x128xf32>
    %78 = arith.mulf %73, %77 : vector<8x128xf32>
    %79 = arith.truncf %78 : vector<8x128xf32> to vector<8x128xbf16>
    %80 = arith.index_cast %c0_i32_19 : i32 to index
    %c0_30 = arith.constant 0 : index
    %c0_31 = arith.constant 0 : index
    %81 = vector.load %arg12[%80, %c0_30, %c0_31] : memref<8x8x128xbf16, #tpu.memory_space<vmem>>, vector<1x8x128xbf16>
    %82 = vector.shape_cast %81 : vector<1x8x128xbf16> to vector<8x128xbf16>
    %83 = vector.shape_cast %79 : vector<8x128xbf16> to vector<1x8x128xbf16>
    tpu.vector_store %arg12[%80, %c0_30, %c0_31], %83 {strides = array<i32>} : memref<8x8x128xbf16, #tpu.memory_space<vmem>>, vector<1x8x128xbf16>,
    %c1_i32 = arith.constant 1 : i32
    %84 = arith.index_cast %c1_i32 : i32 to index
    %c0_32 = arith.constant 0 : index
    %c0_33 = arith.constant 0 : index
    %85 = vector.load %arg2[%84, %c0_32, %c0_33] : memref<8x8x512xbf16, #tpu.memory_space<vmem>>, vector<1x8x512xbf16>
    %86 = vector.shape_cast %85 : vector<1x8x512xbf16> to vector<8x512xbf16>
    %87 = arith.extf %86 : vector<8x512xbf16> to vector<8x512xf32>
    %88 = arith.truncf %46 : vector<8x128xf32> to vector<8x128xbf16>
    %cst_34 = arith.constant dense<0.000000e+00> : vector<8x512xf32>
    %89 = tpu.matmul %88, %3, %cst_34 {dimension_numbers = #tpu.dot_dimension_numbers<[1], [0], [0], [1], [0, 0, 1, 1], [], []>} : vector<8x128xbf16>, vector<128x512xbf16>, vector<8x512xf32> -> vector<8x512xf32>
    %90 = arith.addf %87, %89 : vector<8x512xf32>
    %91 = vector.extract_strided_slice %90 {offsets = [0, 0], sizes = [8, 128], strides = [1, 1]} : vector<8x512xf32> to vector<8x128xf32>
    %92 = arith.negf %91 : vector<8x128xf32>
    %93 = math.exp %92 : vector<8x128xf32>
    %cst_35 = arith.constant 1.000000e+00 : f32
    %94 = vector.broadcast %cst_35 : f32 to vector<8x128xf32>
    %95 = arith.addf %94, %93 : vector<8x128xf32>
    %96 = arith.divf %94, %95 : vector<8x128xf32>
    %97 = vector.extract_strided_slice %90 {offsets = [0, 128], sizes = [8, 128], strides = [1, 1]} : vector<8x512xf32> to vector<8x128xf32>
    %98 = arith.negf %97 : vector<8x128xf32>
    %99 = math.exp %98 : vector<8x128xf32>
    %cst_36 = arith.constant 1.000000e+00 : f32
    %100 = vector.broadcast %cst_36 : f32 to vector<8x128xf32>
    %101 = arith.addf %100, %99 : vector<8x128xf32>
    %102 = arith.divf %100, %101 : vector<8x128xf32>
    %103 = vector.extract_strided_slice %90 {offsets = [0, 256], sizes = [8, 128], strides = [1, 1]} : vector<8x512xf32> to vector<8x128xf32>
    %104 = math.tanh %103 : vector<8x128xf32>
    %105 = vector.extract_strided_slice %90 {offsets = [0, 384], sizes = [8, 128], strides = [1, 1]} : vector<8x512xf32> to vector<8x128xf32>
    %106 = arith.negf %105 : vector<8x128xf32>
    %107 = math.exp %106 : vector<8x128xf32>
    %cst_37 = arith.constant 1.000000e+00 : f32
    %108 = vector.broadcast %cst_37 : f32 to vector<8x128xf32>
    %109 = arith.addf %108, %107 : vector<8x128xf32>
    %110 = arith.divf %108, %109 : vector<8x128xf32>
    %111 = arith.mulf %102, %44 : vector<8x128xf32>
    %112 = arith.mulf %96, %104 : vector<8x128xf32>
    %113 = arith.addf %111, %112 : vector<8x128xf32>
    %114 = math.tanh %113 : vector<8x128xf32>
    %115 = arith.mulf %110, %114 : vector<8x128xf32>
    %116 = arith.truncf %115 : vector<8x128xf32> to vector<8x128xbf16>
    %cst_38 = arith.constant dense<0.000000e+00> : vector<8x512xf32>
    %117 = tpu.matmul %116, %4, %cst_38 {dimension_numbers = #tpu.dot_dimension_numbers<[1], [0], [0], [1], [0, 0, 1, 1], [], []>} : vector<8x128xbf16>, vector<128x512xbf16>, vector<8x512xf32> -> vector<8x512xf32>
    %118 = arith.truncf %78 : vector<8x128xf32> to vector<8x128xbf16>
    %cst_39 = arith.constant dense<0.000000e+00> : vector<8x512xf32>
    %119 = tpu.matmul %118, %5, %cst_39 {dimension_numbers = #tpu.dot_dimension_numbers<[1], [0], [0], [1], [0, 0, 1, 1], [], []>} : vector<8x128xbf16>, vector<128x512xbf16>, vector<8x512xf32> -> vector<8x512xf32>
    %120 = arith.addf %117, %119 : vector<8x512xf32>
    %121 = vector.broadcast %6 : vector<1x512xf32> to vector<8x512xf32>
    %122 = arith.addf %120, %121 : vector<8x512xf32>
    %123 = vector.extract_strided_slice %122 {offsets = [0, 0], sizes = [8, 128], strides = [1, 1]} : vector<8x512xf32> to vector<8x128xf32>
    %124 = arith.negf %123 : vector<8x128xf32>
    %125 = math.exp %124 : vector<8x128xf32>
    %cst_40 = arith.constant 1.000000e+00 : f32
    %126 = vector.broadcast %cst_40 : f32 to vector<8x128xf32>
    %127 = arith.addf %126, %125 : vector<8x128xf32>
    %128 = arith.divf %126, %127 : vector<8x128xf32>
    %129 = vector.extract_strided_slice %122 {offsets = [0, 128], sizes = [8, 128], strides = [1, 1]} : vector<8x512xf32> to vector<8x128xf32>
    %130 = arith.negf %129 : vector<8x128xf32>
    %131 = math.exp %130 : vector<8x128xf32>
    %cst_41 = arith.constant 1.000000e+00 : f32
    %132 = vector.broadcast %cst_41 : f32 to vector<8x128xf32>
    %133 = arith.addf %132, %131 : vector<8x128xf32>
    %134 = arith.divf %132, %133 : vector<8x128xf32>
    %135 = vector.extract_strided_slice %122 {offsets = [0, 256], sizes = [8, 128], strides = [1, 1]} : vector<8x512xf32> to vector<8x128xf32>
    %136 = math.tanh %135 : vector<8x128xf32>
    %137 = vector.extract_strided_slice %122 {offsets = [0, 384], sizes = [8, 128], strides = [1, 1]} : vector<8x512xf32> to vector<8x128xf32>
    %138 = arith.negf %137 : vector<8x128xf32>
    %139 = math.exp %138 : vector<8x128xf32>
    %cst_42 = arith.constant 1.000000e+00 : f32
    %140 = vector.broadcast %cst_42 : f32 to vector<8x128xf32>
    %141 = arith.addf %140, %139 : vector<8x128xf32>
    %142 = arith.divf %140, %141 : vector<8x128xf32>
    %143 = arith.mulf %134, %76 : vector<8x128xf32>
    %144 = arith.mulf %128, %136 : vector<8x128xf32>
    %145 = arith.addf %143, %144 : vector<8x128xf32>
    %146 = math.tanh %145 : vector<8x128xf32>
    %147 = arith.mulf %142, %146 : vector<8x128xf32>
    %148 = arith.truncf %147 : vector<8x128xf32> to vector<8x128xbf16>
    %149 = arith.index_cast %c1_i32 : i32 to index
    %c0_43 = arith.constant 0 : index
    %c0_44 = arith.constant 0 : index
    %150 = vector.load %arg12[%149, %c0_43, %c0_44] : memref<8x8x128xbf16, #tpu.memory_space<vmem>>, vector<1x8x128xbf16>
    %151 = vector.shape_cast %150 : vector<1x8x128xbf16> to vector<8x128xbf16>
    %152 = vector.shape_cast %148 : vector<8x128xbf16> to vector<1x8x128xbf16>
    tpu.vector_store %arg12[%149, %c0_43, %c0_44], %152 {strides = array<i32>} : memref<8x8x128xbf16, #tpu.memory_space<vmem>>, vector<1x8x128xbf16>,
    %c2_i32 = arith.constant 2 : i32
    %153 = arith.index_cast %c2_i32 : i32 to index
    %c0_45 = arith.constant 0 : index
    %c0_46 = arith.constant 0 : index
    %154 = vector.load %arg2[%153, %c0_45, %c0_46] : memref<8x8x512xbf16, #tpu.memory_space<vmem>>, vector<1x8x512xbf16>
    %155 = vector.shape_cast %154 : vector<1x8x512xbf16> to vector<8x512xbf16>
    %156 = arith.extf %155 : vector<8x512xbf16> to vector<8x512xf32>
    %157 = arith.truncf %115 : vector<8x128xf32> to vector<8x128xbf16>
    %cst_47 = arith.constant dense<0.000000e+00> : vector<8x512xf32>
    %158 = tpu.matmul %157, %3, %cst_47 {dimension_numbers = #tpu.dot_dimension_numbers<[1], [0], [0], [1], [0, 0, 1, 1], [], []>} : vector<8x128xbf16>, vector<128x512xbf16>, vector<8x512xf32> -> vector<8x512xf32>
    %159 = arith.addf %156, %158 : vector<8x512xf32>
    %160 = vector.extract_strided_slice %159 {offsets = [0, 0], sizes = [8, 128], strides = [1, 1]} : vector<8x512xf32> to vector<8x128xf32>
    %161 = arith.negf %160 : vector<8x128xf32>
    %162 = math.exp %161 : vector<8x128xf32>
    %cst_48 = arith.constant 1.000000e+00 : f32
    %163 = vector.broadcast %cst_48 : f32 to vector<8x128xf32>
    %164 = arith.addf %163, %162 : vector<8x128xf32>
    %165 = arith.divf %163, %164 : vector<8x128xf32>
    %166 = vector.extract_strided_slice %159 {offsets = [0, 128], sizes = [8, 128], strides = [1, 1]} : vector<8x512xf32> to vector<8x128xf32>
    %167 = arith.negf %166 : vector<8x128xf32>
    %168 = math.exp %167 : vector<8x128xf32>
    %cst_49 = arith.constant 1.000000e+00 : f32
    %169 = vector.broadcast %cst_49 : f32 to vector<8x128xf32>
    %170 = arith.addf %169, %168 : vector<8x128xf32>
    %171 = arith.divf %169, %170 : vector<8x128xf32>
    %172 = vector.extract_strided_slice %159 {offsets = [0, 256], sizes = [8, 128], strides = [1, 1]} : vector<8x512xf32> to vector<8x128xf32>
    %173 = math.tanh %172 : vector<8x128xf32>
    %174 = vector.extract_strided_slice %159 {offsets = [0, 384], sizes = [8, 128], strides = [1, 1]} : vector<8x512xf32> to vector<8x128xf32>
    %175 = arith.negf %174 : vector<8x128xf32>
    %176 = math.exp %175 : vector<8x128xf32>
    %cst_50 = arith.constant 1.000000e+00 : f32
    %177 = vector.broadcast %cst_50 : f32 to vector<8x128xf32>
    %178 = arith.addf %177, %176 : vector<8x128xf32>
    %179 = arith.divf %177, %178 : vector<8x128xf32>
    %180 = arith.mulf %171, %113 : vector<8x128xf32>
    %181 = arith.mulf %165, %173 : vector<8x128xf32>
    %182 = arith.addf %180, %181 : vector<8x128xf32>
    %183 = math.tanh %182 : vector<8x128xf32>
    %184 = arith.mulf %179, %183 : vector<8x128xf32>
    %185 = arith.truncf %184 : vector<8x128xf32> to vector<8x128xbf16>
    %cst_51 = arith.constant dense<0.000000e+00> : vector<8x512xf32>
    %186 = tpu.matmul %185, %4, %cst_51 {dimension_numbers = #tpu.dot_dimension_numbers<[1], [0], [0], [1], [0, 0, 1, 1], [], []>} : vector<8x128xbf16>, vector<128x512xbf16>, vector<8x512xf32> -> vector<8x512xf32>
    %187 = arith.truncf %147 : vector<8x128xf32> to vector<8x128xbf16>
    %cst_52 = arith.constant dense<0.000000e+00> : vector<8x512xf32>
    %188 = tpu.matmul %187, %5, %cst_52 {dimension_numbers = #tpu.dot_dimension_numbers<[1], [0], [0], [1], [0, 0, 1, 1], [], []>} : vector<8x128xbf16>, vector<128x512xbf16>, vector<8x512xf32> -> vector<8x512xf32>
    %189 = arith.addf %186, %188 : vector<8x512xf32>
    %190 = vector.broadcast %6 : vector<1x512xf32> to vector<8x512xf32>
    %191 = arith.addf %189, %190 : vector<8x512xf32>
    %192 = vector.extract_strided_slice %191 {offsets = [0, 0], sizes = [8, 128], strides = [1, 1]} : vector<8x512xf32> to vector<8x128xf32>
    %193 = arith.negf %192 : vector<8x128xf32>
    %194 = math.exp %193 : vector<8x128xf32>
    %cst_53 = arith.constant 1.000000e+00 : f32
    %195 = vector.broadcast %cst_53 : f32 to vector<8x128xf32>
    %196 = arith.addf %195, %194 : vector<8x128xf32>
    %197 = arith.divf %195, %196 : vector<8x128xf32>
    %198 = vector.extract_strided_slice %191 {offsets = [0, 128], sizes = [8, 128], strides = [1, 1]} : vector<8x512xf32> to vector<8x128xf32>
    %199 = arith.negf %198 : vector<8x128xf32>
    %200 = math.exp %199 : vector<8x128xf32>
    %cst_54 = arith.constant 1.000000e+00 : f32
    %201 = vector.broadcast %cst_54 : f32 to vector<8x128xf32>
    %202 = arith.addf %201, %200 : vector<8x128xf32>
    %203 = arith.divf %201, %202 : vector<8x128xf32>
    %204 = vector.extract_strided_slice %191 {offsets = [0, 256], sizes = [8, 128], strides = [1, 1]} : vector<8x512xf32> to vector<8x128xf32>
    %205 = math.tanh %204 : vector<8x128xf32>
    %206 = vector.extract_strided_slice %191 {offsets = [0, 384], sizes = [8, 128], strides = [1, 1]} : vector<8x512xf32> to vector<8x128xf32>
    %207 = arith.negf %206 : vector<8x128xf32>
    %208 = math.exp %207 : vector<8x128xf32>
    %cst_55 = arith.constant 1.000000e+00 : f32
    %209 = vector.broadcast %cst_55 : f32 to vector<8x128xf32>
    %210 = arith.addf %209, %208 : vector<8x128xf32>
    %211 = arith.divf %209, %210 : vector<8x128xf32>
    %212 = arith.mulf %203, %145 : vector<8x128xf32>
    %213 = arith.mulf %197, %205 : vector<8x128xf32>
    %214 = arith.addf %212, %213 : vector<8x128xf32>
    %215 = math.tanh %214 : vector<8x128xf32>
    %216 = arith.mulf %211, %215 : vector<8x128xf32>
    %217 = arith.truncf %216 : vector<8x128xf32> to vector<8x128xbf16>
    %218 = arith.index_cast %c2_i32 : i32 to index
    %c0_56 = arith.constant 0 : index
    %c0_57 = arith.constant 0 : index
    %219 = vector.load %arg12[%218, %c0_56, %c0_57] : memref<8x8x128xbf16, #tpu.memory_space<vmem>>, vector<1x8x128xbf16>
    %220 = vector.shape_cast %219 : vector<1x8x128xbf16> to vector<8x128xbf16>
    %221 = vector.shape_cast %217 : vector<8x128xbf16> to vector<1x8x128xbf16>
    tpu.vector_store %arg12[%218, %c0_56, %c0_57], %221 {strides = array<i32>} : memref<8x8x128xbf16, #tpu.memory_space<vmem>>, vector<1x8x128xbf16>,
    %c3_i32 = arith.constant 3 : i32
    %222 = arith.index_cast %c3_i32 : i32 to index
    %c0_58 = arith.constant 0 : index
    %c0_59 = arith.constant 0 : index
    %223 = vector.load %arg2[%222, %c0_58, %c0_59] : memref<8x8x512xbf16, #tpu.memory_space<vmem>>, vector<1x8x512xbf16>
    %224 = vector.shape_cast %223 : vector<1x8x512xbf16> to vector<8x512xbf16>
    %225 = arith.extf %224 : vector<8x512xbf16> to vector<8x512xf32>
    %226 = arith.truncf %184 : vector<8x128xf32> to vector<8x128xbf16>
    %cst_60 = arith.constant dense<0.000000e+00> : vector<8x512xf32>
    %227 = tpu.matmul %226, %3, %cst_60 {dimension_numbers = #tpu.dot_dimension_numbers<[1], [0], [0], [1], [0, 0, 1, 1], [], []>} : vector<8x128xbf16>, vector<128x512xbf16>, vector<8x512xf32> -> vector<8x512xf32>
    %228 = arith.addf %225, %227 : vector<8x512xf32>
    %229 = vector.extract_strided_slice %228 {offsets = [0, 0], sizes = [8, 128], strides = [1, 1]} : vector<8x512xf32> to vector<8x128xf32>
    %230 = arith.negf %229 : vector<8x128xf32>
    %231 = math.exp %230 : vector<8x128xf32>
    %cst_61 = arith.constant 1.000000e+00 : f32
    %232 = vector.broadcast %cst_61 : f32 to vector<8x128xf32>
    %233 = arith.addf %232, %231 : vector<8x128xf32>
    %234 = arith.divf %232, %233 : vector<8x128xf32>
    %235 = vector.extract_strided_slice %228 {offsets = [0, 128], sizes = [8, 128], strides = [1, 1]} : vector<8x512xf32> to vector<8x128xf32>
    %236 = arith.negf %235 : vector<8x128xf32>
    %237 = math.exp %236 : vector<8x128xf32>
    %cst_62 = arith.constant 1.000000e+00 : f32
    %238 = vector.broadcast %cst_62 : f32 to vector<8x128xf32>
    %239 = arith.addf %238, %237 : vector<8x128xf32>
    %240 = arith.divf %238, %239 : vector<8x128xf32>
    %241 = vector.extract_strided_slice %228 {offsets = [0, 256], sizes = [8, 128], strides = [1, 1]} : vector<8x512xf32> to vector<8x128xf32>
    %242 = math.tanh %241 : vector<8x128xf32>
    %243 = vector.extract_strided_slice %228 {offsets = [0, 384], sizes = [8, 128], strides = [1, 1]} : vector<8x512xf32> to vector<8x128xf32>
    %244 = arith.negf %243 : vector<8x128xf32>
    %245 = math.exp %244 : vector<8x128xf32>
    %cst_63 = arith.constant 1.000000e+00 : f32
    %246 = vector.broadcast %cst_63 : f32 to vector<8x128xf32>
    %247 = arith.addf %246, %245 : vector<8x128xf32>
    %248 = arith.divf %246, %247 : vector<8x128xf32>
    %249 = arith.mulf %240, %182 : vector<8x128xf32>
    %250 = arith.mulf %234, %242 : vector<8x128xf32>
    %251 = arith.addf %249, %250 : vector<8x128xf32>
    %252 = math.tanh %251 : vector<8x128xf32>
    %253 = arith.mulf %248, %252 : vector<8x128xf32>
    %254 = arith.truncf %253 : vector<8x128xf32> to vector<8x128xbf16>
    %cst_64 = arith.constant dense<0.000000e+00> : vector<8x512xf32>
    %255 = tpu.matmul %254, %4, %cst_64 {dimension_numbers = #tpu.dot_dimension_numbers<[1], [0], [0], [1], [0, 0, 1, 1], [], []>} : vector<8x128xbf16>, vector<128x512xbf16>, vector<8x512xf32> -> vector<8x512xf32>
    %256 = arith.truncf %216 : vector<8x128xf32> to vector<8x128xbf16>
    %cst_65 = arith.constant dense<0.000000e+00> : vector<8x512xf32>
    %257 = tpu.matmul %256, %5, %cst_65 {dimension_numbers = #tpu.dot_dimension_numbers<[1], [0], [0], [1], [0, 0, 1, 1], [], []>} : vector<8x128xbf16>, vector<128x512xbf16>, vector<8x512xf32> -> vector<8x512xf32>
    %258 = arith.addf %255, %257 : vector<8x512xf32>
    %259 = vector.broadcast %6 : vector<1x512xf32> to vector<8x512xf32>
    %260 = arith.addf %258, %259 : vector<8x512xf32>
    %261 = vector.extract_strided_slice %260 {offsets = [0, 0], sizes = [8, 128], strides = [1, 1]} : vector<8x512xf32> to vector<8x128xf32>
    %262 = arith.negf %261 : vector<8x128xf32>
    %263 = math.exp %262 : vector<8x128xf32>
    %cst_66 = arith.constant 1.000000e+00 : f32
    %264 = vector.broadcast %cst_66 : f32 to vector<8x128xf32>
    %265 = arith.addf %264, %263 : vector<8x128xf32>
    %266 = arith.divf %264, %265 : vector<8x128xf32>
    %267 = vector.extract_strided_slice %260 {offsets = [0, 128], sizes = [8, 128], strides = [1, 1]} : vector<8x512xf32> to vector<8x128xf32>
    %268 = arith.negf %267 : vector<8x128xf32>
    %269 = math.exp %268 : vector<8x128xf32>
    %cst_67 = arith.constant 1.000000e+00 : f32
    %270 = vector.broadcast %cst_67 : f32 to vector<8x128xf32>
    %271 = arith.addf %270, %269 : vector<8x128xf32>
    %272 = arith.divf %270, %271 : vector<8x128xf32>
    %273 = vector.extract_strided_slice %260 {offsets = [0, 256], sizes = [8, 128], strides = [1, 1]} : vector<8x512xf32> to vector<8x128xf32>
    %274 = math.tanh %273 : vector<8x128xf32>
    %275 = vector.extract_strided_slice %260 {offsets = [0, 384], sizes = [8, 128], strides = [1, 1]} : vector<8x512xf32> to vector<8x128xf32>
    %276 = arith.negf %275 : vector<8x128xf32>
    %277 = math.exp %276 : vector<8x128xf32>
    %cst_68 = arith.constant 1.000000e+00 : f32
    %278 = vector.broadcast %cst_68 : f32 to vector<8x128xf32>
    %279 = arith.addf %278, %277 : vector<8x128xf32>
    %280 = arith.divf %278, %279 : vector<8x128xf32>
    %281 = arith.mulf %272, %214 : vector<8x128xf32>
    %282 = arith.mulf %266, %274 : vector<8x128xf32>
    %283 = arith.addf %281, %282 : vector<8x128xf32>
    %284 = math.tanh %283 : vector<8x128xf32>
    %285 = arith.mulf %280, %284 : vector<8x128xf32>
    %286 = arith.truncf %285 : vector<8x128xf32> to vector<8x128xbf16>
    %287 = arith.index_cast %c3_i32 : i32 to index
    %c0_69 = arith.constant 0 : index
    %c0_70 = arith.constant 0 : index
    %288 = vector.load %arg12[%287, %c0_69, %c0_70] : memref<8x8x128xbf16, #tpu.memory_space<vmem>>, vector<1x8x128xbf16>
    %289 = vector.shape_cast %288 : vector<1x8x128xbf16> to vector<8x128xbf16>
    %290 = vector.shape_cast %286 : vector<8x128xbf16> to vector<1x8x128xbf16>
    tpu.vector_store %arg12[%287, %c0_69, %c0_70], %290 {strides = array<i32>} : memref<8x8x128xbf16, #tpu.memory_space<vmem>>, vector<1x8x128xbf16>,
    %c4_i32 = arith.constant 4 : i32
    %291 = arith.index_cast %c4_i32 : i32 to index
    %c0_71 = arith.constant 0 : index
    %c0_72 = arith.constant 0 : index
    %292 = vector.load %arg2[%291, %c0_71, %c0_72] : memref<8x8x512xbf16, #tpu.memory_space<vmem>>, vector<1x8x512xbf16>
    %293 = vector.shape_cast %292 : vector<1x8x512xbf16> to vector<8x512xbf16>
    %294 = arith.extf %293 : vector<8x512xbf16> to vector<8x512xf32>
    %295 = arith.truncf %253 : vector<8x128xf32> to vector<8x128xbf16>
    %cst_73 = arith.constant dense<0.000000e+00> : vector<8x512xf32>
    %296 = tpu.matmul %295, %3, %cst_73 {dimension_numbers = #tpu.dot_dimension_numbers<[1], [0], [0], [1], [0, 0, 1, 1], [], []>} : vector<8x128xbf16>, vector<128x512xbf16>, vector<8x512xf32> -> vector<8x512xf32>
    %297 = arith.addf %294, %296 : vector<8x512xf32>
    %298 = vector.extract_strided_slice %297 {offsets = [0, 0], sizes = [8, 128], strides = [1, 1]} : vector<8x512xf32> to vector<8x128xf32>
    %299 = arith.negf %298 : vector<8x128xf32>
    %300 = math.exp %299 : vector<8x128xf32>
    %cst_74 = arith.constant 1.000000e+00 : f32
    %301 = vector.broadcast %cst_74 : f32 to vector<8x128xf32>
    %302 = arith.addf %301, %300 : vector<8x128xf32>
    %303 = arith.divf %301, %302 : vector<8x128xf32>
    %304 = vector.extract_strided_slice %297 {offsets = [0, 128], sizes = [8, 128], strides = [1, 1]} : vector<8x512xf32> to vector<8x128xf32>
    %305 = arith.negf %304 : vector<8x128xf32>
    %306 = math.exp %305 : vector<8x128xf32>
    %cst_75 = arith.constant 1.000000e+00 : f32
    %307 = vector.broadcast %cst_75 : f32 to vector<8x128xf32>
    %308 = arith.addf %307, %306 : vector<8x128xf32>
    %309 = arith.divf %307, %308 : vector<8x128xf32>
    %310 = vector.extract_strided_slice %297 {offsets = [0, 256], sizes = [8, 128], strides = [1, 1]} : vector<8x512xf32> to vector<8x128xf32>
    %311 = math.tanh %310 : vector<8x128xf32>
    %312 = vector.extract_strided_slice %297 {offsets = [0, 384], sizes = [8, 128], strides = [1, 1]} : vector<8x512xf32> to vector<8x128xf32>
    %313 = arith.negf %312 : vector<8x128xf32>
    %314 = math.exp %313 : vector<8x128xf32>
    %cst_76 = arith.constant 1.000000e+00 : f32
    %315 = vector.broadcast %cst_76 : f32 to vector<8x128xf32>
    %316 = arith.addf %315, %314 : vector<8x128xf32>
    %317 = arith.divf %315, %316 : vector<8x128xf32>
    %318 = arith.mulf %309, %251 : vector<8x128xf32>
    %319 = arith.mulf %303, %311 : vector<8x128xf32>
    %320 = arith.addf %318, %319 : vector<8x128xf32>
    %321 = math.tanh %320 : vector<8x128xf32>
    %322 = arith.mulf %317, %321 : vector<8x128xf32>
    %323 = arith.truncf %322 : vector<8x128xf32> to vector<8x128xbf16>
    %cst_77 = arith.constant dense<0.000000e+00> : vector<8x512xf32>
    %324 = tpu.matmul %323, %4, %cst_77 {dimension_numbers = #tpu.dot_dimension_numbers<[1], [0], [0], [1], [0, 0, 1, 1], [], []>} : vector<8x128xbf16>, vector<128x512xbf16>, vector<8x512xf32> -> vector<8x512xf32>
    %325 = arith.truncf %285 : vector<8x128xf32> to vector<8x128xbf16>
    %cst_78 = arith.constant dense<0.000000e+00> : vector<8x512xf32>
    %326 = tpu.matmul %325, %5, %cst_78 {dimension_numbers = #tpu.dot_dimension_numbers<[1], [0], [0], [1], [0, 0, 1, 1], [], []>} : vector<8x128xbf16>, vector<128x512xbf16>, vector<8x512xf32> -> vector<8x512xf32>
    %327 = arith.addf %324, %326 : vector<8x512xf32>
    %328 = vector.broadcast %6 : vector<1x512xf32> to vector<8x512xf32>
    %329 = arith.addf %327, %328 : vector<8x512xf32>
    %330 = vector.extract_strided_slice %329 {offsets = [0, 0], sizes = [8, 128], strides = [1, 1]} : vector<8x512xf32> to vector<8x128xf32>
    %331 = arith.negf %330 : vector<8x128xf32>
    %332 = math.exp %331 : vector<8x128xf32>
    %cst_79 = arith.constant 1.000000e+00 : f32
    %333 = vector.broadcast %cst_79 : f32 to vector<8x128xf32>
    %334 = arith.addf %333, %332 : vector<8x128xf32>
    %335 = arith.divf %333, %334 : vector<8x128xf32>
    %336 = vector.extract_strided_slice %329 {offsets = [0, 128], sizes = [8, 128], strides = [1, 1]} : vector<8x512xf32> to vector<8x128xf32>
    %337 = arith.negf %336 : vector<8x128xf32>
    %338 = math.exp %337 : vector<8x128xf32>
    %cst_80 = arith.constant 1.000000e+00 : f32
    %339 = vector.broadcast %cst_80 : f32 to vector<8x128xf32>
    %340 = arith.addf %339, %338 : vector<8x128xf32>
    %341 = arith.divf %339, %340 : vector<8x128xf32>
    %342 = vector.extract_strided_slice %329 {offsets = [0, 256], sizes = [8, 128], strides = [1, 1]} : vector<8x512xf32> to vector<8x128xf32>
    %343 = math.tanh %342 : vector<8x128xf32>
    %344 = vector.extract_strided_slice %329 {offsets = [0, 384], sizes = [8, 128], strides = [1, 1]} : vector<8x512xf32> to vector<8x128xf32>
    %345 = arith.negf %344 : vector<8x128xf32>
    %346 = math.exp %345 : vector<8x128xf32>
    %cst_81 = arith.constant 1.000000e+00 : f32
    %347 = vector.broadcast %cst_81 : f32 to vector<8x128xf32>
    %348 = arith.addf %347, %346 : vector<8x128xf32>
    %349 = arith.divf %347, %348 : vector<8x128xf32>
    %350 = arith.mulf %341, %283 : vector<8x128xf32>
    %351 = arith.mulf %335, %343 : vector<8x128xf32>
    %352 = arith.addf %350, %351 : vector<8x128xf32>
    %353 = math.tanh %352 : vector<8x128xf32>
    %354 = arith.mulf %349, %353 : vector<8x128xf32>
    %355 = arith.truncf %354 : vector<8x128xf32> to vector<8x128xbf16>
    %356 = arith.index_cast %c4_i32 : i32 to index
    %c0_82 = arith.constant 0 : index
    %c0_83 = arith.constant 0 : index
    %357 = vector.load %arg12[%356, %c0_82, %c0_83] : memref<8x8x128xbf16, #tpu.memory_space<vmem>>, vector<1x8x128xbf16>
    %358 = vector.shape_cast %357 : vector<1x8x128xbf16> to vector<8x128xbf16>
    %359 = vector.shape_cast %355 : vector<8x128xbf16> to vector<1x8x128xbf16>
    tpu.vector_store %arg12[%356, %c0_82, %c0_83], %359 {strides = array<i32>} : memref<8x8x128xbf16, #tpu.memory_space<vmem>>, vector<1x8x128xbf16>,
    %c5_i32 = arith.constant 5 : i32
    %360 = arith.index_cast %c5_i32 : i32 to index
    %c0_84 = arith.constant 0 : index
    %c0_85 = arith.constant 0 : index
    %361 = vector.load %arg2[%360, %c0_84, %c0_85] : memref<8x8x512xbf16, #tpu.memory_space<vmem>>, vector<1x8x512xbf16>
    %362 = vector.shape_cast %361 : vector<1x8x512xbf16> to vector<8x512xbf16>
    %363 = arith.extf %362 : vector<8x512xbf16> to vector<8x512xf32>
    %364 = arith.truncf %322 : vector<8x128xf32> to vector<8x128xbf16>
    %cst_86 = arith.constant dense<0.000000e+00> : vector<8x512xf32>
    %365 = tpu.matmul %364, %3, %cst_86 {dimension_numbers = #tpu.dot_dimension_numbers<[1], [0], [0], [1], [0, 0, 1, 1], [], []>} : vector<8x128xbf16>, vector<128x512xbf16>, vector<8x512xf32> -> vector<8x512xf32>
    %366 = arith.addf %363, %365 : vector<8x512xf32>
    %367 = vector.extract_strided_slice %366 {offsets = [0, 0], sizes = [8, 128], strides = [1, 1]} : vector<8x512xf32> to vector<8x128xf32>
    %368 = arith.negf %367 : vector<8x128xf32>
    %369 = math.exp %368 : vector<8x128xf32>
    %cst_87 = arith.constant 1.000000e+00 : f32
    %370 = vector.broadcast %cst_87 : f32 to vector<8x128xf32>
    %371 = arith.addf %370, %369 : vector<8x128xf32>
    %372 = arith.divf %370, %371 : vector<8x128xf32>
    %373 = vector.extract_strided_slice %366 {offsets = [0, 128], sizes = [8, 128], strides = [1, 1]} : vector<8x512xf32> to vector<8x128xf32>
    %374 = arith.negf %373 : vector<8x128xf32>
    %375 = math.exp %374 : vector<8x128xf32>
    %cst_88 = arith.constant 1.000000e+00 : f32
    %376 = vector.broadcast %cst_88 : f32 to vector<8x128xf32>
    %377 = arith.addf %376, %375 : vector<8x128xf32>
    %378 = arith.divf %376, %377 : vector<8x128xf32>
    %379 = vector.extract_strided_slice %366 {offsets = [0, 256], sizes = [8, 128], strides = [1, 1]} : vector<8x512xf32> to vector<8x128xf32>
    %380 = math.tanh %379 : vector<8x128xf32>
    %381 = vector.extract_strided_slice %366 {offsets = [0, 384], sizes = [8, 128], strides = [1, 1]} : vector<8x512xf32> to vector<8x128xf32>
    %382 = arith.negf %381 : vector<8x128xf32>
    %383 = math.exp %382 : vector<8x128xf32>
    %cst_89 = arith.constant 1.000000e+00 : f32
    %384 = vector.broadcast %cst_89 : f32 to vector<8x128xf32>
    %385 = arith.addf %384, %383 : vector<8x128xf32>
    %386 = arith.divf %384, %385 : vector<8x128xf32>
    %387 = arith.mulf %378, %320 : vector<8x128xf32>
    %388 = arith.mulf %372, %380 : vector<8x128xf32>
    %389 = arith.addf %387, %388 : vector<8x128xf32>
    %390 = math.tanh %389 : vector<8x128xf32>
    %391 = arith.mulf %386, %390 : vector<8x128xf32>
    %392 = arith.truncf %391 : vector<8x128xf32> to vector<8x128xbf16>
    %cst_90 = arith.constant dense<0.000000e+00> : vector<8x512xf32>
    %393 = tpu.matmul %392, %4, %cst_90 {dimension_numbers = #tpu.dot_dimension_numbers<[1], [0], [0], [1], [0, 0, 1, 1], [], []>} : vector<8x128xbf16>, vector<128x512xbf16>, vector<8x512xf32> -> vector<8x512xf32>
    %394 = arith.truncf %354 : vector<8x128xf32> to vector<8x128xbf16>
    %cst_91 = arith.constant dense<0.000000e+00> : vector<8x512xf32>
    %395 = tpu.matmul %394, %5, %cst_91 {dimension_numbers = #tpu.dot_dimension_numbers<[1], [0], [0], [1], [0, 0, 1, 1], [], []>} : vector<8x128xbf16>, vector<128x512xbf16>, vector<8x512xf32> -> vector<8x512xf32>
    %396 = arith.addf %393, %395 : vector<8x512xf32>
    %397 = vector.broadcast %6 : vector<1x512xf32> to vector<8x512xf32>
    %398 = arith.addf %396, %397 : vector<8x512xf32>
    %399 = vector.extract_strided_slice %398 {offsets = [0, 0], sizes = [8, 128], strides = [1, 1]} : vector<8x512xf32> to vector<8x128xf32>
    %400 = arith.negf %399 : vector<8x128xf32>
    %401 = math.exp %400 : vector<8x128xf32>
    %cst_92 = arith.constant 1.000000e+00 : f32
    %402 = vector.broadcast %cst_92 : f32 to vector<8x128xf32>
    %403 = arith.addf %402, %401 : vector<8x128xf32>
    %404 = arith.divf %402, %403 : vector<8x128xf32>
    %405 = vector.extract_strided_slice %398 {offsets = [0, 128], sizes = [8, 128], strides = [1, 1]} : vector<8x512xf32> to vector<8x128xf32>
    %406 = arith.negf %405 : vector<8x128xf32>
    %407 = math.exp %406 : vector<8x128xf32>
    %cst_93 = arith.constant 1.000000e+00 : f32
    %408 = vector.broadcast %cst_93 : f32 to vector<8x128xf32>
    %409 = arith.addf %408, %407 : vector<8x128xf32>
    %410 = arith.divf %408, %409 : vector<8x128xf32>
    %411 = vector.extract_strided_slice %398 {offsets = [0, 256], sizes = [8, 128], strides = [1, 1]} : vector<8x512xf32> to vector<8x128xf32>
    %412 = math.tanh %411 : vector<8x128xf32>
    %413 = vector.extract_strided_slice %398 {offsets = [0, 384], sizes = [8, 128], strides = [1, 1]} : vector<8x512xf32> to vector<8x128xf32>
    %414 = arith.negf %413 : vector<8x128xf32>
    %415 = math.exp %414 : vector<8x128xf32>
    %cst_94 = arith.constant 1.000000e+00 : f32
    %416 = vector.broadcast %cst_94 : f32 to vector<8x128xf32>
    %417 = arith.addf %416, %415 : vector<8x128xf32>
    %418 = arith.divf %416, %417 : vector<8x128xf32>
    %419 = arith.mulf %410, %352 : vector<8x128xf32>
    %420 = arith.mulf %404, %412 : vector<8x128xf32>
    %421 = arith.addf %419, %420 : vector<8x128xf32>
    %422 = math.tanh %421 : vector<8x128xf32>
    %423 = arith.mulf %418, %422 : vector<8x128xf32>
    %424 = arith.truncf %423 : vector<8x128xf32> to vector<8x128xbf16>
    %425 = arith.index_cast %c5_i32 : i32 to index
    %c0_95 = arith.constant 0 : index
    %c0_96 = arith.constant 0 : index
    %426 = vector.load %arg12[%425, %c0_95, %c0_96] : memref<8x8x128xbf16, #tpu.memory_space<vmem>>, vector<1x8x128xbf16>
    %427 = vector.shape_cast %426 : vector<1x8x128xbf16> to vector<8x128xbf16>
    %428 = vector.shape_cast %424 : vector<8x128xbf16> to vector<1x8x128xbf16>
    tpu.vector_store %arg12[%425, %c0_95, %c0_96], %428 {strides = array<i32>} : memref<8x8x128xbf16, #tpu.memory_space<vmem>>, vector<1x8x128xbf16>,
    %c6_i32 = arith.constant 6 : i32
    %429 = arith.index_cast %c6_i32 : i32 to index
    %c0_97 = arith.constant 0 : index
    %c0_98 = arith.constant 0 : index
    %430 = vector.load %arg2[%429, %c0_97, %c0_98] : memref<8x8x512xbf16, #tpu.memory_space<vmem>>, vector<1x8x512xbf16>
    %431 = vector.shape_cast %430 : vector<1x8x512xbf16> to vector<8x512xbf16>
    %432 = arith.extf %431 : vector<8x512xbf16> to vector<8x512xf32>
    %433 = arith.truncf %391 : vector<8x128xf32> to vector<8x128xbf16>
    %cst_99 = arith.constant dense<0.000000e+00> : vector<8x512xf32>
    %434 = tpu.matmul %433, %3, %cst_99 {dimension_numbers = #tpu.dot_dimension_numbers<[1], [0], [0], [1], [0, 0, 1, 1], [], []>} : vector<8x128xbf16>, vector<128x512xbf16>, vector<8x512xf32> -> vector<8x512xf32>
    %435 = arith.addf %432, %434 : vector<8x512xf32>
    %436 = vector.extract_strided_slice %435 {offsets = [0, 0], sizes = [8, 128], strides = [1, 1]} : vector<8x512xf32> to vector<8x128xf32>
    %437 = arith.negf %436 : vector<8x128xf32>
    %438 = math.exp %437 : vector<8x128xf32>
    %cst_100 = arith.constant 1.000000e+00 : f32
    %439 = vector.broadcast %cst_100 : f32 to vector<8x128xf32>
    %440 = arith.addf %439, %438 : vector<8x128xf32>
    %441 = arith.divf %439, %440 : vector<8x128xf32>
    %442 = vector.extract_strided_slice %435 {offsets = [0, 128], sizes = [8, 128], strides = [1, 1]} : vector<8x512xf32> to vector<8x128xf32>
    %443 = arith.negf %442 : vector<8x128xf32>
    %444 = math.exp %443 : vector<8x128xf32>
    %cst_101 = arith.constant 1.000000e+00 : f32
    %445 = vector.broadcast %cst_101 : f32 to vector<8x128xf32>
    %446 = arith.addf %445, %444 : vector<8x128xf32>
    %447 = arith.divf %445, %446 : vector<8x128xf32>
    %448 = vector.extract_strided_slice %435 {offsets = [0, 256], sizes = [8, 128], strides = [1, 1]} : vector<8x512xf32> to vector<8x128xf32>
    %449 = math.tanh %448 : vector<8x128xf32>
    %450 = vector.extract_strided_slice %435 {offsets = [0, 384], sizes = [8, 128], strides = [1, 1]} : vector<8x512xf32> to vector<8x128xf32>
    %451 = arith.negf %450 : vector<8x128xf32>
    %452 = math.exp %451 : vector<8x128xf32>
    %cst_102 = arith.constant 1.000000e+00 : f32
    %453 = vector.broadcast %cst_102 : f32 to vector<8x128xf32>
    %454 = arith.addf %453, %452 : vector<8x128xf32>
    %455 = arith.divf %453, %454 : vector<8x128xf32>
    %456 = arith.mulf %447, %389 : vector<8x128xf32>
    %457 = arith.mulf %441, %449 : vector<8x128xf32>
    %458 = arith.addf %456, %457 : vector<8x128xf32>
    %459 = math.tanh %458 : vector<8x128xf32>
    %460 = arith.mulf %455, %459 : vector<8x128xf32>
    %461 = arith.truncf %460 : vector<8x128xf32> to vector<8x128xbf16>
    %cst_103 = arith.constant dense<0.000000e+00> : vector<8x512xf32>
    %462 = tpu.matmul %461, %4, %cst_103 {dimension_numbers = #tpu.dot_dimension_numbers<[1], [0], [0], [1], [0, 0, 1, 1], [], []>} : vector<8x128xbf16>, vector<128x512xbf16>, vector<8x512xf32> -> vector<8x512xf32>
    %463 = arith.truncf %423 : vector<8x128xf32> to vector<8x128xbf16>
    %cst_104 = arith.constant dense<0.000000e+00> : vector<8x512xf32>
    %464 = tpu.matmul %463, %5, %cst_104 {dimension_numbers = #tpu.dot_dimension_numbers<[1], [0], [0], [1], [0, 0, 1, 1], [], []>} : vector<8x128xbf16>, vector<128x512xbf16>, vector<8x512xf32> -> vector<8x512xf32>
    %465 = arith.addf %462, %464 : vector<8x512xf32>
    %466 = vector.broadcast %6 : vector<1x512xf32> to vector<8x512xf32>
    %467 = arith.addf %465, %466 : vector<8x512xf32>
    %468 = vector.extract_strided_slice %467 {offsets = [0, 0], sizes = [8, 128], strides = [1, 1]} : vector<8x512xf32> to vector<8x128xf32>
    %469 = arith.negf %468 : vector<8x128xf32>
    %470 = math.exp %469 : vector<8x128xf32>
    %cst_105 = arith.constant 1.000000e+00 : f32
    %471 = vector.broadcast %cst_105 : f32 to vector<8x128xf32>
    %472 = arith.addf %471, %470 : vector<8x128xf32>
    %473 = arith.divf %471, %472 : vector<8x128xf32>
    %474 = vector.extract_strided_slice %467 {offsets = [0, 128], sizes = [8, 128], strides = [1, 1]} : vector<8x512xf32> to vector<8x128xf32>
    %475 = arith.negf %474 : vector<8x128xf32>
    %476 = math.exp %475 : vector<8x128xf32>
    %cst_106 = arith.constant 1.000000e+00 : f32
    %477 = vector.broadcast %cst_106 : f32 to vector<8x128xf32>
    %478 = arith.addf %477, %476 : vector<8x128xf32>
    %479 = arith.divf %477, %478 : vector<8x128xf32>
    %480 = vector.extract_strided_slice %467 {offsets = [0, 256], sizes = [8, 128], strides = [1, 1]} : vector<8x512xf32> to vector<8x128xf32>
    %481 = math.tanh %480 : vector<8x128xf32>
    %482 = vector.extract_strided_slice %467 {offsets = [0, 384], sizes = [8, 128], strides = [1, 1]} : vector<8x512xf32> to vector<8x128xf32>
    %483 = arith.negf %482 : vector<8x128xf32>
    %484 = math.exp %483 : vector<8x128xf32>
    %cst_107 = arith.constant 1.000000e+00 : f32
    %485 = vector.broadcast %cst_107 : f32 to vector<8x128xf32>
    %486 = arith.addf %485, %484 : vector<8x128xf32>
    %487 = arith.divf %485, %486 : vector<8x128xf32>
    %488 = arith.mulf %479, %421 : vector<8x128xf32>
    %489 = arith.mulf %473, %481 : vector<8x128xf32>
    %490 = arith.addf %488, %489 : vector<8x128xf32>
    %491 = math.tanh %490 : vector<8x128xf32>
    %492 = arith.mulf %487, %491 : vector<8x128xf32>
    %493 = arith.truncf %492 : vector<8x128xf32> to vector<8x128xbf16>
    %494 = arith.index_cast %c6_i32 : i32 to index
    %c0_108 = arith.constant 0 : index
    %c0_109 = arith.constant 0 : index
    %495 = vector.load %arg12[%494, %c0_108, %c0_109] : memref<8x8x128xbf16, #tpu.memory_space<vmem>>, vector<1x8x128xbf16>
    %496 = vector.shape_cast %495 : vector<1x8x128xbf16> to vector<8x128xbf16>
    %497 = vector.shape_cast %493 : vector<8x128xbf16> to vector<1x8x128xbf16>
    tpu.vector_store %arg12[%494, %c0_108, %c0_109], %497 {strides = array<i32>} : memref<8x8x128xbf16, #tpu.memory_space<vmem>>, vector<1x8x128xbf16>,
    %c7_i32 = arith.constant 7 : i32
    %498 = arith.index_cast %c7_i32 : i32 to index
    %c0_110 = arith.constant 0 : index
    %c0_111 = arith.constant 0 : index
    %499 = vector.load %arg2[%498, %c0_110, %c0_111] : memref<8x8x512xbf16, #tpu.memory_space<vmem>>, vector<1x8x512xbf16>
    %500 = vector.shape_cast %499 : vector<1x8x512xbf16> to vector<8x512xbf16>
    %501 = arith.extf %500 : vector<8x512xbf16> to vector<8x512xf32>
    %502 = arith.truncf %460 : vector<8x128xf32> to vector<8x128xbf16>
    %cst_112 = arith.constant dense<0.000000e+00> : vector<8x512xf32>
    %503 = tpu.matmul %502, %3, %cst_112 {dimension_numbers = #tpu.dot_dimension_numbers<[1], [0], [0], [1], [0, 0, 1, 1], [], []>} : vector<8x128xbf16>, vector<128x512xbf16>, vector<8x512xf32> -> vector<8x512xf32>
    %504 = arith.addf %501, %503 : vector<8x512xf32>
    %505 = vector.extract_strided_slice %504 {offsets = [0, 0], sizes = [8, 128], strides = [1, 1]} : vector<8x512xf32> to vector<8x128xf32>
    %506 = arith.negf %505 : vector<8x128xf32>
    %507 = math.exp %506 : vector<8x128xf32>
    %cst_113 = arith.constant 1.000000e+00 : f32
    %508 = vector.broadcast %cst_113 : f32 to vector<8x128xf32>
    %509 = arith.addf %508, %507 : vector<8x128xf32>
    %510 = arith.divf %508, %509 : vector<8x128xf32>
    %511 = vector.extract_strided_slice %504 {offsets = [0, 128], sizes = [8, 128], strides = [1, 1]} : vector<8x512xf32> to vector<8x128xf32>
    %512 = arith.negf %511 : vector<8x128xf32>
    %513 = math.exp %512 : vector<8x128xf32>
    %cst_114 = arith.constant 1.000000e+00 : f32
    %514 = vector.broadcast %cst_114 : f32 to vector<8x128xf32>
    %515 = arith.addf %514, %513 : vector<8x128xf32>
    %516 = arith.divf %514, %515 : vector<8x128xf32>
    %517 = vector.extract_strided_slice %504 {offsets = [0, 256], sizes = [8, 128], strides = [1, 1]} : vector<8x512xf32> to vector<8x128xf32>
    %518 = math.tanh %517 : vector<8x128xf32>
    %519 = vector.extract_strided_slice %504 {offsets = [0, 384], sizes = [8, 128], strides = [1, 1]} : vector<8x512xf32> to vector<8x128xf32>
    %520 = arith.negf %519 : vector<8x128xf32>
    %521 = math.exp %520 : vector<8x128xf32>
    %cst_115 = arith.constant 1.000000e+00 : f32
    %522 = vector.broadcast %cst_115 : f32 to vector<8x128xf32>
    %523 = arith.addf %522, %521 : vector<8x128xf32>
    %524 = arith.divf %522, %523 : vector<8x128xf32>
    %525 = arith.mulf %516, %458 : vector<8x128xf32>
    %526 = arith.mulf %510, %518 : vector<8x128xf32>
    %527 = arith.addf %525, %526 : vector<8x128xf32>
    %528 = math.tanh %527 : vector<8x128xf32>
    %529 = arith.mulf %524, %528 : vector<8x128xf32>
    %530 = arith.truncf %529 : vector<8x128xf32> to vector<8x128xbf16>
    %cst_116 = arith.constant dense<0.000000e+00> : vector<8x512xf32>
    %531 = tpu.matmul %530, %4, %cst_116 {dimension_numbers = #tpu.dot_dimension_numbers<[1], [0], [0], [1], [0, 0, 1, 1], [], []>} : vector<8x128xbf16>, vector<128x512xbf16>, vector<8x512xf32> -> vector<8x512xf32>
    %532 = arith.truncf %492 : vector<8x128xf32> to vector<8x128xbf16>
    %cst_117 = arith.constant dense<0.000000e+00> : vector<8x512xf32>
    %533 = tpu.matmul %532, %5, %cst_117 {dimension_numbers = #tpu.dot_dimension_numbers<[1], [0], [0], [1], [0, 0, 1, 1], [], []>} : vector<8x128xbf16>, vector<128x512xbf16>, vector<8x512xf32> -> vector<8x512xf32>
    %534 = arith.addf %531, %533 : vector<8x512xf32>
    %535 = vector.broadcast %6 : vector<1x512xf32> to vector<8x512xf32>
    %536 = arith.addf %534, %535 : vector<8x512xf32>
    %537 = vector.extract_strided_slice %536 {offsets = [0, 0], sizes = [8, 128], strides = [1, 1]} : vector<8x512xf32> to vector<8x128xf32>
    %538 = arith.negf %537 : vector<8x128xf32>
    %539 = math.exp %538 : vector<8x128xf32>
    %cst_118 = arith.constant 1.000000e+00 : f32
    %540 = vector.broadcast %cst_118 : f32 to vector<8x128xf32>
    %541 = arith.addf %540, %539 : vector<8x128xf32>
    %542 = arith.divf %540, %541 : vector<8x128xf32>
    %543 = vector.extract_strided_slice %536 {offsets = [0, 128], sizes = [8, 128], strides = [1, 1]} : vector<8x512xf32> to vector<8x128xf32>
    %544 = arith.negf %543 : vector<8x128xf32>
    %545 = math.exp %544 : vector<8x128xf32>
    %cst_119 = arith.constant 1.000000e+00 : f32
    %546 = vector.broadcast %cst_119 : f32 to vector<8x128xf32>
    %547 = arith.addf %546, %545 : vector<8x128xf32>
    %548 = arith.divf %546, %547 : vector<8x128xf32>
    %549 = vector.extract_strided_slice %536 {offsets = [0, 256], sizes = [8, 128], strides = [1, 1]} : vector<8x512xf32> to vector<8x128xf32>
    %550 = math.tanh %549 : vector<8x128xf32>
    %551 = vector.extract_strided_slice %536 {offsets = [0, 384], sizes = [8, 128], strides = [1, 1]} : vector<8x512xf32> to vector<8x128xf32>
    %552 = arith.negf %551 : vector<8x128xf32>
    %553 = math.exp %552 : vector<8x128xf32>
    %cst_120 = arith.constant 1.000000e+00 : f32
    %554 = vector.broadcast %cst_120 : f32 to vector<8x128xf32>
    %555 = arith.addf %554, %553 : vector<8x128xf32>
    %556 = arith.divf %554, %555 : vector<8x128xf32>
    %557 = arith.mulf %548, %490 : vector<8x128xf32>
    %558 = arith.mulf %542, %550 : vector<8x128xf32>
    %559 = arith.addf %557, %558 : vector<8x128xf32>
    %560 = math.tanh %559 : vector<8x128xf32>
    %561 = arith.mulf %556, %560 : vector<8x128xf32>
    %562 = arith.truncf %561 : vector<8x128xf32> to vector<8x128xbf16>
    %563 = arith.index_cast %c7_i32 : i32 to index
    %c0_121 = arith.constant 0 : index
    %c0_122 = arith.constant 0 : index
    %564 = vector.load %arg12[%563, %c0_121, %c0_122] : memref<8x8x128xbf16, #tpu.memory_space<vmem>>, vector<1x8x128xbf16>
    %565 = vector.shape_cast %564 : vector<1x8x128xbf16> to vector<8x128xbf16>
    %566 = vector.shape_cast %562 : vector<8x128xbf16> to vector<1x8x128xbf16>
    tpu.vector_store %arg12[%563, %c0_121, %c0_122], %566 {strides = array<i32>} : memref<8x8x128xbf16, #tpu.memory_space<vmem>>, vector<1x8x128xbf16>,
    %c8_i32 = arith.constant 8 : i32
    %c0_123 = arith.constant 0 : index
    %c0_124 = arith.constant 0 : index
    %c0_125 = arith.constant 0 : index
    %567 = vector.load %arg10[%c0_123, %c0_124, %c0_125] : memref<2x8x128xf32, #tpu.memory_space<vmem>>, vector<1x8x128xf32>
    %568 = vector.shape_cast %567 : vector<1x8x128xf32> to vector<8x128xf32>
    %569 = vector.shape_cast %529 : vector<8x128xf32> to vector<1x8x128xf32>
    tpu.vector_store %arg10[%c0_123, %c0_124, %c0_125], %569 {strides = array<i32>} : memref<2x8x128xf32, #tpu.memory_space<vmem>>, vector<1x8x128xf32>,
    %c0_126 = arith.constant 0 : index
    %c0_127 = arith.constant 0 : index
    %c0_128 = arith.constant 0 : index
    %570 = vector.load %arg11[%c0_126, %c0_127, %c0_128] : memref<2x8x128xf32, #tpu.memory_space<vmem>>, vector<1x8x128xf32>
    %571 = vector.shape_cast %570 : vector<1x8x128xf32> to vector<8x128xf32>
    %572 = vector.shape_cast %527 : vector<8x128xf32> to vector<1x8x128xf32>
    tpu.vector_store %arg11[%c0_126, %c0_127, %c0_128], %572 {strides = array<i32>} : memref<2x8x128xf32, #tpu.memory_space<vmem>>, vector<1x8x128xf32>,
    %c1_129 = arith.constant 1 : index
    %c0_130 = arith.constant 0 : index
    %c0_131 = arith.constant 0 : index
    %573 = vector.load %arg10[%c1_129, %c0_130, %c0_131] : memref<2x8x128xf32, #tpu.memory_space<vmem>>, vector<1x8x128xf32>
    %574 = vector.shape_cast %573 : vector<1x8x128xf32> to vector<8x128xf32>
    %575 = vector.shape_cast %561 : vector<8x128xf32> to vector<1x8x128xf32>
    tpu.vector_store %arg10[%c1_129, %c0_130, %c0_131], %575 {strides = array<i32>} : memref<2x8x128xf32, #tpu.memory_space<vmem>>, vector<1x8x128xf32>,
    %c1_132 = arith.constant 1 : index
    %c0_133 = arith.constant 0 : index
    %c0_134 = arith.constant 0 : index
    %576 = vector.load %arg11[%c1_132, %c0_133, %c0_134] : memref<2x8x128xf32, #tpu.memory_space<vmem>>, vector<1x8x128xf32>
    %577 = vector.shape_cast %576 : vector<1x8x128xf32> to vector<8x128xf32>
    %578 = vector.shape_cast %559 : vector<8x128xf32> to vector<1x8x128xf32>
    tpu.vector_store %arg11[%c1_132, %c0_133, %c0_134], %578 {strides = array<i32>} : memref<2x8x128xf32, #tpu.memory_space<vmem>>, vector<1x8x128xf32>,
    %c0_135 = arith.constant 0 : index
    %c0_136 = arith.constant 0 : index
    %c0_137 = arith.constant 0 : index
    %579 = vector.load %arg12[%c0_135, %c0_136, %c0_137] : memref<8x8x128xbf16, #tpu.memory_space<vmem>>, vector<8x8x128xbf16>
    %580 = vector.shape_cast %579 : vector<8x8x128xbf16> to vector<64x128xbf16>
    %c0_138 = arith.constant 0 : index
    %c0_139 = arith.constant 0 : index
    %581 = vector.load %arg7[%c0_138, %c0_139] : memref<128x128xbf16, #tpu.memory_space<vmem>>, vector<128x128xbf16>
    %cst_140 = arith.constant dense<0.000000e+00> : vector<64x128xf32>
    %582 = tpu.matmul %580, %581, %cst_140 {dimension_numbers = #tpu.dot_dimension_numbers<[1], [0], [0], [1], [0, 0, 1, 1], [], []>} : vector<64x128xbf16>, vector<128x128xbf16>, vector<64x128xf32> -> vector<64x128xf32>
    %c0_141 = arith.constant 0 : index
    %c0_142 = arith.constant 0 : index
    %583 = vector.load %arg8[%c0_141, %c0_142] : memref<1x128xf32, #tpu.memory_space<vmem>>, vector<1x128xf32>
    %584 = vector.broadcast %583 : vector<1x128xf32> to vector<64x128xf32>
    %585 = arith.addf %582, %584 : vector<64x128xf32>
    %586 = vector.shape_cast %585 : vector<64x128xf32> to vector<8x8x128xf32>
    %587 = arith.truncf %586 : vector<8x8x128xf32> to vector<8x8x128xbf16>
    %c0_143 = arith.constant 0 : index
    %c0_144 = arith.constant 0 : index
    %c0_145 = arith.constant 0 : index
    %588 = vector.load %arg9[%c0_143, %c0_144, %c0_145] : memref<8x8x128xbf16, #tpu.memory_space<vmem>>, vector<8x8x128xbf16>
    tpu.vector_store %arg9[%c0_143, %c0_144, %c0_145], %587 {strides = array<i32>} : memref<8x8x128xbf16, #tpu.memory_space<vmem>>, vector<8x8x128xbf16>,
    return
  }
  func.func @transform_0(%arg0: i32, %arg1: i32) -> (i32, i32, i32) {
    %c0_i32 = arith.constant 0 : i32
    %c0_i32_0 = arith.constant 0 : i32
    return %arg1, %arg0, %c0_i32 : i32, i32, i32
  }
  func.func @transform_1(%arg0: i32, %arg1: i32) -> (i32, i32) {
    %c0_i32 = arith.constant 0 : i32
    %c0_i32_0 = arith.constant 0 : i32
    %c0_i32_1 = arith.constant 0 : i32
    return %c0_i32, %c0_i32_0 : i32, i32
  }
  func.func @transform_2(%arg0: i32, %arg1: i32) -> (i32, i32) {
    %c0_i32 = arith.constant 0 : i32
    %c0_i32_0 = arith.constant 0 : i32
    %c0_i32_1 = arith.constant 0 : i32
    return %c0_i32, %c0_i32_0 : i32, i32
  }
  func.func @transform_3(%arg0: i32, %arg1: i32) -> (i32, i32) {
    %c0_i32 = arith.constant 0 : i32
    %c0_i32_0 = arith.constant 0 : i32
    %c0_i32_1 = arith.constant 0 : i32
    return %c0_i32, %c0_i32_0 : i32, i32
  }
  func.func @transform_4(%arg0: i32, %arg1: i32) -> (i32, i32) {
    %c0_i32 = arith.constant 0 : i32
    %c0_i32_0 = arith.constant 0 : i32
    %c0_i32_1 = arith.constant 0 : i32
    return %c0_i32, %c0_i32_0 : i32, i32
  }
  func.func @transform_5(%arg0: i32, %arg1: i32) -> (i32, i32) {
    %c0_i32 = arith.constant 0 : i32
    %c0_i32_0 = arith.constant 0 : i32
    %c0_i32_1 = arith.constant 0 : i32
    return %c0_i32, %c0_i32_0 : i32, i32
  }
  func.func @transform_6(%arg0: i32, %arg1: i32) -> (i32, i32) {
    %c0_i32 = arith.constant 0 : i32
    %c0_i32_0 = arith.constant 0 : i32
    %c0_i32_1 = arith.constant 0 : i32
    return %c0_i32, %c0_i32_0 : i32, i32
  }
  func.func @transform_7(%arg0: i32, %arg1: i32) -> (i32, i32, i32) {
    %c0_i32 = arith.constant 0 : i32
    %c0_i32_0 = arith.constant 0 : i32
    return %arg1, %arg0, %c0_i32 : i32, i32, i32
  }
  func.func @transform_8(%arg0: i32, %arg1: i32) -> (i32, i32, i32) {
    %c0_i32 = arith.constant 0 : i32
    %c0_i32_0 = arith.constant 0 : i32
    %c0_i32_1 = arith.constant 0 : i32
    return %c0_i32, %arg0, %c0_i32_0 : i32, i32, i32
  }
  func.func @transform_9(%arg0: i32, %arg1: i32) -> (i32, i32, i32) {
    %c0_i32 = arith.constant 0 : i32
    %c0_i32_0 = arith.constant 0 : i32
    %c0_i32_1 = arith.constant 0 : i32
    return %c0_i32, %arg0, %c0_i32_0 : i32, i32, i32
  }
}

</mosaic_0001>

<bundles_post_ra>
// kernel: tpu_custom_call.1
= control target key start
LH: loop header
LB: loop body
LE: loop exit
PB: predicated region body
PF: predicated region fallthrough
CT: control target
= control target key end

     0   :  { %6 = vsyncpa [#allocation3], 0  ;;  %s341_s0 = inlined_call_operand.hbm [shape: f32[8,128], index: 0, kind: input, shape index: {}]   ;;  %s342_s1 = inlined_call_operand.hbm [shape: f32[8,128], index: 1, kind: output, shape index: {}]  }
   0x1   :  { %7 = vsyncpa [#allocation4], 0  ;;  %s262_s6 = smov 0  }
   0x2 LB: > { %s145_s7 = sadd.s32 4294967295, %s248_s6   ;;  %p146_p0 = scmp.ge.s32.totalorder %s248_s6, 1  ;;  %s248_s6 = sphi %s262_s6, %s13_s6  }
   0x3   : > { %p60_p1 = scmp.lt.s32.totalorder %s248_s6, 3  ;;  %p276_p3 = scmp.eq.s32.totalorder %s145_s7, 0 }
   0x4   : > { %s250_s10 = smov [#allocation2]   ;;  %s180_s15 = scalar_lea.hbm %s341_s0, 128 }
   0x5   : > { %p270_p2 = pnand %p146_p0, %p60_p1  ;;  %s73_s11 = sshll.u32 %s250_s10, 4  ;;  %s74_s11 = int_to_ptr.vmem [resolvable:$true] %s73_s11 }
   0x6   : > { %s347_s9 = scalar_select %p276_p3, 1, 0 }
   0x7   : > { %s346_s8 = scalar_select %p270_p2, 1, 0 }
   0x8   : > { %p162_p4 = pneg %p270_p2  ;;  %p181_p6 = scmp.ne.s32.totalorder %s341_s0, %s180_s15 }
   0x9   : > { %p187_p10 = scmp.lt.u32.totalorder %s180_s15, %s341_s0 }
   0xa   : > { %p284_p5 = pnand %p276_p3, %p162_p4 }
   0xc   : > { %p182_p7 = pneg %p284_p5 }
   0xe   : > { %p183_p8 = pnand %p182_p7, %p181_p6 }
  0x10   : > { %p184_p9 = pneg %p183_p8 }
  0x12   : > { %p189_p11 = pnand %p187_p10, %p184_p9 }
  0x14   : > { %192 = shalt.err (!%p189_p11)
}
  0x15   : > { %s193_s20 = scalar_lea.vmem %s74_s11, 128  ;;  %p201_p1 = scmp.lt.s32.totalorder %s74_s11, %s74_s11 }
  0x16   : > { %p194_p12 = scmp.ne.s32.totalorder %s74_s11, %s193_s20  ;;  %p202_p4 = scmp.lt.s32.totalorder %s193_s20, %s193_s20 }
  0x18   : > { %p196_p13 = pnand %p194_p12, %p182_p7  ;;  %p203_p3 = por %p202_p4, %p201_p1 }
  0x1a   : > { %p197_p0 = pneg %p196_p13 }
  0x1c   : > { %p204_p2 = pnand %p203_p3, %p197_p0 }
  0x1e   : > { %207 = shalt.err (!%p204_p2)
}
  0x1f   : > { %165 = dma.hbm_to_vmem [thread:$0]  (!%p284_p5), %s341_s0, 128, %s74_s11, [#allocation3]  }
  0x20   : > { %p349_p6 = scmp.ne.s32.totalorder %s346_s8, 0 }
  0x21   : > { %p350_p8 = scmp.ne.s32.totalorder (!%p349_p6), %s347_s9, 0 }
  0x22   : > { %86 = sbr.rel (%p349_p6) target bundleno = 67 (0x43), region = 24 }
  0x29   : > { %239 = dma.done.wait (%p350_p8), [#allocation3], 128  }
  0x2a   : > { %241 = vsyncadd (%p350_p8), [#allocation3], 4294967168  ;;  %s251_s23 = smov [#allocation5]   ;;  %v96_v0 = vld [vmem:[#allocation2] sm:$0xff]  ;;  %p312_p2 = scmp.eq.s32.totalorder %s145_s7, 1 }
  0x2b   : > { %s106_s24 = sshll.u32 %s251_s23, 4  ;;  %v97_v1 = vadd.f32 1.0, %v96_v0  ;;  %s107_s24 = int_to_ptr.vmem [resolvable:$true] %s106_s24 }
  0x2c   : > { %s208_s26 = scalar_lea.vmem %s107_s24, 128  ;;  %p215_p9 = scmp.lt.s32.totalorder %s107_s24, %s107_s24 }
  0x2d   : > { %98 = vst [vmem:[#allocation5] sm:$0xff] %v97_v1  ;;  %p209_p3 = scmp.ne.s32.totalorder %s107_s24, %s208_s26  ;;  %p216_p10 = scmp.lt.s32.totalorder %s208_s26, %s208_s26 }
  0x2f   : > { %p210_p5 = pnand %p209_p3, %p312_p2  ;;  %p217_p11 = por %p216_p10, %p215_p9 }
  0x31   : > { %p211_p7 = pneg %p210_p5 }
  0x33   : > { %p218_p12 = pnand %p217_p11, %p211_p7 }
  0x35   : > { %221 = shalt.err (!%p218_p12)
}
  0x36   : > { %s222_s29 = scalar_lea.hbm %s342_s1, 128 }
  0x37   : > { %p223_p13 = scmp.ne.s32.totalorder %s342_s1, %s222_s29  ;;  %p228_p4 = scmp.lt.u32.totalorder %s222_s29, %s342_s1 }
  0x39   : > { %p224_p0 = pnand %p223_p13, %p312_p2 }
  0x3b   : > { %p225_p1 = pneg %p224_p0 }
  0x3d   : > { %p230_p6 = pnand %p228_p4, %p225_p1 }
  0x3f   : > { %233 = shalt.err (!%p230_p6)
}
  0x40   : > { %159 = dma.vmem_to_hbm [thread:$0]  (%p312_p2), %s107_s24, 128, %s342_s1, [#allocation4]  }
  0x41   : > { %243 = dma.done.wait (%p312_p2), [#allocation4], 128  }
  0x42   : > { %245 = vsyncadd (%p312_p2), [#allocation4], 4294967168 }
  0x43 PF: > { %s13_s6 = sadd.s32 1, %s248_s6  }
  0x44   : > { %p10_p8 = scmp.ge.s32.totalorder %s13_s6, 4  }
  0x46   :  { %12 = sbr.rel (!%p10_p8) target bundleno = 2 (0x2), region = 53 }
  0x4d   :  { %119 = vsyncpa [#allocation3], 1 }
  0x4e   :  { %121 = vsyncpa [#allocation3 + $0x1], 1 }
  0x4f   :  { %122 = vsyncpa [#allocation4], 1 }
  0x50   :  { %124 = vsyncpa [#allocation4 + $0x1], 1 }

// kernel: lstm_model_forward.1
= control target key start
LH: loop header
LB: loop body
LE: loop exit
PB: predicated region body
PF: predicated region fallthrough
CT: control target
= control target key end

     0   :  { %v6706_v1 = vmov 0   ;;  %v6708_v20 = vmov 0.0|0.0   ;;  %s6696_s1 = inlined_call_operand.vmem [shape: bf16[128,512], index: 1, kind: input, shape index: {}]   ;;  %s6697_s3 = inlined_call_operand.vmem [shape: bf16[128,512], index: 3, kind: input, shape index: {}]   ;;  %s6698_s2 = inlined_call_operand.vmem [shape: bf16[128,512], index: 2, kind: input, shape index: {}]   ;;  %s6699_s0 = inlined_call_operand.vmem [shape: bf16[8,8,512], index: 0, kind: input, shape index: {}]   ;;  %s6700_s4 = inlined_call_operand.vmem [shape: f32[1,512], index: 4, kind: input, shape index: {}]   ;;  %s6701_s5 = inlined_call_operand.vmem [shape: bf16[128,128], index: 5, kind: input, shape index: {}]   ;;  %s6702_s9 = inlined_call_operand.vmem [shape: f32[2,8,128], index: 9, kind: output, shape index: {2}]   ;;  %s6703_s8 = inlined_call_operand.vmem [shape: f32[2,8,128], index: 8, kind: output, shape index: {1}]   ;;  %s6704_s6 = inlined_call_operand.vmem [shape: f32[1,128], index: 6, kind: input, shape index: {}]   ;;  %s6705_s7 = inlined_call_operand.vmem [shape: bf16[8,8,128], index: 7, kind: output, shape index: {0}]  }
   0x1   :  { %v4241_v0 = vld [vmem:[%s6696_s1 + $0x4] ss:$16 sps:$4 sm:$0xff]   ;;  %340 = vmatprep.mubr.bf16.mxu1 %v6706_v1  ;;  %612 = vmatprep.mubr.bf16.mxu0 %v6706_v1  ;;  %v4248_v2 = vld [vmem:[%s6696_s1] ss:$16 sps:$4 sm:$0xff]   ;;  %v4338_v17 = vld [vmem:[%s6696_s1 + $0xc] ss:$16 sps:$4 sm:$0xff]  }
   0x2   :  { %308 = vmatprep.subr.bf16.mxu1 %v4241_v0  ;;  %v4254_v3 = vld [vmem:[%s6696_s1 + $0x24] ss:$16 sps:$4 sm:$0xff]   ;;  %v4260_v4 = vld [vmem:[%s6696_s1 + $0x20] ss:$16 sps:$4 sm:$0xff]   ;;  %6960 = vst [vmem:[#allocation3_spill] sm:$0xff] %v4338_v17 }
   0x3   :  { %309 = vmatpush1.bf16.msra.mxu1 %v4248_v2  ;;  %v4266_v5 = vld [vmem:[%s6696_s1 + $0x44] ss:$16 sps:$4 sm:$0xff]   ;;  %v4272_v6 = vld [vmem:[%s6696_s1 + $0x40] ss:$16 sps:$4 sm:$0xff]   ;;  %v4344_v18 = vld [vmem:[%s6696_s1 + $0x8] ss:$16 sps:$4 sm:$0xff]  }
   0x4   :  { %310 = vmatprep.subr.bf16.mxu1 %v4254_v3  ;;  %v4278_v7 = vld [vmem:[%s6696_s1 + $0x64] ss:$16 sps:$4 sm:$0xff]   ;;  %v4284_v8 = vld [vmem:[%s6696_s1 + $0x60] ss:$16 sps:$4 sm:$0xff]   ;;  %v4350_v19 = vld [vmem:[%s6696_s1 + $0x2c] ss:$16 sps:$4 sm:$0xff]  }
   0x5   :  { %v4290_v9 = vld [vmem:[%s6696_s1 + $0x84] ss:$16 sps:$4 sm:$0xff]   ;;  %v4296_v10 = vld [vmem:[%s6696_s1 + $0x80] ss:$16 sps:$4 sm:$0xff]   ;;  %v4357_v21 = vld [vmem:[%s6696_s1 + $0x28] ss:$16 sps:$4 sm:$0xff]  }
   0x6   :  { %v4302_v11 = vld [vmem:[%s6696_s1 + $0xa4] ss:$16 sps:$4 sm:$0xff]   ;;  %v4308_v12 = vld [vmem:[%s6696_s1 + $0xa0] ss:$16 sps:$4 sm:$0xff]   ;;  %v4364_v22 = vld [vmem:[%s6696_s1 + $0x4c] ss:$16 sps:$4 sm:$0xff]  }
   0x7   :  { %311 = vmatpush1.bf16.msra.mxu1 %v4260_v4  ;;  %v4314_v13 = vld [vmem:[%s6696_s1 + $0xc4] ss:$16 sps:$4 sm:$0xff]   ;;  %v4320_v14 = vld [vmem:[%s6696_s1 + $0xc0] ss:$16 sps:$4 sm:$0xff]   ;;  %v4370_v23 = vld [vmem:[%s6696_s1 + $0x48] ss:$16 sps:$4 sm:$0xff]  }
   0x8   :  { %312 = vmatprep.subr.bf16.mxu1 %v4266_v5  ;;  %v4326_v15 = vld [vmem:[%s6696_s1 + $0xe4] ss:$16 sps:$4 sm:$0xff]   ;;  %v4332_v16 = vld [vmem:[%s6696_s1 + $0xe0] ss:$16 sps:$4 sm:$0xff]   ;;  %v4376_v24 = vld [vmem:[%s6696_s1 + $0x6c] ss:$16 sps:$4 sm:$0xff]  }
   0x9   :  { %v4382_v25 = vld [vmem:[%s6696_s1 + $0x68] ss:$16 sps:$4 sm:$0xff]   ;;  %v4388_v26 = vld [vmem:[%s6696_s1 + $0x8c] ss:$16 sps:$4 sm:$0xff]   ;;  %v4439_v34 = vld [vmem:[%s6697_s3 + $0x4] ss:$16 sps:$4 sm:$0xff]  }
   0xa   :  { %v4394_v27 = vld [vmem:[%s6696_s1 + $0x88] ss:$16 sps:$4 sm:$0xff]   ;;  %v4400_v28 = vld [vmem:[%s6696_s1 + $0xac] ss:$16 sps:$4 sm:$0xff]   ;;  %v4444_v35 = vld [vmem:[%s6697_s3] ss:$16 sps:$4 sm:$0xff]   ;;  %580 = vmatprep.subr.bf16.mxu0 %v4439_v34 }
   0xb   :  { %313 = vmatpush1.bf16.msra.mxu1 %v4272_v6  ;;  %v4406_v29 = vld [vmem:[%s6696_s1 + $0xa8] ss:$16 sps:$4 sm:$0xff]   ;;  %v4412_v30 = vld [vmem:[%s6696_s1 + $0xcc] ss:$16 sps:$4 sm:$0xff]   ;;  %581 = vmatpush1.bf16.msra.mxu0 %v4444_v35  ;;  %v4462_v38 = vld [vmem:[%s6697_s3 + $0x24] ss:$16 sps:$4 sm:$0xff]  }
   0xc   :  { %314 = vmatprep.subr.bf16.mxu1 %v4278_v7  ;;  %v4418_v31 = vld [vmem:[%s6696_s1 + $0xc8] ss:$16 sps:$4 sm:$0xff]   ;;  %v4424_v32 = vld [vmem:[%s6696_s1 + $0xec] ss:$16 sps:$4 sm:$0xff]   ;;  %v4468_v39 = vld [vmem:[%s6697_s3 + $0x20] ss:$16 sps:$4 sm:$0xff]   ;;  %582 = vmatprep.subr.bf16.mxu0 %v4462_v38 }
   0xd   :  { %v4430_v33 = vld [vmem:[%s6696_s1 + $0xe8] ss:$16 sps:$4 sm:$0xff]   ;;  %v4450_v36 = vld [vmem:[%s6697_s3 + $0xc] ss:$16 sps:$4 sm:$0xff]   ;;  %v4486_v42 = vld [vmem:[%s6697_s3 + $0x44] ss:$16 sps:$4 sm:$0xff]  }
   0xe   :  { %v4455_v37 = vld [vmem:[%s6697_s3 + $0x8] ss:$16 sps:$4 sm:$0xff]   ;;  %v4473_v40 = vld [vmem:[%s6697_s3 + $0x2c] ss:$16 sps:$4 sm:$0xff]   ;;  %v4492_v43 = vld [vmem:[%s6697_s3 + $0x40] ss:$16 sps:$4 sm:$0xff]  }
   0xf   :  { %315 = vmatpush1.bf16.msra.mxu1 %v4284_v8  ;;  %v4479_v41 = vld [vmem:[%s6697_s3 + $0x28] ss:$16 sps:$4 sm:$0xff]   ;;  %583 = vmatpush1.bf16.msra.mxu0 %v4468_v39  ;;  %v4497_v44 = vld [vmem:[%s6697_s3 + $0x4c] ss:$16 sps:$4 sm:$0xff]   ;;  %v4510_v46 = vld [vmem:[%s6697_s3 + $0x64] ss:$16 sps:$4 sm:$0xff]  }
  0x10   :  { %316 = vmatprep.subr.bf16.mxu1 %v4290_v9  ;;  %584 = vmatprep.subr.bf16.mxu0 %v4486_v42  ;;  %v4503_v45 = vld [vmem:[%s6697_s3 + $0x48] ss:$16 sps:$4 sm:$0xff]   ;;  %v4516_v47 = vld [vmem:[%s6697_s3 + $0x60] ss:$16 sps:$4 sm:$0xff]   ;;  %v4521_v48 = vld [vmem:[%s6697_s3 + $0x6c] ss:$16 sps:$4 sm:$0xff]  }
  0x11   :  { %6961 = vst [vmem:[#allocation4_spill] sm:$0xff] %v4516_v47  ;;  %6962 = vst [vmem:[#allocation5_spill] sm:$0xff] %v4521_v48  ;;  %v4527_v49 = vld [vmem:[%s6697_s3 + $0x68] ss:$16 sps:$4 sm:$0xff]   ;;  %v4534_v50 = vld [vmem:[%s6697_s3 + $0x84] ss:$16 sps:$4 sm:$0xff]  }
  0x12   :  { %6963 = vst [vmem:[#allocation6_spill] sm:$0xff] %v4527_v49  ;;  %6964 = vst [vmem:[#allocation7_spill] sm:$0xff] %v4534_v50  ;;  %v4540_v51 = vld [vmem:[%s6697_s3 + $0x80] ss:$16 sps:$4 sm:$0xff]   ;;  %v4545_v52 = vld [vmem:[%s6697_s3 + $0x8c] ss:$16 sps:$4 sm:$0xff]  }
  0x13   :  { %317 = vmatpush1.bf16.msra.mxu1 %v4296_v10  ;;  %585 = vmatpush1.bf16.msra.mxu0 %v4492_v43  ;;  %6965 = vst [vmem:[#allocation8_spill] sm:$0xff] %v4540_v51  ;;  %6966 = vst [vmem:[#allocation9_spill] sm:$0xff] %v4545_v52  ;;  %v4551_v53 = vld [vmem:[%s6697_s3 + $0x88] ss:$16 sps:$4 sm:$0xff]   ;;  %v4558_v54 = vld [vmem:[%s6697_s3 + $0xa4] ss:$16 sps:$4 sm:$0xff]  }
  0x14   :  { %318 = vmatprep.subr.bf16.mxu1 %v4302_v11  ;;  %586 = vmatprep.subr.bf16.mxu0 %v4510_v46  ;;  %6967 = vst [vmem:[#allocation10_spill] sm:$0xff] %v4551_v53  ;;  %6968 = vst [vmem:[#allocation11_spill] sm:$0xff] %v4558_v54  ;;  %v4564_v55 = vld [vmem:[%s6697_s3 + $0xa0] ss:$16 sps:$4 sm:$0xff]   ;;  %v4569_v56 = vld [vmem:[%s6697_s3 + $0xac] ss:$16 sps:$4 sm:$0xff]  }
  0x15   :  { %6969 = vst [vmem:[#allocation12_spill] sm:$0xff] %v4564_v55  ;;  %6970 = vst [vmem:[#allocation13_spill] sm:$0xff] %v4569_v56  ;;  %v4575_v57 = vld [vmem:[%s6697_s3 + $0xa8] ss:$16 sps:$4 sm:$0xff]   ;;  %v4582_v58 = vld [vmem:[%s6697_s3 + $0xc4] ss:$16 sps:$4 sm:$0xff]  }
  0x16   :  { %6971 = vst [vmem:[#allocation14_spill] sm:$0xff] %v4575_v57  ;;  %6972 = vst [vmem:[#allocation15_spill] sm:$0xff] %v4582_v58  ;;  %v4588_v59 = vld [vmem:[%s6697_s3 + $0xc0] ss:$16 sps:$4 sm:$0xff]   ;;  %v4593_v60 = vld [vmem:[%s6697_s3 + $0xcc] ss:$16 sps:$4 sm:$0xff]  }
  0x17   :  { %319 = vmatpush1.bf16.msra.mxu1 %v4308_v12  ;;  %587 = vmatpush1.bf16.msra.mxu0 %v4516_v47  ;;  %6973 = vst [vmem:[#allocation16_spill] sm:$0xff] %v4588_v59  ;;  %6974 = vst [vmem:[#allocation17_spill] sm:$0xff] %v4593_v60  ;;  %v4599_v61 = vld [vmem:[%s6697_s3 + $0xc8] ss:$16 sps:$4 sm:$0xff]   ;;  %v4606_v62 = vld [vmem:[%s6697_s3 + $0xe4] ss:$16 sps:$4 sm:$0xff]  }
  0x18   :  { %320 = vmatprep.subr.bf16.mxu1 %v4314_v13  ;;  %588 = vmatprep.subr.bf16.mxu0 %v4534_v50  ;;  %6975 = vst [vmem:[#allocation18_spill] sm:$0xff] %v4599_v61  ;;  %6976 = vst [vmem:[#allocation19_spill] sm:$0xff] %v4606_v62  ;;  %v4612_v63 = vld [vmem:[%s6697_s3 + $0xe0] ss:$16 sps:$4 sm:$0xff]  }
  0x19   :  { %6977 = vst [vmem:[#allocation20_spill] sm:$0xff] %v4612_v63 }
  0x1b   :  { %321 = vmatpush1.bf16.msra.mxu1 %v4320_v14  ;;  %589 = vmatpush1.bf16.msra.mxu0 %v4540_v51 }
  0x1c   :  { %322 = vmatprep.subr.bf16.mxu1 %v4326_v15  ;;  %590 = vmatprep.subr.bf16.mxu0 %v4558_v54 }
  0x1f   :  { %323 = vmatpush1.bf16.msra.mxu1 %v4332_v16  ;;  %591 = vmatpush1.bf16.msra.mxu0 %v4564_v55 }
  0x20   :  { %349 = vmatprep.subr.bf16.mxu1 %v4338_v17  ;;  %592 = vmatprep.subr.bf16.mxu0 %v4582_v58  ;;  %v4789_v58 = vld [vmem:[%s6698_s2 + $0xc0] ss:$16 sps:$4 sm:$0xff]  }
  0x21   :  { %7008 = vst [vmem:[#allocation49_spill] sm:$0xff] %v4789_v58 }
  0x22   :  { %341 = vmatmul.mubr.bf16.vlgmr.msra.gmra.mrb[0].mxu1 %v6708_v20 }
  0x23   :  { %350 = vmatpush1.bf16.msra.mxu1 %v4344_v18  ;;  %381 = vmatprep.mubr.bf16.mxu1 %v6706_v1 }
  0x24   :  { %351 = vmatprep.subr.bf16.mxu1 %v4350_v19  ;;  %593 = vmatpush1.bf16.msra.mxu0 %v4588_v59  ;;  %v6981_v59 = vmov 0.0|0.0  }
  0x25   :  { %594 = vmatprep.subr.bf16.mxu0 %v4606_v62  ;;  %v4637_v62 = vld [vmem:[%s6698_s2 + $0xc] ss:$16 sps:$4 sm:$0xff]  }
  0x26   :  { %6982 = vst [vmem:[#allocation24_spill] sm:$0xff] %v4637_v62 }
  0x27   :  { %352 = vmatpush1.bf16.msra.mxu1 %v4357_v21 }
  0x28   :  { %353 = vmatprep.subr.bf16.mxu1 %v4364_v22  ;;  %595 = vmatpush1.bf16.msra.mxu0 %v4612_v63  ;;  %v4643_v63 = vld [vmem:[%s6698_s2] ss:$16 sps:$4 sm:$0xff]  }
  0x29   :  { %6983 = vst [vmem:[#allocation25_spill] sm:$0xff] %v4643_v63 }
  0x2b   :  { %354 = vmatpush1.bf16.msra.mxu1 %v4370_v23  ;;  %613 = vmatmul.mubr.bf16.vlgmr.msra.gmra.mrb[0].mxu0 %v6981_v59 }
  0x2c   :  { %355 = vmatprep.subr.bf16.mxu1 %v4376_v24 }
  0x2f   :  { %356 = vmatpush1.bf16.msra.mxu1 %v4382_v25 }
  0x30   :  { %357 = vmatprep.subr.bf16.mxu1 %v4388_v26 }
  0x33   :  { %358 = vmatpush1.bf16.msra.mxu1 %v4394_v27 }
  0x34   :  { %359 = vmatprep.subr.bf16.mxu1 %v4400_v28 }
  0x37   :  { %360 = vmatpush1.bf16.msra.mxu1 %v4406_v29 }
  0x38   :  { %361 = vmatprep.subr.bf16.mxu1 %v4412_v30 }
  0x3b   :  { %362 = vmatpush1.bf16.msra.mxu1 %v4418_v31 }
  0x3c   :  { %363 = vmatprep.subr.bf16.mxu1 %v4424_v32 }
  0x3f   :  { %364 = vmatpush1.bf16.msra.mxu1 %v4430_v33 }
  0x40   :  { %621 = vmatprep.subr.bf16.mxu1 %v4450_v36 }
  0x42   :  { %382 = vmatmul.mubr.bf16.vlgmr.msra.gmra.mrb[4].mxu1 %v6708_v20  ;;  %v4623_v20 = vld [vmem:[%s6697_s3 + $0xe8] ss:$16 sps:$4 sm:$0xff]  }
  0x43   :  { %653 = vmatprep.mubr.bf16.mxu1 %v6706_v1  ;;  %622 = vmatpush1.bf16.msra.mxu1 %v4455_v37  ;;  %v4617_v1 = vld [vmem:[%s6697_s3 + $0xec] ss:$16 sps:$4 sm:$0xff]   ;;  %6979 = vst [vmem:[#allocation22_spill] sm:$0xff] %v4623_v20 }
  0x44   :  { %623 = vmatprep.subr.bf16.mxu1 %v4473_v40  ;;  %6978 = vst [vmem:[#allocation21_spill] sm:$0xff] %v4617_v1 }
  0x47   :  { %624 = vmatpush1.bf16.msra.mxu1 %v4479_v41 }
  0x48   :  { %625 = vmatprep.subr.bf16.mxu1 %v4497_v44 }
  0x4b   :  { %626 = vmatpush1.bf16.msra.mxu1 %v4503_v45 }
  0x4c   :  { %627 = vmatprep.subr.bf16.mxu1 %v4521_v48 }
  0x4f   :  { %628 = vmatpush1.bf16.msra.mxu1 %v4527_v49 }
  0x50   :  { %629 = vmatprep.subr.bf16.mxu1 %v4545_v52 }
  0x53   :  { %630 = vmatpush1.bf16.msra.mxu1 %v4551_v53 }
  0x54   :  { %631 = vmatprep.subr.bf16.mxu1 %v4569_v56 }
  0x57   :  { %632 = vmatpush1.bf16.msra.mxu1 %v4575_v57  ;;  %v4794_v57 = vld [vmem:[%s6698_s2 + $0xc8] ss:$16 sps:$4 sm:$0xff]  }
  0x58   :  { %633 = vmatprep.subr.bf16.mxu1 %v4593_v60  ;;  %v4663_v60 = vld [vmem:[%s6698_s2 + $0x2c] ss:$16 sps:$4 sm:$0xff]   ;;  %7009 = vst [vmem:[#allocation50_spill] sm:$0xff] %v4794_v57 }
  0x59   :  { %6987 = vst [vmem:[#allocation28_spill] sm:$0xff] %v4663_v60 }
  0x5b   :  { %634 = vmatpush1.bf16.msra.mxu1 %v4599_v61  ;;  %v4631_v61 = vld [vmem:[%s6698_s2 + $0x4] ss:$16 sps:$4 sm:$0xff]  }
  0x5c   :  { %635 = vmatprep.subr.bf16.mxu1 %v4617_v1  ;;  %6980 = vst [vmem:[#allocation23_spill] sm:$0xff] %v4631_v61  ;;  %822 = vmatprep.subr.bf16.mxu0 %v4631_v61  ;;  %v6985_v1 = vmov 0   ;;  %v4658_v61 = vld [vmem:[%s6698_s2 + $0x24] ss:$16 sps:$4 sm:$0xff]  }
  0x5d   :  { %854 = vmatprep.mubr.bf16.mxu0 %v6985_v1  ;;  %823 = vmatpush1.bf16.msra.mxu0 %v4643_v63  ;;  %6986 = vst [vmem:[#allocation27_spill] sm:$0xff] %v4658_v61  ;;  %v4688_v63 = vld [vmem:[%s6698_s2 + $0x4c] ss:$16 sps:$4 sm:$0xff]  }
  0x5e   :  { %824 = vmatprep.subr.bf16.mxu0 %v4658_v61  ;;  %6991 = vst [vmem:[#allocation32_spill] sm:$0xff] %v4688_v63  ;;  %v4693_v61 = vld [vmem:[%s6698_s2 + $0x40] ss:$16 sps:$4 sm:$0xff]  }
  0x5f   :  { %636 = vmatpush1.bf16.msra.mxu1 %v4623_v20  ;;  %v4648_v20 = vld [vmem:[%s6698_s2 + $0x8] ss:$16 sps:$4 sm:$0xff]   ;;  %6992 = vst [vmem:[#allocation33_spill] sm:$0xff] %v4693_v61 }
  0x60   :  { %6984 = vst [vmem:[#allocation26_spill] sm:$0xff] %v4648_v20  ;;  %863 = vmatprep.subr.bf16.mxu1 %v4637_v62  ;;  %v4668_v62 = vld [vmem:[%s6698_s2 + $0x20] ss:$16 sps:$4 sm:$0xff]  }
  0x61   :  { %6988 = vst [vmem:[#allocation29_spill] sm:$0xff] %v4668_v62  ;;  %825 = vmatpush1.bf16.msra.mxu0 %v4668_v62  ;;  %v4698_v62 = vld [vmem:[%s6698_s2 + $0x48] ss:$16 sps:$4 sm:$0xff]  }
  0x62   :  { %654 = vmatmul.mubr.bf16.vlgmr.msra.gmra.mrb[8].mxu1 %v6981_v59  ;;  %v4673_v59 = vld [vmem:[%s6698_s2 + $0x28] ss:$16 sps:$4 sm:$0xff]   ;;  %6993 = vst [vmem:[#allocation34_spill] sm:$0xff] %v4698_v62 }
  0x63   :  { %864 = vmatpush1.bf16.msra.mxu1 %v4648_v20  ;;  %6989 = vst [vmem:[#allocation30_spill] sm:$0xff] %v4673_v59  ;;  %895 = vmatprep.mubr.bf16.mxu1 %v6985_v1  ;;  %v4683_v20 = vld [vmem:[%s6698_s2 + $0x44] ss:$16 sps:$4 sm:$0xff]  }
  0x64   :  { %865 = vmatprep.subr.bf16.mxu1 %v4663_v60  ;;  %6990 = vst [vmem:[#allocation31_spill] sm:$0xff] %v4683_v20  ;;  %826 = vmatprep.subr.bf16.mxu0 %v4683_v20  ;;  %v4712_v60 = vld [vmem:[%s6698_s2 + $0x6c] ss:$16 sps:$4 sm:$0xff]   ;;  %v4717_v20 = vld [vmem:[%s6698_s2 + $0x60] ss:$16 sps:$4 sm:$0xff]  }
  0x65   :  { %827 = vmatpush1.bf16.msra.mxu0 %v4693_v61  ;;  %6995 = vst [vmem:[#allocation36_spill] sm:$0xff] %v4712_v60  ;;  %6996 = vst [vmem:[#allocation37_spill] sm:$0xff] %v4717_v20  ;;  %v4722_v61 = vld [vmem:[%s6698_s2 + $0x68] ss:$16 sps:$4 sm:$0xff]  }
  0x66   :  { %6997 = vst [vmem:[#allocation38_spill] sm:$0xff] %v4722_v61 }
  0x67   :  { %866 = vmatpush1.bf16.msra.mxu1 %v4673_v59  ;;  %v4707_v59 = vld [vmem:[%s6698_s2 + $0x64] ss:$16 sps:$4 sm:$0xff]  }
  0x68   :  { %867 = vmatprep.subr.bf16.mxu1 %v4688_v63  ;;  %6994 = vst [vmem:[#allocation35_spill] sm:$0xff] %v4707_v59  ;;  %828 = vmatprep.subr.bf16.mxu0 %v4707_v59  ;;  %v4736_v63 = vld [vmem:[%s6698_s2 + $0x8c] ss:$16 sps:$4 sm:$0xff]   ;;  %v4741_v59 = vld [vmem:[%s6698_s2 + $0x80] ss:$16 sps:$4 sm:$0xff]  }
  0x69   :  { %829 = vmatpush1.bf16.msra.mxu0 %v4717_v20  ;;  %6999 = vst [vmem:[#allocation40_spill] sm:$0xff] %v4736_v63  ;;  %7000 = vst [vmem:[#allocation41_spill] sm:$0xff] %v4741_v59  ;;  %v4746_v20 = vld [vmem:[%s6698_s2 + $0x88] ss:$16 sps:$4 sm:$0xff]  }
  0x6a   :  { %7001 = vst [vmem:[#allocation42_spill] sm:$0xff] %v4746_v20 }
  0x6b   :  { %868 = vmatpush1.bf16.msra.mxu1 %v4698_v62  ;;  %v4731_v62 = vld [vmem:[%s6698_s2 + $0x84] ss:$16 sps:$4 sm:$0xff]  }
  0x6c   :  { %869 = vmatprep.subr.bf16.mxu1 %v4712_v60  ;;  %6998 = vst [vmem:[#allocation39_spill] sm:$0xff] %v4731_v62  ;;  %830 = vmatprep.subr.bf16.mxu0 %v4731_v62  ;;  %v4760_v60 = vld [vmem:[%s6698_s2 + $0xac] ss:$16 sps:$4 sm:$0xff]   ;;  %v4765_v62 = vld [vmem:[%s6698_s2 + $0xa0] ss:$16 sps:$4 sm:$0xff]  }
  0x6d   :  { %831 = vmatpush1.bf16.msra.mxu0 %v4741_v59  ;;  %7003 = vst [vmem:[#allocation44_spill] sm:$0xff] %v4760_v60  ;;  %7004 = vst [vmem:[#allocation45_spill] sm:$0xff] %v4765_v62  ;;  %v4770_v59 = vld [vmem:[%s6698_s2 + $0xa8] ss:$16 sps:$4 sm:$0xff]  }
  0x6e   :  { %7005 = vst [vmem:[#allocation46_spill] sm:$0xff] %v4770_v59 }
  0x6f   :  { %870 = vmatpush1.bf16.msra.mxu1 %v4722_v61  ;;  %v4755_v61 = vld [vmem:[%s6698_s2 + $0xa4] ss:$16 sps:$4 sm:$0xff]  }
  0x70   :  { %871 = vmatprep.subr.bf16.mxu1 %v4736_v63  ;;  %7002 = vst [vmem:[#allocation43_spill] sm:$0xff] %v4755_v61  ;;  %v4780_v63 = vld [vmem:[%s6698_s2 + $0xcc] ss:$16 sps:$4 sm:$0xff]   ;;  %832 = vmatprep.subr.bf16.mxu0 %v4755_v61 }
  0x71   :  { %7007 = vst [vmem:[#allocation48_spill] sm:$0xff] %v4780_v63  ;;  %833 = vmatpush1.bf16.msra.mxu0 %v4765_v62  ;;  %v4801_v62 = vld [vmem:[%s6698_s2 + $0xe4] ss:$16 sps:$4 sm:$0xff]  }
  0x72   :  { %7010 = vst [vmem:[#allocation51_spill] sm:$0xff] %v4801_v62 }
  0x73   :  { %872 = vmatpush1.bf16.msra.mxu1 %v4746_v20  ;;  %v4775_v20 = vld [vmem:[%s6698_s2 + $0xc4] ss:$16 sps:$4 sm:$0xff]  }
  0x74   :  { %7006 = vst [vmem:[#allocation47_spill] sm:$0xff] %v4775_v20  ;;  %873 = vmatprep.subr.bf16.mxu1 %v4760_v60  ;;  %834 = vmatprep.subr.bf16.mxu0 %v4775_v20  ;;  %v4813_v20 = vld [vmem:[%s6698_s2 + $0xe0] ss:$16 sps:$4 sm:$0xff]  }
  0x75   :  { %835 = vmatpush1.bf16.msra.mxu0 %v4789_v58  ;;  %7012 = vst [vmem:[#allocation53_spill] sm:$0xff] %v4813_v20  ;;  %v141_v58 = vld [vmem:[%s6699_s0] sm:$0xff] }
  0x76   :  { %836 = vmatprep.subr.bf16.mxu0 %v4801_v62  ;;  %v144_v56 = vunpack.c.h.bf16 %v141_v58  ;;  %v143_v62 = vunpack.c.l.bf16 %v141_v58 }
  0x77   :  { %874 = vmatpush1.bf16.msra.mxu1 %v4770_v59  ;;  %v4806_v59 = vld [vmem:[%s6698_s2 + $0xec] ss:$16 sps:$4 sm:$0xff]  }
  0x78   :  { %875 = vmatprep.subr.bf16.mxu1 %v4780_v63  ;;  %7011 = vst [vmem:[#allocation52_spill] sm:$0xff] %v4806_v59  ;;  %v4818_v63 = vld [vmem:[%s6698_s2 + $0xe8] ss:$16 sps:$4 sm:$0xff]  }
  0x79   :  { %7013 = vst [vmem:[#allocation54_spill] sm:$0xff] %v4818_v63  ;;  %837 = vmatpush1.bf16.msra.mxu0 %v4813_v20 }
  0x7a   :  { %962 = vmatprep.subr.bf16.mxu0 %v4241_v0  ;;  %v142_v0 = vld [vmem:[%s6699_s0 + $0x8] sm:$0xff] }
  0x7b   :  { %876 = vmatpush1.bf16.msra.mxu1 %v4794_v57  ;;  %v145_v52 = vunpack.c.l.bf16 %v142_v0  ;;  %v146_v49 = vunpack.c.h.bf16 %v142_v0  ;;  %v7023_v0 = vld [vmem:[#allocation12_spill] sm:$0xff] }
  0x7c   :  { %877 = vmatprep.subr.bf16.mxu1 %v4806_v59 }
  0x7f   :  { %878 = vmatpush1.bf16.msra.mxu1 %v4818_v63 }
  0x80   :  { %1003 = vmatprep.subr.bf16.mxu1 %v4338_v17 }
  0xf5   :  { %v342_v57 = vpop.f32.mrb[0].mxu1 }
  0xf6   :  { %v344_v60 = vpop.f32.mrb[1].mxu1  ;;  %v390_v59 = vadd.f32 %v342_v57, %v143_v62 }
  0xf7   :  { %v346_v61 = vpop.f32.mrb[2].mxu1  ;;  %v391_v54 = vadd.f32 %v344_v60, %v144_v56 }
  0xf8   :  { %v347_v55 = vpop.f32.mrb[3].mxu1  ;;  %v3380_v20 = vmul.f32 -1.442695, %v390_v59 }
  0xf9   :  { %v3381_v53 = vmul.f32 -1.442695, %v391_v54 }
  0xfb   :  { %3738 = vpow2.f32 %v3381_v53 }
  0xfc   :  { %3740 = vpow2.f32 %v3380_v20 }
 0x105   :  { %v3739_v63 = vpop.eup %3738 }
 0x106   :  { %v3741_v17 = vpop.eup %3740  ;;  %v403_v51 = vadd.f32 1.0, %v3739_v63 }
 0x107   :  { %v397_v50 = vadd.f32 1.0, %v3741_v17 }
 0x108   :  { %3742 = vrcp.f32 %v403_v51 }
 0x109   :  { %3744 = vrcp.f32 %v397_v50 }
 0x112   :  { %v3743_v57 = vpop.eup %3742 }
 0x113   :  { %v3745_v60 = vpop.eup %3744  ;;  %v413_v59 = vmul.f32 0.0, %v3743_v57  ;;  %v7030_v57 = vld [vmem:[#allocation21_spill] sm:$0xff] }
 0x115   :  { %v383_v61 = vpop.f32.mrb[4].mxu1 }
 0x116   :  { %v392_v55 = vadd.f32 %v383_v61, %v145_v52  ;;  %v385_v58 = vpop.f32.mrb[5].mxu1  ;;  %v7024_v61 = vld [vmem:[#allocation14_spill] sm:$0xff] }
 0x117   :  { %v393_v56 = vadd.f32 %v385_v58, %v146_v49  ;;  %v387_v54 = vpop.f32.mrb[6].mxu1  ;;  %v7025_v58 = vld [vmem:[#allocation15_spill] sm:$0xff] }
 0x118   :  { %3746 = vtanh.f32 %v392_v55  ;;  %v388_v53 = vpop.f32.mrb[7].mxu1  ;;  %v7027_v54 = vld [vmem:[#allocation16_spill] sm:$0xff] }
 0x119   :  { %v3382_v20 = vmul.f32 -1.442695, %v393_v56  ;;  %v7026_v56 = vld [vmem:[#allocation17_spill] sm:$0xff]  ;;  %v7028_v53 = vld [vmem:[#allocation18_spill] sm:$0xff] }
 0x11b   :  { %3748 = vpow2.f32 %v3382_v20  ;;  %v7029_v20 = vld [vmem:[#allocation19_spill] sm:$0xff] }
 0x122   :  { %v3747_v62 = vpop.eup %3746 }
 0x123   :  { %v414_v47 = vmul.f32 %v3747_v62, %v3745_v60  ;;  %v7031_v60 = vld [vmem:[#allocation20_spill] sm:$0xff]  ;;  %v7032_v62 = vld [vmem:[#allocation22_spill] sm:$0xff] }
 0x125   :  { %v3749_v63 = vpop.eup %3748  ;;  %v4832_v48 = vadd.f32 %v414_v47, %v413_v59  ;;  %v7033_v59 = vld [vmem:[#allocation23_spill] sm:$0xff] }
 0x126   :  { %v410_v17 = vadd.f32 1.0, %v3749_v63  ;;  %v7034_v63 = vld [vmem:[#allocation24_spill] sm:$0xff] }
 0x127   :  { %3750 = vtanh.f32 %v4832_v48 }
 0x128   :  { %3752 = vrcp.f32 %v410_v17  ;;  %v905_v17 = vlaneseq }
 0x131   :  { %v3751_v51 = vpop.eup %3750 }
 0x132   :  { %v3753_v50 = vpop.eup %3752 }
 0x133   :  { %v417_v49 = vmul.f32 %v3753_v50, %v3751_v51  ;;  %v906_v51 = vshrl.u32 %v905_v17, 7 }
 0x135   :  { %v418_v52 = vpack.c.bf16 %v417_v49, %v417_v49  ;;  %v907_v50 = vsub.s32 0, %v906_v51  ;;  %v134_v49 = vld [vmem:[%s6700_s4] sm:$0xf] }
 0x137   :  { %855 = vmatmul.mubr.bf16.vlgmr.msra.gmra.mrb[4].mxu0 %v418_v52  ;;  %896 = vmatmul.mubr.bf16.vlgmr.msra.gmra.mrb[12].mxu1 %v418_v52 }
 0x138   :  { %963 = vmatpush1.bf16.msra.mxu0 %v4248_v2  ;;  %1004 = vmatpush1.bf16.msra.mxu1 %v4344_v18  ;;  %v7014_v2 = vld [vmem:[#allocation5_spill] sm:$0xff] }
 0x139   :  { %964 = vmatprep.subr.bf16.mxu0 %v4254_v3  ;;  %1005 = vmatprep.subr.bf16.mxu1 %v4350_v19  ;;  %v7015_v3 = vld [vmem:[#allocation4_spill] sm:$0xff] }
 0x13a   :  { %994 = vmatprep.mubr.bf16.mxu0 %v6985_v1  ;;  %1035 = vmatprep.mubr.bf16.mxu1 %v6985_v1 }
 0x13c   :  { %965 = vmatpush1.bf16.msra.mxu0 %v4260_v4  ;;  %1006 = vmatpush1.bf16.msra.mxu1 %v4357_v21  ;;  %v7016_v4 = vld [vmem:[#allocation6_spill] sm:$0xff] }
 0x13d   :  { %966 = vmatprep.subr.bf16.mxu0 %v4266_v5  ;;  %1007 = vmatprep.subr.bf16.mxu1 %v4364_v22  ;;  %v7017_v5 = vld [vmem:[#allocation7_spill] sm:$0xff] }
 0x140   :  { %967 = vmatpush1.bf16.msra.mxu0 %v4272_v6  ;;  %1008 = vmatpush1.bf16.msra.mxu1 %v4370_v23  ;;  %v7018_v6 = vld [vmem:[#allocation9_spill] sm:$0xff] }
 0x141   :  { %968 = vmatprep.subr.bf16.mxu0 %v4278_v7  ;;  %1009 = vmatprep.subr.bf16.mxu1 %v4376_v24  ;;  %v614_v7 = vpop.f32.mrb[0].mxu0 }
 0x144   :  { %969 = vmatpush1.bf16.msra.mxu0 %v4284_v8  ;;  %1010 = vmatpush1.bf16.msra.mxu1 %v4382_v25  ;;  %v7019_v8 = vld [vmem:[#allocation8_spill] sm:$0xff] }
 0x145   :  { %970 = vmatprep.subr.bf16.mxu0 %v4290_v9  ;;  %1011 = vmatprep.subr.bf16.mxu1 %v4388_v26  ;;  %v7020_v9 = vld [vmem:[#allocation10_spill] sm:$0xff] }
 0x148   :  { %971 = vmatpush1.bf16.msra.mxu0 %v4296_v10  ;;  %1012 = vmatpush1.bf16.msra.mxu1 %v4394_v27  ;;  %v616_v10 = vpop.f32.mrb[1].mxu0 }
 0x149   :  { %972 = vmatprep.subr.bf16.mxu0 %v4302_v11  ;;  %1013 = vmatprep.subr.bf16.mxu1 %v4400_v28  ;;  %v7021_v11 = vld [vmem:[#allocation11_spill] sm:$0xff] }
 0x14c   :  { %973 = vmatpush1.bf16.msra.mxu0 %v4308_v12  ;;  %1014 = vmatpush1.bf16.msra.mxu1 %v4406_v29  ;;  %v7022_v12 = vld [vmem:[#allocation13_spill] sm:$0xff] }
 0x14d   :  { %974 = vmatprep.subr.bf16.mxu0 %v4314_v13  ;;  %1015 = vmatprep.subr.bf16.mxu1 %v4412_v30  ;;  %v618_v13 = vpop.f32.mrb[2].mxu0 }
 0x14e   :  { %v4906_v13 = vrot.slane %v134_v49, %v907_v50 }
 0x150   :  { %975 = vmatpush1.bf16.msra.mxu0 %v4320_v14  ;;  %1016 = vmatpush1.bf16.msra.mxu1 %v4418_v31  ;;  %v655_v14 = vpop.f32.mrb[8].mxu1 }
 0x151   :  { %976 = vmatprep.subr.bf16.mxu0 %v4326_v15  ;;  %1017 = vmatprep.subr.bf16.mxu1 %v4424_v32  ;;  %v619_v15 = vpop.f32.mrb[3].mxu0 }
 0x154   :  { %977 = vmatpush1.bf16.msra.mxu0 %v4332_v16  ;;  %1018 = vmatpush1.bf16.msra.mxu1 %v4430_v33  ;;  %v657_v16 = vpop.f32.mrb[9].mxu1 }
 0x155   :  { %1073 = vmatprep.subr.bf16.mxu0 %v4439_v34  ;;  %1114 = vmatprep.subr.bf16.mxu1 %v4450_v36  ;;  %v659_v47 = vpop.f32.mrb[10].mxu1 }
 0x156   :  { %v660_v55 = vpop.f32.mrb[11].mxu1 }
 0x157   :  { %995 = vmatmul.mubr.bf16.vlgmr.msra.gmra.mrb[8].mxu0 %v418_v52  ;;  %1036 = vmatmul.mubr.bf16.vlgmr.msra.gmra.mrb[16].mxu1 %v418_v52  ;;  %v911_v52 = vsub.s32 1, %v906_v51 }
 0x158   :  { %1074 = vmatpush1.bf16.msra.mxu0 %v4444_v35  ;;  %1115 = vmatpush1.bf16.msra.mxu1 %v4455_v37 }
 0x159   :  { %1075 = vmatprep.subr.bf16.mxu0 %v4462_v38  ;;  %1116 = vmatprep.subr.bf16.mxu1 %v4473_v40  ;;  %v4908_v55 = vrot.slane %v134_v49, %v911_v52 }
 0x15a   :  { %1105 = vmatprep.mubr.bf16.mxu0 %v6985_v1  ;;  %1146 = vmatprep.mubr.bf16.mxu1 %v6985_v1 }
 0x15c   :  { %1076 = vmatpush1.bf16.msra.mxu0 %v4468_v39  ;;  %1117 = vmatpush1.bf16.msra.mxu1 %v4479_v41 }
 0x15d   :  { %1077 = vmatprep.subr.bf16.mxu0 %v4486_v42  ;;  %1118 = vmatprep.subr.bf16.mxu1 %v4497_v44 }
 0x160   :  { %1078 = vmatpush1.bf16.msra.mxu0 %v4492_v43  ;;  %1119 = vmatpush1.bf16.msra.mxu1 %v4503_v45 }
 0x161   :  { %1079 = vmatprep.subr.bf16.mxu0 %v4510_v46  ;;  %1120 = vmatprep.subr.bf16.mxu1 %v7014_v2 }
 0x164   :  { %1080 = vmatpush1.bf16.msra.mxu0 %v7015_v3  ;;  %1121 = vmatpush1.bf16.msra.mxu1 %v7016_v4 }
 0x165   :  { %1081 = vmatprep.subr.bf16.mxu0 %v7017_v5  ;;  %1122 = vmatprep.subr.bf16.mxu1 %v7018_v6 }
 0x168   :  { %1082 = vmatpush1.bf16.msra.mxu0 %v7019_v8  ;;  %1123 = vmatpush1.bf16.msra.mxu1 %v7020_v9 }
 0x169   :  { %1083 = vmatprep.subr.bf16.mxu0 %v7021_v11  ;;  %1124 = vmatprep.subr.bf16.mxu1 %v7022_v12 }
 0x16c   :  { %1084 = vmatpush1.bf16.msra.mxu0 %v7023_v0  ;;  %1125 = vmatpush1.bf16.msra.mxu1 %v7024_v61 }
 0x16d   :  { %1085 = vmatprep.subr.bf16.mxu0 %v7025_v58  ;;  %1126 = vmatprep.subr.bf16.mxu1 %v7026_v56 }
 0x170   :  { %1086 = vmatpush1.bf16.msra.mxu0 %v7027_v54  ;;  %1127 = vmatpush1.bf16.msra.mxu1 %v7028_v53  ;;  %v919_v53 = vsub.s32 3, %v906_v51 }
 0x171   :  { %1087 = vmatprep.subr.bf16.mxu0 %v7029_v20  ;;  %1128 = vmatprep.subr.bf16.mxu1 %v7030_v57 }
 0x172   :  { %v4912_v11 = vrot.slane %v134_v49, %v919_v53 }
 0x174   :  { %1088 = vmatpush1.bf16.msra.mxu0 %v7031_v60  ;;  %1129 = vmatpush1.bf16.msra.mxu1 %v7032_v62 }
 0x175   :  { %1155 = vmatprep.subr.bf16.mxu0 %v7033_v59  ;;  %1196 = vmatprep.subr.bf16.mxu1 %v7034_v63 }
 0x20a   :  { %v856_v15 = vpop.f32.mrb[4].mxu0  ;;  %v897_v47 = vpop.f32.mrb[12].mxu1 }
 0x20b   :  { %v857_v60 = vadd.f32 %v856_v15, %v614_v7  ;;  %v898_v62 = vadd.f32 %v897_v47, %v655_v14  ;;  %v858_v57 = vpop.f32.mrb[5].mxu0  ;;  %v899_v59 = vpop.f32.mrb[13].mxu1  ;;  %v915_v7 = vsub.s32 2, %v906_v51 }
 0x20c   :  { %v859_v20 = vadd.f32 %v858_v57, %v616_v10  ;;  %v900_v63 = vadd.f32 %v899_v59, %v657_v16  ;;  %v860_v17 = vpop.f32.mrb[6].mxu0  ;;  %v901_v54 = vpop.f32.mrb[14].mxu1 }
 0x20d   :  { %v925_v56 = vadd.f32 %v4906_v13, %v857_v60  ;;  %v861_v58 = vpop.f32.mrb[7].mxu0  ;;  %v902_v61 = vpop.f32.mrb[15].mxu1  ;;  %v4915_v10 = vrot.slane %v134_v49, %v915_v7  ;;  %v3451_v17 = vld [vmem:[%s6699_s0 + $0x18] sm:$0xff] }
 0x20e   :  { %v926_v50 = vadd.f32 %v4908_v55, %v859_v20  ;;  %v928_v14 = vadd.f32 %v4912_v11, %v900_v63 }
 0x20f   :  { %v3447_v0 = vmul.f32 -1.442695, %v925_v56  ;;  %v927_v54 = vadd.f32 %v4915_v10, %v898_v62 }
 0x210   :  { %v3448_v12 = vmul.f32 -1.442695, %v926_v50  ;;  %v3449_v16 = vmul.f32 -1.442695, %v928_v14 }
 0x211   :  { %3754 = vpow2.f32 %v3447_v0  ;;  %v3450_v0 = vld [vmem:[%s6699_s0 + $0x10] sm:$0xff] }
 0x212   :  { %3756 = vpow2.f32 %v3448_v12  ;;  %v958_v53 = vunpack.c.l.bf16 %v3450_v0  ;;  %v959_v59 = vunpack.c.h.bf16 %v3450_v0 }
 0x213   :  { %3758 = vpow2.f32 %v3449_v16 }
 0x214   :  { %3760 = vtanh.f32 %v927_v54 }
 0x21b   :  { %v3755_v57 = vpop.eup %3754 }
 0x21c   :  { %v3757_v60 = vpop.eup %3756  ;;  %v932_v58 = vadd.f32 1.0, %v3755_v57 }
 0x21d   :  { %v938_v61 = vadd.f32 1.0, %v3757_v60  ;;  %v3759_v12 = vpop.eup %3758 }
 0x21e   :  { %3762 = vrcp.f32 %v932_v58  ;;  %v3761_v56 = vpop.eup %3760  ;;  %v945_v62 = vadd.f32 1.0, %v3759_v12  ;;  %v961_v12 = vunpack.c.h.bf16 %v3451_v17 }
 0x21f   :  { %3764 = vrcp.f32 %v938_v61 }
 0x220   :  { %3766 = vrcp.f32 %v945_v62 }
 0x228   :  { %v3763_v20 = vpop.eup %3762 }
 0x229   :  { %v3765_v63 = vpop.eup %3764  ;;  %v949_v51 = vmul.f32 %v3763_v20, %v3761_v56 }
 0x22a   :  { %v948_v49 = vmul.f32 0.0, %v3765_v63  ;;  %v996_v52 = vpop.f32.mrb[8].mxu0  ;;  %v1037_v15 = vpop.f32.mrb[16].mxu1 }
 0x22b   :  { %v1044_v47 = vadd.f32 %v996_v52, %v958_v53  ;;  %v998_v50 = vpop.f32.mrb[9].mxu0  ;;  %v1039_v7 = vpop.f32.mrb[17].mxu1  ;;  %v960_v53 = vunpack.c.l.bf16 %v3451_v17  ;;  %v7036_v17 = vld [vmem:[#allocation26_spill] sm:$0xff] }
 0x22c   :  { %v4924_v14 = vadd.f32 %v949_v51, %v948_v49  ;;  %v1045_v16 = vadd.f32 %v998_v50, %v959_v59  ;;  %v1000_v54 = vpop.f32.mrb[10].mxu0  ;;  %v1041_v57 = vpop.f32.mrb[18].mxu1  ;;  %v1047_v56 = vadd.f32 %v1039_v7, %v961_v12  ;;  %v7037_v7 = vld [vmem:[#allocation27_spill] sm:$0xff] }
 0x22d   :  { %v3452_v60 = vmul.f32 -1.442695, %v1044_v47  ;;  %v1001_v58 = vpop.f32.mrb[11].mxu0  ;;  %v1042_v61 = vpop.f32.mrb[19].mxu1  ;;  %v1046_v52 = vadd.f32 %v1037_v15, %v960_v53  ;;  %v7038_v15 = vld [vmem:[#allocation28_spill] sm:$0xff]  ;;  %v7039_v57 = vld [vmem:[#allocation29_spill] sm:$0xff] }
 0x22e   :  { %v3453_v0 = vmul.f32 -1.442695, %v1045_v16  ;;  %3768 = vtanh.f32 %v4924_v14  ;;  %v3454_v20 = vmul.f32 -1.442695, %v1047_v56  ;;  %v3767_v63 = vpop.eup %3766  ;;  %v7035_v16 = vld [vmem:[#allocation25_spill] sm:$0xff]  ;;  %v7041_v58 = vld [vmem:[#allocation31_spill] sm:$0xff] }
 0x22f   :  { %3770 = vpow2.f32 %v3452_v60  ;;  %v7040_v60 = vld [vmem:[#allocation30_spill] sm:$0xff]  ;;  %v7042_v61 = vld [vmem:[#allocation32_spill] sm:$0xff]  ;;  %v7043_v53 = vld [vmem:[#allocation33_spill] sm:$0xff] }
 0x230   :  { %3772 = vpow2.f32 %v3453_v0 }
 0x231   :  { %3774 = vpow2.f32 %v3454_v20  ;;  %v7044_v20 = vld [vmem:[#allocation34_spill] sm:$0xff] }
 0x232   :  { %3776 = vtanh.f32 %v1046_v52 }
 0x238   :  { %v3769_v51 = vpop.eup %3768 }
 0x239   :  { %v3771_v49 = vpop.eup %3770  ;;  %v952_v59 = vmul.f32 %v3769_v51, %v3767_v63 }
 0x23a   :  { %v3773_v50 = vpop.eup %3772  ;;  %v1051_v54 = vadd.f32 1.0, %v3771_v49  ;;  %v7045_v49 = vld [vmem:[#allocation35_spill] sm:$0xff] }
 0x23b   :  { %v1057_v62 = vadd.f32 1.0, %v3773_v50  ;;  %v953_v47 = vpack.c.bf16 %v952_v59, %v952_v59  ;;  %v3775_v0 = vpop.eup %3774  ;;  %v7046_v59 = vld [vmem:[#allocation36_spill] sm:$0xff] }
 0x23c   :  { %3778 = vrcp.f32 %v1051_v54  ;;  %v3777_v12 = vpop.eup %3776  ;;  %v1064_v51 = vadd.f32 1.0, %v3775_v0  ;;  %v7051_v0 = vld [vmem:[#allocation41_spill] sm:$0xff] }
 0x23d   :  { %3780 = vrcp.f32 %v1057_v62  ;;  %954 = vst [vmem:[#allocation2] sm:$0xf] %v953_v47  ;;  %1106 = vmatmul.mubr.bf16.vlgmr.msra.gmra.mrb[12].mxu0 %v953_v47  ;;  %1147 = vmatmul.mubr.bf16.vlgmr.msra.gmra.mrb[20].mxu1 %v953_v47  ;;  %v7047_v62 = vld [vmem:[#allocation37_spill] sm:$0xff]  ;;  %v7048_v47 = vld [vmem:[#allocation38_spill] sm:$0xff] }
 0x23e   :  { %1156 = vmatpush1.bf16.msra.mxu0 %v7035_v16  ;;  %1197 = vmatpush1.bf16.msra.mxu1 %v7036_v17  ;;  %3782 = vrcp.f32 %v1064_v51  ;;  %v7049_v16 = vld [vmem:[#allocation39_spill] sm:$0xff]  ;;  %v7050_v17 = vld [vmem:[#allocation40_spill] sm:$0xff] }
 0x23f   :  { %1157 = vmatprep.subr.bf16.mxu0 %v7037_v7  ;;  %1198 = vmatprep.subr.bf16.mxu1 %v7038_v15  ;;  %v7058_v51 = vld [vmem:[#allocation48_spill] sm:$0xff] }
 0x240   :  { %1187 = vmatprep.mubr.bf16.mxu0 %v6985_v1  ;;  %1228 = vmatprep.mubr.bf16.mxu1 %v6985_v1 }
 0x242   :  { %1158 = vmatpush1.bf16.msra.mxu0 %v7039_v57  ;;  %1199 = vmatpush1.bf16.msra.mxu1 %v7040_v60 }
 0x243   :  { %1159 = vmatprep.subr.bf16.mxu0 %v7041_v58  ;;  %1200 = vmatprep.subr.bf16.mxu1 %v7042_v61 }
 0x246   :  { %v3779_v56 = vpop.eup %3778  ;;  %1160 = vmatpush1.bf16.msra.mxu0 %v7043_v53  ;;  %1201 = vmatpush1.bf16.msra.mxu1 %v7044_v20 }
 0x247   :  { %v3781_v63 = vpop.eup %3780  ;;  %v1068_v52 = vmul.f32 %v3779_v56, %v3777_v12  ;;  %1161 = vmatprep.subr.bf16.mxu0 %v7045_v49  ;;  %1202 = vmatprep.subr.bf16.mxu1 %v7046_v59  ;;  %v7052_v12 = vld [vmem:[#allocation42_spill] sm:$0xff]  ;;  %v7053_v56 = vld [vmem:[#allocation43_spill] sm:$0xff] }
 0x248   :  { %v1067_v50 = vmul.f32 %v3781_v63, %v4832_v48  ;;  %v7054_v48 = vld [vmem:[#allocation44_spill] sm:$0xff]  ;;  %v7055_v63 = vld [vmem:[#allocation45_spill] sm:$0xff] }
 0x24a   :  { %v4942_v54 = vadd.f32 %v1068_v52, %v1067_v50  ;;  %1162 = vmatpush1.bf16.msra.mxu0 %v7047_v62  ;;  %1203 = vmatpush1.bf16.msra.mxu1 %v7048_v47  ;;  %v7056_v52 = vld [vmem:[#allocation46_spill] sm:$0xff]  ;;  %v7057_v50 = vld [vmem:[#allocation47_spill] sm:$0xff]  ;;  %v7059_v47 = vld [vmem:[#allocation49_spill] sm:$0xff] }
 0x24b   :  { %1163 = vmatprep.subr.bf16.mxu0 %v7049_v16  ;;  %1204 = vmatprep.subr.bf16.mxu1 %v7050_v17  ;;  %v3783_v16 = vpop.eup %3782  ;;  %v7060_v62 = vld [vmem:[#allocation50_spill] sm:$0xff] }
 0x24c   :  { %3784 = vtanh.f32 %v4942_v54 }
 0x24e   :  { %1164 = vmatpush1.bf16.msra.mxu0 %v7051_v0  ;;  %1205 = vmatpush1.bf16.msra.mxu1 %v7052_v12  ;;  %v7061_v0 = vld [vmem:[#allocation51_spill] sm:$0xff]  ;;  %v7062_v12 = vld [vmem:[#allocation52_spill] sm:$0xff] }
 0x24f   :  { %1165 = vmatprep.subr.bf16.mxu0 %v7053_v56  ;;  %1206 = vmatprep.subr.bf16.mxu1 %v7054_v48  ;;  %v7063_v48 = vld [vmem:[#allocation53_spill] sm:$0xff] }
 0x252   :  { %1166 = vmatpush1.bf16.msra.mxu0 %v7055_v63  ;;  %1207 = vmatpush1.bf16.msra.mxu1 %v7056_v52  ;;  %v7064_v63 = vld [vmem:[#allocation54_spill] sm:$0xff] }
 0x253   :  { %1167 = vmatprep.subr.bf16.mxu0 %v7057_v50  ;;  %1208 = vmatprep.subr.bf16.mxu1 %v7058_v51  ;;  %v4966_v51 = vld [vmem:[%s6696_s1 + $0x4] ss:$16 sps:$4 sm:$0xff]  }
 0x256   :  { %v3785_v17 = vpop.eup %3784  ;;  %1168 = vmatpush1.bf16.msra.mxu0 %v7059_v47  ;;  %1209 = vmatpush1.bf16.msra.mxu1 %v7060_v62  ;;  %v7065_v47 = vld [vmem:[#allocation3_spill] sm:$0xff] }
 0x257   :  { %1169 = vmatprep.subr.bf16.mxu0 %v7061_v0  ;;  %1210 = vmatprep.subr.bf16.mxu1 %v7062_v12  ;;  %v1071_v56 = vmul.f32 %v3785_v17, %v3783_v16  ;;  %v4973_v16 = vld [vmem:[%s6696_s1] ss:$16 sps:$4 sm:$0xff]   ;;  %v4980_v17 = vld [vmem:[%s6696_s1 + $0x24] ss:$16 sps:$4 sm:$0xff]  }
 0x259   :  { %v1072_v52 = vpack.c.bf16 %v1071_v56, %v1071_v56 }
 0x25a   :  { %1170 = vmatpush1.bf16.msra.mxu0 %v7063_v48  ;;  %1211 = vmatpush1.bf16.msra.mxu1 %v7064_v63 }
 0x25b   :  { %1275 = vmatprep.subr.bf16.mxu0 %v4966_v51  ;;  %1316 = vmatprep.subr.bf16.mxu1 %v7065_v47  ;;  %v4989_v47 = vld [vmem:[%s6696_s1 + $0x20] ss:$16 sps:$4 sm:$0xff]  }
 0x25d   :  { %1188 = vmatmul.mubr.bf16.vlgmr.msra.gmra.mrb[16].mxu0 %v1072_v52  ;;  %1229 = vmatmul.mubr.bf16.vlgmr.msra.gmra.mrb[24].mxu1 %v1072_v52 }
 0x25e   :  { %1276 = vmatpush1.bf16.msra.mxu0 %v4973_v16  ;;  %1317 = vmatpush1.bf16.msra.mxu1 %v4344_v18  ;;  %v4996_v18 = vld [vmem:[%s6696_s1 + $0x44] ss:$16 sps:$4 sm:$0xff]  }
 0x25f   :  { %1277 = vmatprep.subr.bf16.mxu0 %v4980_v17  ;;  %1318 = vmatprep.subr.bf16.mxu1 %v4350_v19  ;;  %v5003_v19 = vld [vmem:[%s6696_s1 + $0x40] ss:$16 sps:$4 sm:$0xff]  }
 0x260   :  { %1307 = vmatprep.mubr.bf16.mxu0 %v6985_v1  ;;  %1348 = vmatprep.mubr.bf16.mxu1 %v6985_v1 }
 0x262   :  { %1278 = vmatpush1.bf16.msra.mxu0 %v4989_v47  ;;  %1319 = vmatpush1.bf16.msra.mxu1 %v4357_v21  ;;  %v5010_v21 = vld [vmem:[%s6696_s1 + $0x64] ss:$16 sps:$4 sm:$0xff]  }
 0x263   :  { %1279 = vmatprep.subr.bf16.mxu0 %v4996_v18  ;;  %1320 = vmatprep.subr.bf16.mxu1 %v4364_v22  ;;  %v5017_v22 = vld [vmem:[%s6696_s1 + $0x60] ss:$16 sps:$4 sm:$0xff]  }
 0x266   :  { %1280 = vmatpush1.bf16.msra.mxu0 %v5003_v19  ;;  %1321 = vmatpush1.bf16.msra.mxu1 %v4370_v23  ;;  %v5024_v23 = vld [vmem:[%s6696_s1 + $0x84] ss:$16 sps:$4 sm:$0xff]  }
 0x267   :  { %1281 = vmatprep.subr.bf16.mxu0 %v5010_v21  ;;  %1322 = vmatprep.subr.bf16.mxu1 %v4376_v24  ;;  %v5031_v24 = vld [vmem:[%s6696_s1 + $0x80] ss:$16 sps:$4 sm:$0xff]  }
 0x26a   :  { %1282 = vmatpush1.bf16.msra.mxu0 %v5017_v22  ;;  %1323 = vmatpush1.bf16.msra.mxu1 %v4382_v25  ;;  %v5038_v25 = vld [vmem:[%s6696_s1 + $0xa4] ss:$16 sps:$4 sm:$0xff]  }
 0x26b   :  { %1283 = vmatprep.subr.bf16.mxu0 %v5024_v23  ;;  %1324 = vmatprep.subr.bf16.mxu1 %v4388_v26  ;;  %v5045_v26 = vld [vmem:[%s6696_s1 + $0xa0] ss:$16 sps:$4 sm:$0xff]  }
 0x26e   :  { %1284 = vmatpush1.bf16.msra.mxu0 %v5031_v24  ;;  %1325 = vmatpush1.bf16.msra.mxu1 %v4394_v27  ;;  %v5052_v27 = vld [vmem:[%s6696_s1 + $0xc4] ss:$16 sps:$4 sm:$0xff]  }
 0x26f   :  { %1285 = vmatprep.subr.bf16.mxu0 %v5038_v25  ;;  %1326 = vmatprep.subr.bf16.mxu1 %v4400_v28  ;;  %v5059_v28 = vld [vmem:[%s6696_s1 + $0xc0] ss:$16 sps:$4 sm:$0xff]  }
 0x272   :  { %1286 = vmatpush1.bf16.msra.mxu0 %v5045_v26  ;;  %1327 = vmatpush1.bf16.msra.mxu1 %v4406_v29  ;;  %v5066_v29 = vld [vmem:[%s6696_s1 + $0xe4] ss:$16 sps:$4 sm:$0xff]  }
 0x273   :  { %1287 = vmatprep.subr.bf16.mxu0 %v5052_v27  ;;  %1328 = vmatprep.subr.bf16.mxu1 %v4412_v30  ;;  %v5073_v30 = vld [vmem:[%s6696_s1 + $0xe0] ss:$16 sps:$4 sm:$0xff]  }
 0x276   :  { %1288 = vmatpush1.bf16.msra.mxu0 %v5059_v28  ;;  %1329 = vmatpush1.bf16.msra.mxu1 %v4418_v31  ;;  %v7066_v31 = vld [vmem:[#allocation11_spill] sm:$0xff] }
 0x277   :  { %1289 = vmatprep.subr.bf16.mxu0 %v5066_v29  ;;  %1330 = vmatprep.subr.bf16.mxu1 %v4424_v32  ;;  %v7067_v32 = vld [vmem:[#allocation13_spill] sm:$0xff] }
 0x27a   :  { %1290 = vmatpush1.bf16.msra.mxu0 %v5073_v30  ;;  %1331 = vmatpush1.bf16.msra.mxu1 %v4430_v33  ;;  %v7068_v33 = vld [vmem:[#allocation12_spill] sm:$0xff] }
 0x27b   :  { %1386 = vmatprep.subr.bf16.mxu0 %v4439_v34  ;;  %1427 = vmatprep.subr.bf16.mxu1 %v4450_v36  ;;  %v7069_v34 = vld [vmem:[#allocation14_spill] sm:$0xff]  ;;  %v7071_v36 = vld [vmem:[#allocation17_spill] sm:$0xff] }
 0x27d   :  { %1308 = vmatmul.mubr.bf16.vlgmr.msra.gmra.mrb[20].mxu0 %v1072_v52  ;;  %1349 = vmatmul.mubr.bf16.vlgmr.msra.gmra.mrb[28].mxu1 %v1072_v52 }
 0x27e   :  { %1387 = vmatpush1.bf16.msra.mxu0 %v4444_v35  ;;  %1428 = vmatpush1.bf16.msra.mxu1 %v4455_v37  ;;  %v7070_v35 = vld [vmem:[#allocation15_spill] sm:$0xff]  ;;  %v7072_v37 = vld [vmem:[#allocation16_spill] sm:$0xff] }
 0x27f   :  { %1388 = vmatprep.subr.bf16.mxu0 %v4462_v38  ;;  %1429 = vmatprep.subr.bf16.mxu1 %v4473_v40  ;;  %v7073_v38 = vld [vmem:[#allocation18_spill] sm:$0xff]  ;;  %v7075_v40 = vld [vmem:[#allocation21_spill] sm:$0xff] }
 0x280   :  { %1418 = vmatprep.mubr.bf16.mxu0 %v6985_v1  ;;  %1459 = vmatprep.mubr.bf16.mxu1 %v6985_v1 }
 0x282   :  { %1389 = vmatpush1.bf16.msra.mxu0 %v4468_v39  ;;  %1430 = vmatpush1.bf16.msra.mxu1 %v4479_v41  ;;  %v7074_v39 = vld [vmem:[#allocation19_spill] sm:$0xff]  ;;  %v7076_v41 = vld [vmem:[#allocation20_spill] sm:$0xff] }
 0x283   :  { %1390 = vmatprep.subr.bf16.mxu0 %v4486_v42  ;;  %1431 = vmatprep.subr.bf16.mxu1 %v4497_v44  ;;  %v7077_v42 = vld [vmem:[#allocation22_spill] sm:$0xff]  ;;  %v7079_v44 = vld [vmem:[#allocation24_spill] sm:$0xff] }
 0x286   :  { %1391 = vmatpush1.bf16.msra.mxu0 %v4492_v43  ;;  %1432 = vmatpush1.bf16.msra.mxu1 %v4503_v45  ;;  %v7078_v43 = vld [vmem:[#allocation23_spill] sm:$0xff] }
 0x287   :  { %1392 = vmatprep.subr.bf16.mxu0 %v4510_v46  ;;  %1433 = vmatprep.subr.bf16.mxu1 %v7014_v2 }
 0x28a   :  { %1393 = vmatpush1.bf16.msra.mxu0 %v7015_v3  ;;  %1434 = vmatpush1.bf16.msra.mxu1 %v7016_v4 }
 0x28b   :  { %1394 = vmatprep.subr.bf16.mxu0 %v7017_v5  ;;  %1435 = vmatprep.subr.bf16.mxu1 %v7018_v6 }
 0x28e   :  { %1395 = vmatpush1.bf16.msra.mxu0 %v7019_v8  ;;  %1436 = vmatpush1.bf16.msra.mxu1 %v7020_v9 }
 0x28f   :  { %1396 = vmatprep.subr.bf16.mxu0 %v7066_v31  ;;  %1437 = vmatprep.subr.bf16.mxu1 %v7067_v32 }
 0x292   :  { %1397 = vmatpush1.bf16.msra.mxu0 %v7068_v33  ;;  %1438 = vmatpush1.bf16.msra.mxu1 %v7069_v34 }
 0x293   :  { %1398 = vmatprep.subr.bf16.mxu0 %v7070_v35  ;;  %1439 = vmatprep.subr.bf16.mxu1 %v7071_v36 }
 0x296   :  { %1399 = vmatpush1.bf16.msra.mxu0 %v7072_v37  ;;  %1440 = vmatpush1.bf16.msra.mxu1 %v7073_v38 }
 0x297   :  { %1400 = vmatprep.subr.bf16.mxu0 %v7074_v39  ;;  %1441 = vmatprep.subr.bf16.mxu1 %v7075_v40 }
 0x29a   :  { %1401 = vmatpush1.bf16.msra.mxu0 %v7076_v41  ;;  %1442 = vmatpush1.bf16.msra.mxu1 %v7077_v42 }
 0x29b   :  { %1468 = vmatprep.subr.bf16.mxu0 %v7078_v43  ;;  %1509 = vmatprep.subr.bf16.mxu1 %v7079_v44 }
 0x310   :  { %v1107_v45 = vpop.f32.mrb[12].mxu0  ;;  %v1148_v46 = vpop.f32.mrb[20].mxu1 }
 0x311   :  { %v1109_v2 = vpop.f32.mrb[13].mxu0  ;;  %v1150_v3 = vpop.f32.mrb[21].mxu1 }
 0x312   :  { %v1111_v4 = vpop.f32.mrb[14].mxu0  ;;  %v1152_v5 = vpop.f32.mrb[22].mxu1 }
 0x313   :  { %v1112_v6 = vpop.f32.mrb[15].mxu0  ;;  %v1153_v8 = vpop.f32.mrb[23].mxu1 }
 0x314   :  { %v3458_v6 = vld [vmem:[%s6699_s0 + $0x20] sm:$0xff] }
 0x330   :  { %v1189_v9 = vpop.f32.mrb[16].mxu0  ;;  %v1230_v56 = vpop.f32.mrb[24].mxu1 }
 0x331   :  { %v1190_v52 = vadd.f32 %v1189_v9, %v1107_v45  ;;  %v1231_v31 = vadd.f32 %v1230_v56, %v1148_v46  ;;  %v1191_v32 = vpop.f32.mrb[17].mxu0  ;;  %v1232_v33 = vpop.f32.mrb[25].mxu1  ;;  %v1271_v56 = vunpack.c.l.bf16 %v3458_v6 }
 0x332   :  { %v1192_v34 = vadd.f32 %v1191_v32, %v1109_v2  ;;  %v1233_v35 = vadd.f32 %v1232_v33, %v1150_v3  ;;  %v1193_v36 = vpop.f32.mrb[18].mxu0  ;;  %v1234_v37 = vpop.f32.mrb[26].mxu1  ;;  %v1272_v32 = vunpack.c.h.bf16 %v3458_v6 }
 0x333   :  { %v1237_v38 = vadd.f32 %v1190_v52, %v4906_v13  ;;  %v1194_v39 = vpop.f32.mrb[19].mxu0  ;;  %v1235_v40 = vpop.f32.mrb[27].mxu1  ;;  %v1239_v46 = vadd.f32 %v1231_v31, %v4915_v10 }
 0x334   :  { %v1238_v41 = vadd.f32 %v1192_v34, %v4908_v55  ;;  %v1240_v44 = vadd.f32 %v1233_v35, %v4912_v11  ;;  %v3459_v39 = vld [vmem:[%s6699_s0 + $0x28] sm:$0xff] }
 0x335   :  { %v3455_v42 = vmul.f32 -1.442695, %v1237_v38  ;;  %v1273_v6 = vunpack.c.l.bf16 %v3459_v39 }
 0x336   :  { %v3456_v43 = vmul.f32 -1.442695, %v1238_v41  ;;  %v3457_v45 = vmul.f32 -1.442695, %v1240_v44 }
 0x337   :  { %3786 = vpow2.f32 %v3455_v42 }
 0x338   :  { %3788 = vpow2.f32 %v3456_v43 }
 0x339   :  { %3790 = vpow2.f32 %v3457_v45 }
 0x33a   :  { %3792 = vtanh.f32 %v1239_v46 }
 0x341   :  { %v3787_v4 = vpop.eup %3786 }
 0x342   :  { %v3789_v2 = vpop.eup %3788  ;;  %v1244_v3 = vadd.f32 1.0, %v3787_v4 }
 0x343   :  { %v1250_v5 = vadd.f32 1.0, %v3789_v2  ;;  %v3791_v8 = vpop.eup %3790 }
 0x344   :  { %3794 = vrcp.f32 %v1244_v3  ;;  %v3793_v9 = vpop.eup %3792  ;;  %v1257_v31 = vadd.f32 1.0, %v3791_v8 }
 0x345   :  { %3796 = vrcp.f32 %v1250_v5 }
 0x346   :  { %3798 = vrcp.f32 %v1257_v31 }
 0x34e   :  { %v3795_v52 = vpop.eup %3794 }
 0x34f   :  { %v3797_v33 = vpop.eup %3796  ;;  %v1261_v34 = vmul.f32 %v3795_v52, %v3793_v9 }
 0x350   :  { %v1260_v35 = vmul.f32 %v3797_v33, %v4924_v14  ;;  %v1309_v36 = vpop.f32.mrb[20].mxu0  ;;  %v1350_v37 = vpop.f32.mrb[28].mxu1  ;;  %v1274_v14 = vunpack.c.h.bf16 %v3459_v39 }
 0x351   :  { %v1357_v38 = vadd.f32 %v1309_v36, %v1271_v56  ;;  %v1311_v40 = vpop.f32.mrb[21].mxu0  ;;  %v1352_v41 = vpop.f32.mrb[29].mxu1  ;;  %v1359_v56 = vadd.f32 %v1350_v37, %v1273_v6  ;;  %v5136_v37 = vld [vmem:[%s6698_s2 + $0x8] ss:$16 sps:$4 sm:$0xff]  }
 0x352   :  { %v5124_v42 = vadd.f32 %v1261_v34, %v1260_v35  ;;  %v1358_v43 = vadd.f32 %v1311_v40, %v1272_v32  ;;  %v1313_v44 = vpop.f32.mrb[22].mxu0  ;;  %v1354_v45 = vpop.f32.mrb[30].mxu1  ;;  %v1360_v5 = vadd.f32 %v1352_v41, %v1274_v14  ;;  %v7091_v14 = vld [vmem:[#allocation49_spill] sm:$0xff] }
 0x353   :  { %v3460_v46 = vmul.f32 -1.442695, %v1357_v38  ;;  %v1314_v4 = vpop.f32.mrb[23].mxu0  ;;  %v1355_v2 = vpop.f32.mrb[31].mxu1  ;;  %v5130_v38 = vld [vmem:[%s6698_s2] ss:$16 sps:$4 sm:$0xff]  }
 0x354   :  { %v3461_v3 = vmul.f32 -1.442695, %v1358_v43  ;;  %3800 = vtanh.f32 %v5124_v42  ;;  %v3462_v8 = vmul.f32 -1.442695, %v1360_v5  ;;  %v3799_v9 = vpop.eup %3798  ;;  %v7082_v44 = vld [vmem:[#allocation39_spill] sm:$0xff]  ;;  %v7088_v45 = vld [vmem:[#allocation45_spill] sm:$0xff] }
 0x355   :  { %3802 = vpow2.f32 %v3460_v46  ;;  %v7089_v46 = vld [vmem:[#allocation46_spill] sm:$0xff]  ;;  %v7090_v4 = vld [vmem:[#allocation48_spill] sm:$0xff] }
 0x356   :  { %3804 = vpow2.f32 %v3461_v3 }
 0x357   :  { %3806 = vpow2.f32 %v3462_v8  ;;  %v5221_v8 = vld [vmem:[%s6696_s1 + $0x6c] ss:$16 sps:$4 sm:$0xff]  }
 0x358   :  { %3808 = vtanh.f32 %v1359_v56  ;;  %v5235_v56 = vld [vmem:[%s6696_s1 + $0x8c] ss:$16 sps:$4 sm:$0xff]  }
 0x35e   :  { %v3801_v52 = vpop.eup %3800 }
 0x35f   :  { %v3803_v33 = vpop.eup %3802  ;;  %v1264_v32 = vmul.f32 %v3801_v52, %v3799_v9  ;;  %v5228_v9 = vld [vmem:[%s6696_s1 + $0x68] ss:$16 sps:$4 sm:$0xff]  }
 0x360   :  { %v3805_v34 = vpop.eup %3804  ;;  %v1364_v35 = vadd.f32 1.0, %v3803_v33  ;;  %v5242_v52 = vld [vmem:[%s6696_s1 + $0x88] ss:$16 sps:$4 sm:$0xff]   ;;  %v5249_v33 = vld [vmem:[%s6696_s1 + $0xac] ss:$16 sps:$4 sm:$0xff]  }
 0x361   :  { %v1370_v31 = vadd.f32 1.0, %v3805_v34  ;;  %v1265_v36 = vpack.c.bf16 %v1264_v32, %v1264_v32  ;;  %v3807_v39 = vpop.eup %3806  ;;  %v5256_v32 = vld [vmem:[%s6696_s1 + $0xa8] ss:$16 sps:$4 sm:$0xff]   ;;  %v5263_v34 = vld [vmem:[%s6696_s1 + $0xcc] ss:$16 sps:$4 sm:$0xff]  }
 0x362   :  { %3810 = vrcp.f32 %v1364_v35  ;;  %v3809_v40 = vpop.eup %3808  ;;  %v1377_v43 = vadd.f32 1.0, %v3807_v39  ;;  %v5270_v35 = vld [vmem:[%s6696_s1 + $0xc8] ss:$16 sps:$4 sm:$0xff]   ;;  %v5290_v39 = vld [vmem:[%s6697_s3 + $0x4] ss:$16 sps:$4 sm:$0xff]  }
 0x363   :  { %3812 = vrcp.f32 %v1370_v31  ;;  %1267 = vst [vmem:[#allocation2 + $0x4] sm:$0xf] %v1265_v36  ;;  %1419 = vmatmul.mubr.bf16.vlgmr.msra.gmra.mrb[24].mxu0 %v1265_v36  ;;  %1460 = vmatmul.mubr.bf16.vlgmr.msra.gmra.mrb[32].mxu1 %v1265_v36  ;;  %v5277_v31 = vld [vmem:[%s6696_s1 + $0xec] ss:$16 sps:$4 sm:$0xff]   ;;  %v5284_v36 = vld [vmem:[%s6696_s1 + $0xe8] ss:$16 sps:$4 sm:$0xff]  }
 0x364   :  { %1469 = vmatpush1.bf16.msra.mxu0 %v5130_v38  ;;  %1510 = vmatpush1.bf16.msra.mxu1 %v5136_v37  ;;  %3814 = vrcp.f32 %v1377_v43  ;;  %7092 = vst [vmem:[#allocation5_spill] sm:$0xff] %v5284_v36  ;;  %7093 = vst [vmem:[#allocation4_spill] sm:$0xff] %v5290_v39  ;;  %v5320_v43 = vld [vmem:[%s6697_s3 + $0x2c] ss:$16 sps:$4 sm:$0xff]  }
 0x365   :  { %1470 = vmatprep.subr.bf16.mxu0 %v7037_v7  ;;  %1511 = vmatprep.subr.bf16.mxu1 %v7038_v15  ;;  %7098 = vst [vmem:[#allocation10_spill] sm:$0xff] %v5320_v43 }
 0x366   :  { %1500 = vmatprep.mubr.bf16.mxu0 %v6985_v1  ;;  %1541 = vmatprep.mubr.bf16.mxu1 %v6985_v1 }
 0x368   :  { %1471 = vmatpush1.bf16.msra.mxu0 %v7039_v57  ;;  %1512 = vmatpush1.bf16.msra.mxu1 %v7040_v60 }
 0x369   :  { %1472 = vmatprep.subr.bf16.mxu0 %v7041_v58  ;;  %1513 = vmatprep.subr.bf16.mxu1 %v7042_v61  ;;  %v7080_v58 = vld [vmem:[#allocation37_spill] sm:$0xff]  ;;  %v7081_v61 = vld [vmem:[#allocation38_spill] sm:$0xff] }
 0x36c   :  { %v3811_v41 = vpop.eup %3810  ;;  %1473 = vmatpush1.bf16.msra.mxu0 %v7043_v53  ;;  %1514 = vmatpush1.bf16.msra.mxu1 %v7044_v20  ;;  %v7083_v53 = vld [vmem:[#allocation40_spill] sm:$0xff]  ;;  %v7084_v20 = vld [vmem:[#allocation41_spill] sm:$0xff] }
 0x36d   :  { %v3813_v7 = vpop.eup %3812  ;;  %v1381_v15 = vmul.f32 %v3811_v41, %v3809_v40  ;;  %1474 = vmatprep.subr.bf16.mxu0 %v7045_v49  ;;  %1515 = vmatprep.subr.bf16.mxu1 %v7046_v59  ;;  %v7085_v49 = vld [vmem:[#allocation42_spill] sm:$0xff]  ;;  %v7086_v59 = vld [vmem:[#allocation43_spill] sm:$0xff] }
 0x36e   :  { %v1380_v57 = vmul.f32 %v3813_v7, %v4942_v54  ;;  %v7087_v54 = vld [vmem:[#allocation44_spill] sm:$0xff]  ;;  %v3815_v2 = vpop.eup %3814  ;;  %v5302_v41 = vld [vmem:[%s6697_s3] ss:$16 sps:$4 sm:$0xff]  }
 0x36f   :  { %v5296_v40 = vld [vmem:[%s6697_s3 + $0xc] ss:$16 sps:$4 sm:$0xff]   ;;  %7095 = vst [vmem:[#allocation7_spill] sm:$0xff] %v5302_v41  ;;  %v5308_v7 = vld [vmem:[%s6697_s3 + $0x8] ss:$16 sps:$4 sm:$0xff]  }
 0x370   :  { %v5152_v60 = vadd.f32 %v1381_v15, %v1380_v57  ;;  %1475 = vmatpush1.bf16.msra.mxu0 %v7080_v58  ;;  %1516 = vmatpush1.bf16.msra.mxu1 %v7081_v61  ;;  %7094 = vst [vmem:[#allocation6_spill] sm:$0xff] %v5296_v40  ;;  %7096 = vst [vmem:[#allocation9_spill] sm:$0xff] %v5308_v7  ;;  %v5314_v15 = vld [vmem:[%s6697_s3 + $0x24] ss:$16 sps:$4 sm:$0xff]   ;;  %v5328_v57 = vld [vmem:[%s6697_s3 + $0x20] ss:$16 sps:$4 sm:$0xff]  }
 0x371   :  { %1476 = vmatprep.subr.bf16.mxu0 %v7082_v44  ;;  %1517 = vmatprep.subr.bf16.mxu1 %v7083_v53  ;;  %7097 = vst [vmem:[#allocation8_spill] sm:$0xff] %v5314_v15  ;;  %7099 = vst [vmem:[#allocation25_spill] sm:$0xff] %v5328_v57  ;;  %v5334_v58 = vld [vmem:[%s6697_s3 + $0x28] ss:$16 sps:$4 sm:$0xff]   ;;  %v5340_v61 = vld [vmem:[%s6697_s3 + $0x44] ss:$16 sps:$4 sm:$0xff]  }
 0x372   :  { %3816 = vtanh.f32 %v5152_v60  ;;  %7100 = vst [vmem:[#allocation26_spill] sm:$0xff] %v5334_v58  ;;  %7101 = vst [vmem:[#allocation27_spill] sm:$0xff] %v5340_v61  ;;  %v5346_v44 = vld [vmem:[%s6697_s3 + $0x4c] ss:$16 sps:$4 sm:$0xff]   ;;  %v5352_v53 = vld [vmem:[%s6697_s3 + $0x40] ss:$16 sps:$4 sm:$0xff]  }
 0x373   :  { %7102 = vst [vmem:[#allocation28_spill] sm:$0xff] %v5346_v44  ;;  %7103 = vst [vmem:[#allocation29_spill] sm:$0xff] %v5352_v53 }
 0x374   :  { %1477 = vmatpush1.bf16.msra.mxu0 %v7084_v20  ;;  %1518 = vmatpush1.bf16.msra.mxu1 %v7085_v49  ;;  %v5358_v20 = vld [vmem:[%s6697_s3 + $0x48] ss:$16 sps:$4 sm:$0xff]   ;;  %v5364_v49 = vld [vmem:[%s6697_s3 + $0x64] ss:$16 sps:$4 sm:$0xff]  }
 0x375   :  { %1478 = vmatprep.subr.bf16.mxu0 %v7086_v59  ;;  %1519 = vmatprep.subr.bf16.mxu1 %v7087_v54  ;;  %7104 = vst [vmem:[#allocation30_spill] sm:$0xff] %v5358_v20  ;;  %7105 = vst [vmem:[#allocation31_spill] sm:$0xff] %v5364_v49  ;;  %v5370_v59 = vld [vmem:[%s6697_s3 + $0x6c] ss:$16 sps:$4 sm:$0xff]   ;;  %v5376_v54 = vld [vmem:[%s6697_s3 + $0x60] ss:$16 sps:$4 sm:$0xff]  }
 0x376   :  { %7106 = vst [vmem:[#allocation32_spill] sm:$0xff] %v5370_v59  ;;  %7107 = vst [vmem:[#allocation33_spill] sm:$0xff] %v5376_v54 }
 0x378   :  { %1479 = vmatpush1.bf16.msra.mxu0 %v7088_v45  ;;  %1520 = vmatpush1.bf16.msra.mxu1 %v7089_v46  ;;  %v5382_v45 = vld [vmem:[%s6697_s3 + $0x68] ss:$16 sps:$4 sm:$0xff]   ;;  %v5388_v46 = vld [vmem:[%s6697_s3 + $0x84] ss:$16 sps:$4 sm:$0xff]  }
 0x379   :  { %1480 = vmatprep.subr.bf16.mxu0 %v7057_v50  ;;  %1521 = vmatprep.subr.bf16.mxu1 %v7090_v4  ;;  %v5177_v50 = vld [vmem:[%s6696_s1 + $0xc] ss:$16 sps:$4 sm:$0xff]   ;;  %7108 = vst [vmem:[#allocation34_spill] sm:$0xff] %v5382_v45  ;;  %7109 = vst [vmem:[#allocation35_spill] sm:$0xff] %v5388_v46 }
 0x37a   :  { %v5394_v4 = vld [vmem:[%s6697_s3 + $0x8c] ss:$16 sps:$4 sm:$0xff]  }
 0x37b   :  { %7110 = vst [vmem:[#allocation36_spill] sm:$0xff] %v5394_v4 }
 0x37c   :  { %v3817_v3 = vpop.eup %3816  ;;  %1481 = vmatpush1.bf16.msra.mxu0 %v7091_v14  ;;  %1522 = vmatpush1.bf16.msra.mxu1 %v7060_v62  ;;  %v5184_v62 = vld [vmem:[%s6696_s1 + $0x8] ss:$16 sps:$4 sm:$0xff]   ;;  %v5412_v14 = vld [vmem:[%s6697_s3 + $0xa4] ss:$16 sps:$4 sm:$0xff]  }
 0x37d   :  { %1482 = vmatprep.subr.bf16.mxu0 %v7061_v0  ;;  %1523 = vmatprep.subr.bf16.mxu1 %v7062_v12  ;;  %v1384_v5 = vmul.f32 %v3817_v3, %v3815_v2  ;;  %v5191_v0 = vld [vmem:[%s6696_s1 + $0x2c] ss:$16 sps:$4 sm:$0xff]   ;;  %v5200_v12 = vld [vmem:[%s6696_s1 + $0x28] ss:$16 sps:$4 sm:$0xff]   ;;  %v5400_v2 = vld [vmem:[%s6697_s3 + $0x80] ss:$16 sps:$4 sm:$0xff]  }
 0x37e   :  { %7111 = vst [vmem:[#allocation47_spill] sm:$0xff] %v5400_v2  ;;  %v5406_v3 = vld [vmem:[%s6697_s3 + $0x88] ss:$16 sps:$4 sm:$0xff]   ;;  %7113 = vst [vmem:[#allocation51_spill] sm:$0xff] %v5412_v14 }
 0x37f   :  { %v1385_v6 = vpack.c.bf16 %v1384_v5, %v1384_v5  ;;  %7112 = vst [vmem:[#allocation50_spill] sm:$0xff] %v5406_v3  ;;  %v5418_v5 = vld [vmem:[%s6697_s3 + $0xac] ss:$16 sps:$4 sm:$0xff]  }
 0x380   :  { %1483 = vmatpush1.bf16.msra.mxu0 %v7063_v48  ;;  %1524 = vmatpush1.bf16.msra.mxu1 %v7064_v63  ;;  %v5207_v48 = vld [vmem:[%s6696_s1 + $0x4c] ss:$16 sps:$4 sm:$0xff]   ;;  %v5214_v63 = vld [vmem:[%s6696_s1 + $0x48] ss:$16 sps:$4 sm:$0xff]   ;;  %7114 = vst [vmem:[#allocation52_spill] sm:$0xff] %v5418_v5 }
 0x381   :  { %1588 = vmatprep.subr.bf16.mxu0 %v4966_v51  ;;  %1629 = vmatprep.subr.bf16.mxu1 %v5177_v50 }
 0x383   :  { %1501 = vmatmul.mubr.bf16.vlgmr.msra.gmra.mrb[28].mxu0 %v1385_v6  ;;  %1542 = vmatmul.mubr.bf16.vlgmr.msra.gmra.mrb[36].mxu1 %v1385_v6 }
 0x384   :  { %1589 = vmatpush1.bf16.msra.mxu0 %v4973_v16  ;;  %1630 = vmatpush1.bf16.msra.mxu1 %v5184_v62 }
 0x385   :  { %1590 = vmatprep.subr.bf16.mxu0 %v4980_v17  ;;  %1631 = vmatprep.subr.bf16.mxu1 %v5191_v0 }
 0x386   :  { %1620 = vmatprep.mubr.bf16.mxu0 %v6985_v1  ;;  %1661 = vmatprep.mubr.bf16.mxu1 %v6985_v1 }
 0x388   :  { %1591 = vmatpush1.bf16.msra.mxu0 %v4989_v47  ;;  %1632 = vmatpush1.bf16.msra.mxu1 %v5200_v12 }
 0x389   :  { %1592 = vmatprep.subr.bf16.mxu0 %v4996_v18  ;;  %1633 = vmatprep.subr.bf16.mxu1 %v5207_v48 }
 0x38c   :  { %1593 = vmatpush1.bf16.msra.mxu0 %v5003_v19  ;;  %1634 = vmatpush1.bf16.msra.mxu1 %v5214_v63 }
 0x38d   :  { %1594 = vmatprep.subr.bf16.mxu0 %v5010_v21  ;;  %1635 = vmatprep.subr.bf16.mxu1 %v5221_v8 }
 0x390   :  { %1595 = vmatpush1.bf16.msra.mxu0 %v5017_v22  ;;  %1636 = vmatpush1.bf16.msra.mxu1 %v5228_v9 }
 0x391   :  { %1596 = vmatprep.subr.bf16.mxu0 %v5024_v23  ;;  %1637 = vmatprep.subr.bf16.mxu1 %v5235_v56 }
 0x394   :  { %1597 = vmatpush1.bf16.msra.mxu0 %v5031_v24  ;;  %1638 = vmatpush1.bf16.msra.mxu1 %v5242_v52 }
 0x395   :  { %1598 = vmatprep.subr.bf16.mxu0 %v5038_v25  ;;  %1639 = vmatprep.subr.bf16.mxu1 %v5249_v33 }
 0x398   :  { %1599 = vmatpush1.bf16.msra.mxu0 %v5045_v26  ;;  %1640 = vmatpush1.bf16.msra.mxu1 %v5256_v32 }
 0x399   :  { %1600 = vmatprep.subr.bf16.mxu0 %v5052_v27  ;;  %1641 = vmatprep.subr.bf16.mxu1 %v5263_v34 }
 0x39c   :  { %1601 = vmatpush1.bf16.msra.mxu0 %v5059_v28  ;;  %1642 = vmatpush1.bf16.msra.mxu1 %v5270_v35 }
 0x39d   :  { %1602 = vmatprep.subr.bf16.mxu0 %v5066_v29  ;;  %1643 = vmatprep.subr.bf16.mxu1 %v5277_v31 }
 0x3a0   :  { %1603 = vmatpush1.bf16.msra.mxu0 %v5073_v30  ;;  %1644 = vmatpush1.bf16.msra.mxu1 %v5284_v36 }
 0x3a1   :  { %1699 = vmatprep.subr.bf16.mxu0 %v5290_v39  ;;  %1740 = vmatprep.subr.bf16.mxu1 %v5296_v40 }
 0x3a3   :  { %1621 = vmatmul.mubr.bf16.vlgmr.msra.gmra.mrb[32].mxu0 %v1385_v6  ;;  %1662 = vmatmul.mubr.bf16.vlgmr.msra.gmra.mrb[40].mxu1 %v1385_v6  ;;  %v5424_v6 = vld [vmem:[%s6697_s3 + $0xa0] ss:$16 sps:$4 sm:$0xff]  }
 0x3a4   :  { %1700 = vmatpush1.bf16.msra.mxu0 %v5302_v41  ;;  %1741 = vmatpush1.bf16.msra.mxu1 %v5308_v7  ;;  %7115 = vst [vmem:[#allocation53_spill] sm:$0xff] %v5424_v6 }
 0x3a5   :  { %1701 = vmatprep.subr.bf16.mxu0 %v5314_v15  ;;  %1742 = vmatprep.subr.bf16.mxu1 %v5320_v43 }
 0x3a6   :  { %1731 = vmatprep.mubr.bf16.mxu0 %v6985_v1  ;;  %1772 = vmatprep.mubr.bf16.mxu1 %v6985_v1 }
 0x3a8   :  { %1702 = vmatpush1.bf16.msra.mxu0 %v5328_v57  ;;  %1743 = vmatpush1.bf16.msra.mxu1 %v5334_v58 }
 0x3a9   :  { %1703 = vmatprep.subr.bf16.mxu0 %v5340_v61  ;;  %1744 = vmatprep.subr.bf16.mxu1 %v5346_v44 }
 0x3ac   :  { %1704 = vmatpush1.bf16.msra.mxu0 %v5352_v53  ;;  %1745 = vmatpush1.bf16.msra.mxu1 %v5358_v20 }
 0x3ad   :  { %1705 = vmatprep.subr.bf16.mxu0 %v5364_v49  ;;  %1746 = vmatprep.subr.bf16.mxu1 %v5370_v59 }
 0x3b0   :  { %1706 = vmatpush1.bf16.msra.mxu0 %v5376_v54  ;;  %1747 = vmatpush1.bf16.msra.mxu1 %v5382_v45 }
 0x3b1   :  { %1707 = vmatprep.subr.bf16.mxu0 %v5388_v46  ;;  %1748 = vmatprep.subr.bf16.mxu1 %v5394_v4 }
 0x3b4   :  { %1708 = vmatpush1.bf16.msra.mxu0 %v5400_v2  ;;  %1749 = vmatpush1.bf16.msra.mxu1 %v5406_v3  ;;  %v5430_v3 = vld [vmem:[%s6697_s3 + $0xa8] ss:$16 sps:$4 sm:$0xff]  }
 0x3b5   :  { %1709 = vmatprep.subr.bf16.mxu0 %v5412_v14  ;;  %1750 = vmatprep.subr.bf16.mxu1 %v5418_v5  ;;  %7116 = vst [vmem:[#allocation54_spill] sm:$0xff] %v5430_v3  ;;  %v5436_v14 = vld [vmem:[%s6697_s3 + $0xc4] ss:$16 sps:$4 sm:$0xff]   ;;  %v5442_v5 = vld [vmem:[%s6697_s3 + $0xcc] ss:$16 sps:$4 sm:$0xff]  }
 0x3b6   :  { %7117 = vst [vmem:[#allocation3_spill] sm:$0xff] %v5436_v14  ;;  %7118 = vst [vmem:[#allocation11_spill] sm:$0xff] %v5442_v5 }
 0x3b8   :  { %1710 = vmatpush1.bf16.msra.mxu0 %v5424_v6  ;;  %1751 = vmatpush1.bf16.msra.mxu1 %v5430_v3  ;;  %v5448_v6 = vld [vmem:[%s6697_s3 + $0xc0] ss:$16 sps:$4 sm:$0xff]   ;;  %v5454_v3 = vld [vmem:[%s6697_s3 + $0xc8] ss:$16 sps:$4 sm:$0xff]  }
 0x3b9   :  { %1711 = vmatprep.subr.bf16.mxu0 %v5436_v14  ;;  %1752 = vmatprep.subr.bf16.mxu1 %v5442_v5  ;;  %7119 = vst [vmem:[#allocation13_spill] sm:$0xff] %v5448_v6  ;;  %7120 = vst [vmem:[#allocation12_spill] sm:$0xff] %v5454_v3  ;;  %v5460_v14 = vld [vmem:[%s6697_s3 + $0xe4] ss:$16 sps:$4 sm:$0xff]   ;;  %v5466_v5 = vld [vmem:[%s6697_s3 + $0xec] ss:$16 sps:$4 sm:$0xff]  }
 0x3ba   :  { %7121 = vst [vmem:[#allocation14_spill] sm:$0xff] %v5460_v14  ;;  %7122 = vst [vmem:[#allocation15_spill] sm:$0xff] %v5466_v5 }
 0x3bc   :  { %1712 = vmatpush1.bf16.msra.mxu0 %v5448_v6  ;;  %1753 = vmatpush1.bf16.msra.mxu1 %v5454_v3  ;;  %v5472_v6 = vld [vmem:[%s6697_s3 + $0xe0] ss:$16 sps:$4 sm:$0xff]   ;;  %v5478_v3 = vld [vmem:[%s6697_s3 + $0xe8] ss:$16 sps:$4 sm:$0xff]  }
 0x3bd   :  { %1713 = vmatprep.subr.bf16.mxu0 %v5460_v14  ;;  %1754 = vmatprep.subr.bf16.mxu1 %v5466_v5  ;;  %7123 = vst [vmem:[#allocation17_spill] sm:$0xff] %v5472_v6  ;;  %7124 = vst [vmem:[#allocation16_spill] sm:$0xff] %v5478_v3  ;;  %v5484_v14 = vld [vmem:[%s6698_s2 + $0x4] ss:$16 sps:$4 sm:$0xff]   ;;  %v5490_v5 = vld [vmem:[%s6698_s2 + $0xc] ss:$16 sps:$4 sm:$0xff]  }
 0x3be   :  { %7125 = vst [vmem:[#allocation18_spill] sm:$0xff] %v5484_v14  ;;  %7126 = vst [vmem:[#allocation19_spill] sm:$0xff] %v5490_v5 }
 0x3c0   :  { %1714 = vmatpush1.bf16.msra.mxu0 %v5472_v6  ;;  %1755 = vmatpush1.bf16.msra.mxu1 %v5478_v3 }
 0x3c1   :  { %1781 = vmatprep.subr.bf16.mxu0 %v5484_v14  ;;  %1822 = vmatprep.subr.bf16.mxu1 %v5490_v5 }
 0x436   :  { %v1420_v6 = vpop.f32.mrb[24].mxu0  ;;  %v1461_v2 = vpop.f32.mrb[32].mxu1 }
 0x437   :  { %v1422_v4 = vpop.f32.mrb[25].mxu0  ;;  %v1463_v46 = vpop.f32.mrb[33].mxu1 }
 0x438   :  { %v1424_v45 = vpop.f32.mrb[26].mxu0  ;;  %v1465_v3 = vpop.f32.mrb[34].mxu1 }
 0x439   :  { %v1425_v54 = vpop.f32.mrb[27].mxu0  ;;  %v1466_v59 = vpop.f32.mrb[35].mxu1 }
 0x456   :  { %v1502_v49 = vpop.f32.mrb[28].mxu0  ;;  %v1543_v20 = vpop.f32.mrb[36].mxu1 }
 0x457   :  { %v1503_v53 = vadd.f32 %v1502_v49, %v1420_v6  ;;  %v1544_v44 = vadd.f32 %v1543_v20, %v1461_v2  ;;  %v1504_v14 = vpop.f32.mrb[29].mxu0  ;;  %v1545_v61 = vpop.f32.mrb[37].mxu1 }
 0x458   :  { %v1505_v58 = vadd.f32 %v1504_v14, %v1422_v4  ;;  %v1546_v57 = vadd.f32 %v1545_v61, %v1463_v46  ;;  %v1506_v43 = vpop.f32.mrb[30].mxu0  ;;  %v1547_v15 = vpop.f32.mrb[38].mxu1 }
 0x459   :  { %v1550_v5 = vadd.f32 %v1503_v53, %v4906_v13  ;;  %v1507_v7 = vpop.f32.mrb[31].mxu0  ;;  %v1548_v41 = vpop.f32.mrb[39].mxu1  ;;  %v1552_v20 = vadd.f32 %v1544_v44, %v4915_v10 }
 0x45a   :  { %v1551_v40 = vadd.f32 %v1505_v58, %v4908_v55  ;;  %v1553_v59 = vadd.f32 %v1546_v57, %v4912_v11  ;;  %v3466_v41 = vld [vmem:[%s6699_s0 + $0x30] sm:$0xff] }
 0x45b   :  { %v3463_v45 = vmul.f32 -1.442695, %v1550_v5  ;;  %v1584_v43 = vunpack.c.l.bf16 %v3466_v41  ;;  %v1585_v57 = vunpack.c.h.bf16 %v3466_v41 }
 0x45c   :  { %v3464_v3 = vmul.f32 -1.442695, %v1551_v40  ;;  %v3465_v49 = vmul.f32 -1.442695, %v1553_v59 }
 0x45d   :  { %3818 = vpow2.f32 %v3463_v45  ;;  %v3467_v45 = vld [vmem:[%s6699_s0 + $0x38] sm:$0xff] }
 0x45e   :  { %3820 = vpow2.f32 %v3464_v3 }
 0x45f   :  { %3822 = vpow2.f32 %v3465_v49 }
 0x460   :  { %3824 = vtanh.f32 %v1552_v20 }
 0x467   :  { %v3819_v54 = vpop.eup %3818 }
 0x468   :  { %v3821_v4 = vpop.eup %3820  ;;  %v1557_v61 = vadd.f32 1.0, %v3819_v54 }
 0x469   :  { %v1563_v15 = vadd.f32 1.0, %v3821_v4  ;;  %v3823_v40 = vpop.eup %3822 }
 0x46a   :  { %3826 = vrcp.f32 %v1557_v61  ;;  %v3825_v7 = vpop.eup %3824  ;;  %v1570_v44 = vadd.f32 1.0, %v3823_v40 }
 0x46b   :  { %3828 = vrcp.f32 %v1563_v15 }
 0x46c   :  { %3830 = vrcp.f32 %v1570_v44 }
 0x474   :  { %v3827_v58 = vpop.eup %3826 }
 0x475   :  { %v3829_v53 = vpop.eup %3828  ;;  %v1574_v46 = vmul.f32 %v3827_v58, %v3825_v7 }
 0x476   :  { %v1573_v2 = vmul.f32 %v3829_v53, %v5124_v42  ;;  %v1622_v14 = vpop.f32.mrb[32].mxu0  ;;  %v1663_v5 = vpop.f32.mrb[40].mxu1  ;;  %v1587_v42 = vunpack.c.h.bf16 %v3467_v45 }
 0x477   :  { %v1670_v6 = vadd.f32 %v1622_v14, %v1584_v43  ;;  %v1624_v3 = vpop.f32.mrb[33].mxu0  ;;  %v1665_v59 = vpop.f32.mrb[41].mxu1  ;;  %v1586_v43 = vunpack.c.l.bf16 %v3467_v45  ;;  %v5518_v45 = vld [vmem:[%s6698_s2 + $0x2c] ss:$16 sps:$4 sm:$0xff]  }
 0x478   :  { %v5504_v49 = vadd.f32 %v1574_v46, %v1573_v2  ;;  %v1671_v20 = vadd.f32 %v1624_v3, %v1585_v57  ;;  %v1626_v54 = vpop.f32.mrb[34].mxu0  ;;  %v1667_v4 = vpop.f32.mrb[42].mxu1  ;;  %v1673_v7 = vadd.f32 %v1665_v59, %v1587_v42  ;;  %v5526_v59 = vld [vmem:[%s6698_s2 + $0x20] ss:$16 sps:$4 sm:$0xff]  }
 0x479   :  { %v3468_v61 = vmul.f32 -1.442695, %v1670_v6  ;;  %v1627_v15 = vpop.f32.mrb[35].mxu0  ;;  %v1668_v41 = vpop.f32.mrb[43].mxu1  ;;  %v1672_v14 = vadd.f32 %v1663_v5, %v1586_v43  ;;  %v5512_v5 = vld [vmem:[%s6698_s2 + $0x24] ss:$16 sps:$4 sm:$0xff]  }
 0x47a   :  { %v3469_v40 = vmul.f32 -1.442695, %v1671_v20  ;;  %3832 = vtanh.f32 %v5504_v49  ;;  %v3470_v58 = vmul.f32 -1.442695, %v1673_v7  ;;  %v3831_v53 = vpop.eup %3830  ;;  %v5532_v20 = vld [vmem:[%s6698_s2 + $0x28] ss:$16 sps:$4 sm:$0xff]  }
 0x47b   :  { %3834 = vpow2.f32 %v3468_v61  ;;  %v5538_v4 = vld [vmem:[%s6698_s2 + $0x44] ss:$16 sps:$4 sm:$0xff]   ;;  %v5544_v61 = vld [vmem:[%s6698_s2 + $0x4c] ss:$16 sps:$4 sm:$0xff]   ;;  %v5550_v42 = vld [vmem:[%s6698_s2 + $0x40] ss:$16 sps:$4 sm:$0xff]  }
 0x47c   :  { %3836 = vpow2.f32 %v3469_v40  ;;  %v5556_v7 = vld [vmem:[%s6698_s2 + $0x48] ss:$16 sps:$4 sm:$0xff]  }
 0x47d   :  { %3838 = vpow2.f32 %v3470_v58 }
 0x47e   :  { %3840 = vtanh.f32 %v1672_v14  ;;  %v5562_v14 = vld [vmem:[%s6698_s2 + $0x64] ss:$16 sps:$4 sm:$0xff]  }
 0x484   :  { %v3833_v46 = vpop.eup %3832 }
 0x485   :  { %v3835_v2 = vpop.eup %3834  ;;  %v1577_v57 = vmul.f32 %v3833_v46, %v3831_v53  ;;  %v5568_v46 = vld [vmem:[%s6698_s2 + $0x6c] ss:$16 sps:$4 sm:$0xff]  }
 0x486   :  { %v3837_v3 = vpop.eup %3836  ;;  %v1677_v54 = vadd.f32 1.0, %v3835_v2 }
 0x487   :  { %v1683_v44 = vadd.f32 1.0, %v3837_v3  ;;  %v1578_v6 = vpack.c.bf16 %v1577_v57, %v1577_v57  ;;  %v3839_v15 = vpop.eup %3838  ;;  %v5577_v3 = vld [vmem:[%s6698_s2 + $0x60] ss:$16 sps:$4 sm:$0xff]  }
 0x488   :  { %3842 = vrcp.f32 %v1677_v54  ;;  %v3841_v41 = vpop.eup %3840  ;;  %v1690_v53 = vadd.f32 1.0, %v3839_v15  ;;  %v5583_v54 = vld [vmem:[%s6698_s2 + $0x68] ss:$16 sps:$4 sm:$0xff]  }
 0x489   :  { %3844 = vrcp.f32 %v1683_v44  ;;  %1580 = vst [vmem:[#allocation2 + $0x8] sm:$0xf] %v1578_v6  ;;  %1732 = vmatmul.mubr.bf16.vlgmr.msra.gmra.mrb[36].mxu0 %v1578_v6  ;;  %1773 = vmatmul.mubr.bf16.vlgmr.msra.gmra.mrb[44].mxu1 %v1578_v6  ;;  %v5595_v44 = vld [vmem:[%s6698_s2 + $0x8c] ss:$16 sps:$4 sm:$0xff]   ;;  %v5602_v6 = vld [vmem:[%s6698_s2 + $0x80] ss:$16 sps:$4 sm:$0xff]  }
 0x48a   :  { %1782 = vmatpush1.bf16.msra.mxu0 %v5130_v38  ;;  %1823 = vmatpush1.bf16.msra.mxu1 %v5136_v37  ;;  %3846 = vrcp.f32 %v1690_v53  ;;  %v5608_v15 = vld [vmem:[%s6698_s2 + $0x88] ss:$16 sps:$4 sm:$0xff]   ;;  %v5638_v53 = vld [vmem:[%s6698_s2 + $0xc4] ss:$16 sps:$4 sm:$0xff]  }
 0x48b   :  { %1783 = vmatprep.subr.bf16.mxu0 %v5512_v5  ;;  %1824 = vmatprep.subr.bf16.mxu1 %v5518_v45  ;;  %7127 = vst [vmem:[#allocation21_spill] sm:$0xff] %v5608_v15  ;;  %7132 = vst [vmem:[#allocation37_spill] sm:$0xff] %v5638_v53 }
 0x48c   :  { %1813 = vmatprep.mubr.bf16.mxu0 %v6985_v1  ;;  %1854 = vmatprep.mubr.bf16.mxu1 %v6985_v1 }
 0x48e   :  { %1784 = vmatpush1.bf16.msra.mxu0 %v5526_v59  ;;  %1825 = vmatpush1.bf16.msra.mxu1 %v5532_v20 }
 0x48f   :  { %1785 = vmatprep.subr.bf16.mxu0 %v5538_v4  ;;  %1826 = vmatprep.subr.bf16.mxu1 %v5544_v61 }
 0x492   :  { %v3843_v40 = vpop.eup %3842  ;;  %1786 = vmatpush1.bf16.msra.mxu0 %v5550_v42  ;;  %1827 = vmatpush1.bf16.msra.mxu1 %v5556_v7 }
 0x493   :  { %v3845_v43 = vpop.eup %3844  ;;  %v1694_v58 = vmul.f32 %v3843_v40, %v3841_v41  ;;  %1787 = vmatprep.subr.bf16.mxu0 %v5562_v14  ;;  %1828 = vmatprep.subr.bf16.mxu1 %v5568_v46  ;;  %v5614_v41 = vld [vmem:[%s6698_s2 + $0xa4] ss:$16 sps:$4 sm:$0xff]   ;;  %v5620_v40 = vld [vmem:[%s6698_s2 + $0xac] ss:$16 sps:$4 sm:$0xff]  }
 0x494   :  { %v1693_v2 = vmul.f32 %v3845_v43, %v5152_v60  ;;  %v5589_v60 = vld [vmem:[%s6698_s2 + $0x84] ss:$16 sps:$4 sm:$0xff]   ;;  %7128 = vst [vmem:[#allocation20_spill] sm:$0xff] %v5614_v41  ;;  %7129 = vst [vmem:[#allocation22_spill] sm:$0xff] %v5620_v40  ;;  %v5626_v43 = vld [vmem:[%s6698_s2 + $0xa0] ss:$16 sps:$4 sm:$0xff]  }
 0x495   :  { %7130 = vst [vmem:[#allocation23_spill] sm:$0xff] %v5626_v43 }
 0x496   :  { %v5572_v57 = vadd.f32 %v1694_v58, %v1693_v2  ;;  %1788 = vmatpush1.bf16.msra.mxu0 %v5577_v3  ;;  %1829 = vmatpush1.bf16.msra.mxu1 %v5583_v54  ;;  %v5632_v58 = vld [vmem:[%s6698_s2 + $0xa8] ss:$16 sps:$4 sm:$0xff]   ;;  %v5644_v2 = vld [vmem:[%s6698_s2 + $0xcc] ss:$16 sps:$4 sm:$0xff]  }
 0x497   :  { %1789 = vmatprep.subr.bf16.mxu0 %v5589_v60  ;;  %1830 = vmatprep.subr.bf16.mxu1 %v5595_v44  ;;  %7131 = vst [vmem:[#allocation24_spill] sm:$0xff] %v5632_v58  ;;  %7133 = vst [vmem:[#allocation38_spill] sm:$0xff] %v5644_v2 }
 0x498   :  { %3848 = vtanh.f32 %v5572_v57 }
 0x49a   :  { %1790 = vmatpush1.bf16.msra.mxu0 %v5602_v6  ;;  %1831 = vmatpush1.bf16.msra.mxu1 %v5608_v15 }
 0x49b   :  { %1791 = vmatprep.subr.bf16.mxu0 %v5614_v41  ;;  %1832 = vmatprep.subr.bf16.mxu1 %v5620_v40  ;;  %v5668_v41 = vld [vmem:[%s6698_s2 + $0xec] ss:$16 sps:$4 sm:$0xff]  }
 0x49e   :  { %1792 = vmatpush1.bf16.msra.mxu0 %v5626_v43  ;;  %1833 = vmatpush1.bf16.msra.mxu1 %v5632_v58  ;;  %v3847_v43 = vpop.eup %3846  ;;  %v5650_v58 = vld [vmem:[%s6698_s2 + $0xc0] ss:$16 sps:$4 sm:$0xff]  }
 0x49f   :  { %1793 = vmatprep.subr.bf16.mxu0 %v5638_v53  ;;  %1834 = vmatprep.subr.bf16.mxu1 %v5644_v2  ;;  %7134 = vst [vmem:[#allocation39_spill] sm:$0xff] %v5650_v58  ;;  %v5656_v53 = vld [vmem:[%s6698_s2 + $0xc8] ss:$16 sps:$4 sm:$0xff]   ;;  %v5662_v2 = vld [vmem:[%s6698_s2 + $0xe4] ss:$16 sps:$4 sm:$0xff]  }
 0x4a0   :  { %7135 = vst [vmem:[#allocation40_spill] sm:$0xff] %v5656_v53  ;;  %7136 = vst [vmem:[#allocation41_spill] sm:$0xff] %v5662_v2 }
 0x4a2   :  { %v3849_v40 = vpop.eup %3848  ;;  %1794 = vmatpush1.bf16.msra.mxu0 %v5650_v58  ;;  %1835 = vmatpush1.bf16.msra.mxu1 %v5656_v53  ;;  %v5674_v53 = vld [vmem:[%s6698_s2 + $0xe0] ss:$16 sps:$4 sm:$0xff]  }
 0x4a3   :  { %1795 = vmatprep.subr.bf16.mxu0 %v5662_v2  ;;  %1836 = vmatprep.subr.bf16.mxu1 %v5668_v41  ;;  %v1697_v58 = vmul.f32 %v3849_v40, %v3847_v43  ;;  %v5680_v2 = vld [vmem:[%s6698_s2 + $0xe8] ss:$16 sps:$4 sm:$0xff]   ;;  %v7154_v40 = vld [vmem:[#allocation47_spill] sm:$0xff] }
 0x4a4   :  { %v7155_v43 = vld [vmem:[#allocation50_spill] sm:$0xff] }
 0x4a5   :  { %v1698_v15 = vpack.c.bf16 %v1697_v58, %v1697_v58  ;;  %v7156_v58 = vld [vmem:[#allocation51_spill] sm:$0xff] }
 0x4a6   :  { %1796 = vmatpush1.bf16.msra.mxu0 %v5674_v53  ;;  %1837 = vmatpush1.bf16.msra.mxu1 %v5680_v2 }
 0x4a7   :  { %1901 = vmatprep.subr.bf16.mxu0 %v4966_v51  ;;  %1942 = vmatprep.subr.bf16.mxu1 %v5177_v50  ;;  %v7137_v51 = vld [vmem:[#allocation6_spill] sm:$0xff] }
 0x4a9   :  { %1814 = vmatmul.mubr.bf16.vlgmr.msra.gmra.mrb[40].mxu0 %v1698_v15  ;;  %1855 = vmatmul.mubr.bf16.vlgmr.msra.gmra.mrb[48].mxu1 %v1698_v15 }
 0x4aa   :  { %1902 = vmatpush1.bf16.msra.mxu0 %v4973_v16  ;;  %1943 = vmatpush1.bf16.msra.mxu1 %v5184_v62  ;;  %v7138_v16 = vld [vmem:[#allocation7_spill] sm:$0xff] }
 0x4ab   :  { %1903 = vmatprep.subr.bf16.mxu0 %v4980_v17  ;;  %1944 = vmatprep.subr.bf16.mxu1 %v5191_v0  ;;  %v7139_v17 = vld [vmem:[#allocation9_spill] sm:$0xff] }
 0x4ac   :  { %1933 = vmatprep.mubr.bf16.mxu0 %v6985_v1  ;;  %1974 = vmatprep.mubr.bf16.mxu1 %v6985_v1 }
 0x4ae   :  { %1904 = vmatpush1.bf16.msra.mxu0 %v4989_v47  ;;  %1945 = vmatpush1.bf16.msra.mxu1 %v5200_v12  ;;  %v7140_v47 = vld [vmem:[#allocation8_spill] sm:$0xff] }
 0x4af   :  { %1905 = vmatprep.subr.bf16.mxu0 %v4996_v18  ;;  %1946 = vmatprep.subr.bf16.mxu1 %v5207_v48  ;;  %v7141_v18 = vld [vmem:[#allocation10_spill] sm:$0xff] }
 0x4b2   :  { %1906 = vmatpush1.bf16.msra.mxu0 %v5003_v19  ;;  %1947 = vmatpush1.bf16.msra.mxu1 %v5214_v63  ;;  %v7142_v19 = vld [vmem:[#allocation25_spill] sm:$0xff] }
 0x4b3   :  { %1907 = vmatprep.subr.bf16.mxu0 %v5010_v21  ;;  %1948 = vmatprep.subr.bf16.mxu1 %v5221_v8  ;;  %v7143_v21 = vld [vmem:[#allocation26_spill] sm:$0xff] }
 0x4b6   :  { %1908 = vmatpush1.bf16.msra.mxu0 %v5017_v22  ;;  %1949 = vmatpush1.bf16.msra.mxu1 %v5228_v9  ;;  %v7144_v22 = vld [vmem:[#allocation27_spill] sm:$0xff] }
 0x4b7   :  { %1909 = vmatprep.subr.bf16.mxu0 %v5024_v23  ;;  %1950 = vmatprep.subr.bf16.mxu1 %v5235_v56  ;;  %v7145_v23 = vld [vmem:[#allocation28_spill] sm:$0xff] }
 0x4ba   :  { %1910 = vmatpush1.bf16.msra.mxu0 %v5031_v24  ;;  %1951 = vmatpush1.bf16.msra.mxu1 %v5242_v52  ;;  %v7146_v24 = vld [vmem:[#allocation29_spill] sm:$0xff] }
 0x4bb   :  { %1911 = vmatprep.subr.bf16.mxu0 %v5038_v25  ;;  %1952 = vmatprep.subr.bf16.mxu1 %v5249_v33  ;;  %v7147_v25 = vld [vmem:[#allocation30_spill] sm:$0xff] }
 0x4be   :  { %1912 = vmatpush1.bf16.msra.mxu0 %v5045_v26  ;;  %1953 = vmatpush1.bf16.msra.mxu1 %v5256_v32  ;;  %v7148_v26 = vld [vmem:[#allocation31_spill] sm:$0xff] }
 0x4bf   :  { %1913 = vmatprep.subr.bf16.mxu0 %v5052_v27  ;;  %1954 = vmatprep.subr.bf16.mxu1 %v5263_v34  ;;  %v7149_v27 = vld [vmem:[#allocation32_spill] sm:$0xff] }
 0x4c2   :  { %1914 = vmatpush1.bf16.msra.mxu0 %v5059_v28  ;;  %1955 = vmatpush1.bf16.msra.mxu1 %v5270_v35  ;;  %v7150_v28 = vld [vmem:[#allocation33_spill] sm:$0xff] }
 0x4c3   :  { %1915 = vmatprep.subr.bf16.mxu0 %v5066_v29  ;;  %1956 = vmatprep.subr.bf16.mxu1 %v5277_v31  ;;  %v7151_v29 = vld [vmem:[#allocation34_spill] sm:$0xff] }
 0x4c6   :  { %1916 = vmatpush1.bf16.msra.mxu0 %v5073_v30  ;;  %1957 = vmatpush1.bf16.msra.mxu1 %v5284_v36  ;;  %v7152_v30 = vld [vmem:[#allocation35_spill] sm:$0xff] }
 0x4c7   :  { %2012 = vmatprep.subr.bf16.mxu0 %v5290_v39  ;;  %2053 = vmatprep.subr.bf16.mxu1 %v7137_v51 }
 0x4c9   :  { %1934 = vmatmul.mubr.bf16.vlgmr.msra.gmra.mrb[44].mxu0 %v1698_v15  ;;  %1975 = vmatmul.mubr.bf16.vlgmr.msra.gmra.mrb[52].mxu1 %v1698_v15  ;;  %v7153_v15 = vld [vmem:[#allocation36_spill] sm:$0xff] }
 0x4ca   :  { %2013 = vmatpush1.bf16.msra.mxu0 %v7138_v16  ;;  %2054 = vmatpush1.bf16.msra.mxu1 %v7139_v17 }
 0x4cb   :  { %2014 = vmatprep.subr.bf16.mxu0 %v7140_v47  ;;  %2055 = vmatprep.subr.bf16.mxu1 %v7141_v18 }
 0x4cc   :  { %2044 = vmatprep.mubr.bf16.mxu0 %v6985_v1  ;;  %2085 = vmatprep.mubr.bf16.mxu1 %v6985_v1 }
 0x4ce   :  { %2015 = vmatpush1.bf16.msra.mxu0 %v7142_v19  ;;  %2056 = vmatpush1.bf16.msra.mxu1 %v7143_v21 }
 0x4cf   :  { %2016 = vmatprep.subr.bf16.mxu0 %v7144_v22  ;;  %2057 = vmatprep.subr.bf16.mxu1 %v7145_v23 }
 0x4d2   :  { %2017 = vmatpush1.bf16.msra.mxu0 %v7146_v24  ;;  %2058 = vmatpush1.bf16.msra.mxu1 %v7147_v25  ;;  %v7157_v24 = vld [vmem:[#allocation52_spill] sm:$0xff]  ;;  %v7158_v25 = vld [vmem:[#allocation53_spill] sm:$0xff] }
 0x4d3   :  { %2018 = vmatprep.subr.bf16.mxu0 %v7148_v26  ;;  %2059 = vmatprep.subr.bf16.mxu1 %v7149_v27  ;;  %v7159_v26 = vld [vmem:[#allocation54_spill] sm:$0xff]  ;;  %v7160_v27 = vld [vmem:[#allocation3_spill] sm:$0xff] }
 0x4d6   :  { %2019 = vmatpush1.bf16.msra.mxu0 %v7150_v28  ;;  %2060 = vmatpush1.bf16.msra.mxu1 %v7151_v29  ;;  %v7161_v28 = vld [vmem:[#allocation11_spill] sm:$0xff]  ;;  %v7162_v29 = vld [vmem:[#allocation13_spill] sm:$0xff] }
 0x4d7   :  { %2020 = vmatprep.subr.bf16.mxu0 %v7152_v30  ;;  %2061 = vmatprep.subr.bf16.mxu1 %v7153_v15  ;;  %v7163_v30 = vld [vmem:[#allocation12_spill] sm:$0xff]  ;;  %v7164_v15 = vld [vmem:[#allocation14_spill] sm:$0xff] }
 0x4da   :  { %2021 = vmatpush1.bf16.msra.mxu0 %v7154_v40  ;;  %2062 = vmatpush1.bf16.msra.mxu1 %v7155_v43  ;;  %v7165_v40 = vld [vmem:[#allocation15_spill] sm:$0xff]  ;;  %v7166_v43 = vld [vmem:[#allocation17_spill] sm:$0xff] }
 0x4db   :  { %2022 = vmatprep.subr.bf16.mxu0 %v7156_v58  ;;  %2063 = vmatprep.subr.bf16.mxu1 %v7157_v24  ;;  %v7167_v58 = vld [vmem:[#allocation16_spill] sm:$0xff]  ;;  %v7168_v24 = vld [vmem:[#allocation18_spill] sm:$0xff] }
 0x4de   :  { %2023 = vmatpush1.bf16.msra.mxu0 %v7158_v25  ;;  %2064 = vmatpush1.bf16.msra.mxu1 %v7159_v26  ;;  %v7169_v25 = vld [vmem:[#allocation19_spill] sm:$0xff] }
 0x4df   :  { %2024 = vmatprep.subr.bf16.mxu0 %v7160_v27  ;;  %2065 = vmatprep.subr.bf16.mxu1 %v7161_v28 }
 0x4e2   :  { %2025 = vmatpush1.bf16.msra.mxu0 %v7162_v29  ;;  %2066 = vmatpush1.bf16.msra.mxu1 %v7163_v30 }
 0x4e3   :  { %2026 = vmatprep.subr.bf16.mxu0 %v7164_v15  ;;  %2067 = vmatprep.subr.bf16.mxu1 %v7165_v40 }
 0x4e6   :  { %2027 = vmatpush1.bf16.msra.mxu0 %v7166_v43  ;;  %2068 = vmatpush1.bf16.msra.mxu1 %v7167_v58 }
 0x4e7   :  { %2094 = vmatprep.subr.bf16.mxu0 %v7168_v24  ;;  %2135 = vmatprep.subr.bf16.mxu1 %v7169_v25 }
 0x55c   :  { %v1733_v26 = vpop.f32.mrb[36].mxu0  ;;  %v1774_v27 = vpop.f32.mrb[44].mxu1 }
 0x55d   :  { %v1735_v23 = vpop.f32.mrb[37].mxu0  ;;  %v1776_v28 = vpop.f32.mrb[45].mxu1 }
 0x55e   :  { %v1737_v22 = vpop.f32.mrb[38].mxu0  ;;  %v1778_v29 = vpop.f32.mrb[46].mxu1 }
 0x55f   :  { %v1738_v21 = vpop.f32.mrb[39].mxu0  ;;  %v1779_v30 = vpop.f32.mrb[47].mxu1 }
 0x57c   :  { %v1815_v19 = vpop.f32.mrb[40].mxu0  ;;  %v1856_v15 = vpop.f32.mrb[48].mxu1 }
 0x57d   :  { %v1816_v18 = vadd.f32 %v1815_v19, %v1733_v26  ;;  %v1857_v40 = vadd.f32 %v1856_v15, %v1774_v27  ;;  %v1817_v47 = vpop.f32.mrb[41].mxu0  ;;  %v1858_v43 = vpop.f32.mrb[49].mxu1 }
 0x57e   :  { %v1818_v17 = vadd.f32 %v1817_v47, %v1735_v23  ;;  %v1859_v58 = vadd.f32 %v1858_v43, %v1776_v28  ;;  %v1819_v16 = vpop.f32.mrb[42].mxu0  ;;  %v1860_v24 = vpop.f32.mrb[50].mxu1 }
 0x57f   :  { %v1863_v25 = vadd.f32 %v1816_v18, %v4906_v13  ;;  %v1820_v51 = vpop.f32.mrb[43].mxu0  ;;  %v1861_v39 = vpop.f32.mrb[51].mxu1  ;;  %v1865_v26 = vadd.f32 %v1857_v40, %v4915_v10 }
 0x580   :  { %v1864_v36 = vadd.f32 %v1818_v17, %v4908_v55  ;;  %v1866_v21 = vadd.f32 %v1859_v58, %v4912_v11  ;;  %v3474_v39 = vld [vmem:[%s6699_s0 + $0x40] sm:$0xff] }
 0x581   :  { %v3471_v22 = vmul.f32 -1.442695, %v1863_v25  ;;  %v1897_v17 = vunpack.c.l.bf16 %v3474_v39  ;;  %v1898_v24 = vunpack.c.h.bf16 %v3474_v39 }
 0x582   :  { %v3472_v29 = vmul.f32 -1.442695, %v1864_v36  ;;  %v3473_v19 = vmul.f32 -1.442695, %v1866_v21 }
 0x583   :  { %3850 = vpow2.f32 %v3471_v22  ;;  %v3475_v22 = vld [vmem:[%s6699_s0 + $0x48] sm:$0xff] }
 0x584   :  { %3852 = vpow2.f32 %v3472_v29 }
 0x585   :  { %3854 = vpow2.f32 %v3473_v19 }
 0x586   :  { %3856 = vtanh.f32 %v1865_v26 }
 0x58d   :  { %v3851_v27 = vpop.eup %3850 }
 0x58e   :  { %v3853_v47 = vpop.eup %3852  ;;  %v1870_v23 = vadd.f32 1.0, %v3851_v27 }
 0x58f   :  { %v1876_v16 = vadd.f32 1.0, %v3853_v47  ;;  %v3855_v36 = vpop.eup %3854 }
 0x590   :  { %3858 = vrcp.f32 %v1870_v23  ;;  %v3857_v51 = vpop.eup %3856  ;;  %v1883_v30 = vadd.f32 1.0, %v3855_v36 }
 0x591   :  { %3860 = vrcp.f32 %v1876_v16 }
 0x592   :  { %3862 = vrcp.f32 %v1883_v30 }
 0x59a   :  { %v3859_v18 = vpop.eup %3858 }
 0x59b   :  { %v3861_v25 = vpop.eup %3860  ;;  %v1887_v28 = vmul.f32 %v3859_v18, %v3857_v51 }
 0x59c   :  { %v1886_v15 = vmul.f32 %v3861_v25, %v5504_v49  ;;  %v1935_v40 = vpop.f32.mrb[44].mxu0  ;;  %v1976_v43 = vpop.f32.mrb[52].mxu1  ;;  %v1900_v49 = vunpack.c.h.bf16 %v3475_v22 }
 0x59d   :  { %v1983_v58 = vadd.f32 %v1935_v40, %v1897_v17  ;;  %v1937_v29 = vpop.f32.mrb[45].mxu0  ;;  %v1978_v21 = vpop.f32.mrb[53].mxu1  ;;  %v1899_v17 = vunpack.c.l.bf16 %v3475_v22 }
 0x59e   :  { %v5764_v19 = vadd.f32 %v1887_v28, %v1886_v15  ;;  %v1984_v26 = vadd.f32 %v1937_v29, %v1898_v24  ;;  %v1939_v27 = vpop.f32.mrb[46].mxu0  ;;  %v1980_v47 = vpop.f32.mrb[54].mxu1  ;;  %v1986_v51 = vadd.f32 %v1978_v21, %v1900_v49  ;;  %v7174_v49 = vld [vmem:[#allocation24_spill] sm:$0xff] }
 0x59f   :  { %v3476_v23 = vmul.f32 -1.442695, %v1983_v58  ;;  %v1940_v16 = vpop.f32.mrb[47].mxu0  ;;  %v1981_v39 = vpop.f32.mrb[55].mxu1  ;;  %v1985_v40 = vadd.f32 %v1976_v43, %v1899_v17  ;;  %v7176_v17 = vld [vmem:[#allocation38_spill] sm:$0xff] }
 0x5a0   :  { %v3477_v36 = vmul.f32 -1.442695, %v1984_v26  ;;  %3864 = vtanh.f32 %v5764_v19  ;;  %v3478_v18 = vmul.f32 -1.442695, %v1986_v51  ;;  %v3863_v25 = vpop.eup %3862  ;;  %v7170_v16 = vld [vmem:[#allocation21_spill] sm:$0xff]  ;;  %v7171_v39 = vld [vmem:[#allocation20_spill] sm:$0xff] }
 0x5a1   :  { %3866 = vpow2.f32 %v3476_v23  ;;  %v7175_v51 = vld [vmem:[#allocation37_spill] sm:$0xff] }
 0x5a2   :  { %3868 = vpow2.f32 %v3477_v36  ;;  %v7173_v36 = vld [vmem:[#allocation23_spill] sm:$0xff] }
 0x5a3   :  { %3870 = vpow2.f32 %v3478_v18 }
 0x5a4   :  { %3872 = vtanh.f32 %v1985_v40  ;;  %v7177_v40 = vld [vmem:[#allocation39_spill] sm:$0xff] }
 0x5aa   :  { %v3865_v28 = vpop.eup %3864 }
 0x5ab   :  { %v3867_v15 = vpop.eup %3866  ;;  %v1890_v24 = vmul.f32 %v3865_v28, %v3863_v25  ;;  %v7178_v28 = vld [vmem:[#allocation40_spill] sm:$0xff] }
 0x5ac   :  { %v3869_v29 = vpop.eup %3868  ;;  %v1990_v27 = vadd.f32 1.0, %v3867_v15  ;;  %v7179_v15 = vld [vmem:[#allocation41_spill] sm:$0xff] }
 0x5ad   :  { %v1996_v30 = vadd.f32 1.0, %v3869_v29  ;;  %v1891_v58 = vpack.c.bf16 %v1890_v24, %v1890_v24  ;;  %v3871_v43 = vpop.eup %3870 }
 0x5ae   :  { %3874 = vrcp.f32 %v1990_v27  ;;  %v2003_v26 = vadd.f32 1.0, %v3871_v43  ;;  %v5806_v27 = vld [vmem:[%s6696_s1 + $0x4] ss:$16 sps:$4 sm:$0xff]  }
 0x5af   :  { %3876 = vrcp.f32 %v1996_v30  ;;  %1893 = vst [vmem:[#allocation2 + $0xc] sm:$0xf] %v1891_v58  ;;  %2045 = vmatmul.mubr.bf16.vlgmr.msra.gmra.mrb[48].mxu0 %v1891_v58  ;;  %2086 = vmatmul.mubr.bf16.vlgmr.msra.gmra.mrb[56].mxu1 %v1891_v58  ;;  %v5813_v30 = vld [vmem:[%s6696_s1] ss:$16 sps:$4 sm:$0xff]   ;;  %v5820_v58 = vld [vmem:[%s6696_s1 + $0x24] ss:$16 sps:$4 sm:$0xff]  }
 0x5b0   :  { %2095 = vmatpush1.bf16.msra.mxu0 %v5130_v38  ;;  %2136 = vmatpush1.bf16.msra.mxu1 %v5136_v37  ;;  %v3873_v38 = vpop.eup %3872  ;;  %3878 = vrcp.f32 %v2003_v26  ;;  %v7189_v43 = vld [vmem:[#allocation5_spill] sm:$0xff] }
 0x5b1   :  { %2096 = vmatprep.subr.bf16.mxu0 %v5512_v5  ;;  %2137 = vmatprep.subr.bf16.mxu1 %v5518_v45  ;;  %v7196_v26 = vld [vmem:[#allocation25_spill] sm:$0xff] }
 0x5b2   :  { %2126 = vmatprep.mubr.bf16.mxu0 %v6985_v1  ;;  %2167 = vmatprep.mubr.bf16.mxu1 %v6985_v1 }
 0x5b4   :  { %2097 = vmatpush1.bf16.msra.mxu0 %v5526_v59  ;;  %2138 = vmatpush1.bf16.msra.mxu1 %v5532_v20 }
 0x5b5   :  { %2098 = vmatprep.subr.bf16.mxu0 %v5538_v4  ;;  %2139 = vmatprep.subr.bf16.mxu1 %v5544_v61 }
 0x5b8   :  { %v3875_v22 = vpop.eup %3874  ;;  %2099 = vmatpush1.bf16.msra.mxu0 %v5550_v42  ;;  %2140 = vmatpush1.bf16.msra.mxu1 %v5556_v7 }
 0x5b9   :  { %v3877_v37 = vpop.eup %3876  ;;  %v2007_v21 = vmul.f32 %v3875_v22, %v3873_v38  ;;  %2100 = vmatprep.subr.bf16.mxu0 %v5562_v14  ;;  %2141 = vmatprep.subr.bf16.mxu1 %v5568_v46  ;;  %v7190_v38 = vld [vmem:[#allocation4_spill] sm:$0xff]  ;;  %v7192_v22 = vld [vmem:[#allocation7_spill] sm:$0xff] }
 0x5ba   :  { %v2006_v47 = vmul.f32 %v3877_v37, %v5572_v57  ;;  %v7172_v57 = vld [vmem:[#allocation22_spill] sm:$0xff]  ;;  %v3879_v18 = vpop.eup %3878  ;;  %v7193_v37 = vld [vmem:[#allocation9_spill] sm:$0xff] }
 0x5bc   :  { %v5782_v23 = vadd.f32 %v2007_v21, %v2006_v47  ;;  %2101 = vmatpush1.bf16.msra.mxu0 %v5577_v3  ;;  %2142 = vmatpush1.bf16.msra.mxu1 %v5583_v54  ;;  %v7195_v21 = vld [vmem:[#allocation10_spill] sm:$0xff] }
 0x5bd   :  { %2102 = vmatprep.subr.bf16.mxu0 %v5589_v60  ;;  %2143 = vmatprep.subr.bf16.mxu1 %v5595_v44  ;;  %v7197_v47 = vld [vmem:[#allocation26_spill] sm:$0xff] }
 0x5be   :  { %3880 = vtanh.f32 %v5782_v23 }
 0x5c0   :  { %2103 = vmatpush1.bf16.msra.mxu0 %v5602_v6  ;;  %2144 = vmatpush1.bf16.msra.mxu1 %v7170_v16 }
 0x5c1   :  { %2104 = vmatprep.subr.bf16.mxu0 %v7171_v39  ;;  %2145 = vmatprep.subr.bf16.mxu1 %v7172_v57 }
 0x5c4   :  { %2105 = vmatpush1.bf16.msra.mxu0 %v7173_v36  ;;  %2146 = vmatpush1.bf16.msra.mxu1 %v7174_v49 }
 0x5c5   :  { %2106 = vmatprep.subr.bf16.mxu0 %v7175_v51  ;;  %2147 = vmatprep.subr.bf16.mxu1 %v7176_v17 }
 0x5c8   :  { %v3881_v25 = vpop.eup %3880  ;;  %2107 = vmatpush1.bf16.msra.mxu0 %v7177_v40  ;;  %2148 = vmatpush1.bf16.msra.mxu1 %v7178_v28 }
 0x5c9   :  { %2108 = vmatprep.subr.bf16.mxu0 %v7179_v15  ;;  %2149 = vmatprep.subr.bf16.mxu1 %v5668_v41  ;;  %v2010_v24 = vmul.f32 %v3881_v25, %v3879_v18  ;;  %v7198_v18 = vld [vmem:[#allocation27_spill] sm:$0xff]  ;;  %v7199_v25 = vld [vmem:[#allocation28_spill] sm:$0xff] }
 0x5cb   :  { %v2011_v29 = vpack.c.bf16 %v2010_v24, %v2010_v24  ;;  %v7200_v24 = vld [vmem:[#allocation29_spill] sm:$0xff] }
 0x5cc   :  { %2109 = vmatpush1.bf16.msra.mxu0 %v5674_v53  ;;  %2150 = vmatpush1.bf16.msra.mxu1 %v5680_v2 }
 0x5cd   :  { %2214 = vmatprep.subr.bf16.mxu0 %v5806_v27  ;;  %2255 = vmatprep.subr.bf16.mxu1 %v5177_v50  ;;  %v5829_v50 = vld [vmem:[%s6696_s1 + $0x20] ss:$16 sps:$4 sm:$0xff]  }
 0x5cf   :  { %2127 = vmatmul.mubr.bf16.vlgmr.msra.gmra.mrb[52].mxu0 %v2011_v29  ;;  %2168 = vmatmul.mubr.bf16.vlgmr.msra.gmra.mrb[60].mxu1 %v2011_v29 }
 0x5d0   :  { %2215 = vmatpush1.bf16.msra.mxu0 %v5813_v30  ;;  %2256 = vmatpush1.bf16.msra.mxu1 %v5184_v62  ;;  %v5836_v62 = vld [vmem:[%s6696_s1 + $0x44] ss:$16 sps:$4 sm:$0xff]  }
 0x5d1   :  { %2216 = vmatprep.subr.bf16.mxu0 %v5820_v58  ;;  %2257 = vmatprep.subr.bf16.mxu1 %v5191_v0  ;;  %v5843_v0 = vld [vmem:[%s6696_s1 + $0x40] ss:$16 sps:$4 sm:$0xff]  }
 0x5d2   :  { %2246 = vmatprep.mubr.bf16.mxu0 %v6985_v1  ;;  %2287 = vmatprep.mubr.bf16.mxu1 %v6985_v1 }
 0x5d4   :  { %2217 = vmatpush1.bf16.msra.mxu0 %v5829_v50  ;;  %2258 = vmatpush1.bf16.msra.mxu1 %v5200_v12  ;;  %v5850_v12 = vld [vmem:[%s6696_s1 + $0x64] ss:$16 sps:$4 sm:$0xff]  }
 0x5d5   :  { %2218 = vmatprep.subr.bf16.mxu0 %v5836_v62  ;;  %2259 = vmatprep.subr.bf16.mxu1 %v5207_v48  ;;  %v5857_v48 = vld [vmem:[%s6696_s1 + $0x60] ss:$16 sps:$4 sm:$0xff]  }
 0x5d6   :  { %7180 = vst [vmem:[#allocation42_spill] sm:$0xff] %v5857_v48 }
 0x5d8   :  { %2219 = vmatpush1.bf16.msra.mxu0 %v5843_v0  ;;  %2260 = vmatpush1.bf16.msra.mxu1 %v5214_v63  ;;  %v5864_v63 = vld [vmem:[%s6696_s1 + $0x84] ss:$16 sps:$4 sm:$0xff]  }
 0x5d9   :  { %2220 = vmatprep.subr.bf16.mxu0 %v5850_v12  ;;  %2261 = vmatprep.subr.bf16.mxu1 %v5221_v8  ;;  %7181 = vst [vmem:[#allocation43_spill] sm:$0xff] %v5864_v63  ;;  %v5871_v8 = vld [vmem:[%s6696_s1 + $0x80] ss:$16 sps:$4 sm:$0xff]  }
 0x5da   :  { %7182 = vst [vmem:[#allocation44_spill] sm:$0xff] %v5871_v8 }
 0x5dc   :  { %2221 = vmatpush1.bf16.msra.mxu0 %v5857_v48  ;;  %2262 = vmatpush1.bf16.msra.mxu1 %v5228_v9  ;;  %v5878_v9 = vld [vmem:[%s6696_s1 + $0xa4] ss:$16 sps:$4 sm:$0xff]  }
 0x5dd   :  { %2222 = vmatprep.subr.bf16.mxu0 %v5864_v63  ;;  %2263 = vmatprep.subr.bf16.mxu1 %v5235_v56  ;;  %7183 = vst [vmem:[#allocation45_spill] sm:$0xff] %v5878_v9  ;;  %v5885_v56 = vld [vmem:[%s6696_s1 + $0xa0] ss:$16 sps:$4 sm:$0xff]  }
 0x5de   :  { %7184 = vst [vmem:[#allocation46_spill] sm:$0xff] %v5885_v56 }
 0x5e0   :  { %2223 = vmatpush1.bf16.msra.mxu0 %v5871_v8  ;;  %2264 = vmatpush1.bf16.msra.mxu1 %v5242_v52  ;;  %v5892_v52 = vld [vmem:[%s6696_s1 + $0xc4] ss:$16 sps:$4 sm:$0xff]  }
 0x5e1   :  { %2224 = vmatprep.subr.bf16.mxu0 %v5878_v9  ;;  %2265 = vmatprep.subr.bf16.mxu1 %v5249_v33  ;;  %7185 = vst [vmem:[#allocation48_spill] sm:$0xff] %v5892_v52  ;;  %v5899_v33 = vld [vmem:[%s6696_s1 + $0xc0] ss:$16 sps:$4 sm:$0xff]  }
 0x5e2   :  { %7186 = vst [vmem:[#allocation49_spill] sm:$0xff] %v5899_v33 }
 0x5e4   :  { %2225 = vmatpush1.bf16.msra.mxu0 %v5885_v56  ;;  %2266 = vmatpush1.bf16.msra.mxu1 %v5256_v32  ;;  %v5906_v32 = vld [vmem:[%s6696_s1 + $0xe4] ss:$16 sps:$4 sm:$0xff]  }
 0x5e5   :  { %2226 = vmatprep.subr.bf16.mxu0 %v5892_v52  ;;  %2267 = vmatprep.subr.bf16.mxu1 %v5263_v34  ;;  %7187 = vst [vmem:[#allocation21_spill] sm:$0xff] %v5906_v32  ;;  %v5913_v34 = vld [vmem:[%s6696_s1 + $0xe0] ss:$16 sps:$4 sm:$0xff]  }
 0x5e6   :  { %7188 = vst [vmem:[#allocation20_spill] sm:$0xff] %v5913_v34 }
 0x5e8   :  { %2227 = vmatpush1.bf16.msra.mxu0 %v5899_v33  ;;  %2268 = vmatpush1.bf16.msra.mxu1 %v5270_v35  ;;  %v7191_v35 = vld [vmem:[#allocation6_spill] sm:$0xff] }
 0x5e9   :  { %2228 = vmatprep.subr.bf16.mxu0 %v5906_v32  ;;  %2269 = vmatprep.subr.bf16.mxu1 %v5277_v31  ;;  %v7194_v31 = vld [vmem:[#allocation8_spill] sm:$0xff] }
 0x5ec   :  { %2229 = vmatpush1.bf16.msra.mxu0 %v5913_v34  ;;  %2270 = vmatpush1.bf16.msra.mxu1 %v7189_v43  ;;  %v7202_v43 = vld [vmem:[#allocation31_spill] sm:$0xff] }
 0x5ed   :  { %2325 = vmatprep.subr.bf16.mxu0 %v7190_v38  ;;  %2366 = vmatprep.subr.bf16.mxu1 %v7191_v35  ;;  %v7203_v38 = vld [vmem:[#allocation32_spill] sm:$0xff]  ;;  %v7204_v35 = vld [vmem:[#allocation33_spill] sm:$0xff] }
 0x5ef   :  { %2247 = vmatmul.mubr.bf16.vlgmr.msra.gmra.mrb[56].mxu0 %v2011_v29  ;;  %2288 = vmatmul.mubr.bf16.vlgmr.msra.gmra.mrb[64].mxu1 %v2011_v29  ;;  %v7201_v29 = vld [vmem:[#allocation30_spill] sm:$0xff] }
 0x5f0   :  { %2326 = vmatpush1.bf16.msra.mxu0 %v7192_v22  ;;  %2367 = vmatpush1.bf16.msra.mxu1 %v7193_v37  ;;  %v7205_v22 = vld [vmem:[#allocation34_spill] sm:$0xff]  ;;  %v7206_v37 = vld [vmem:[#allocation35_spill] sm:$0xff] }
 0x5f1   :  { %2327 = vmatprep.subr.bf16.mxu0 %v7194_v31  ;;  %2368 = vmatprep.subr.bf16.mxu1 %v7195_v21  ;;  %v7207_v31 = vld [vmem:[#allocation36_spill] sm:$0xff]  ;;  %v7208_v21 = vld [vmem:[#allocation47_spill] sm:$0xff] }
 0x5f2   :  { %2357 = vmatprep.mubr.bf16.mxu0 %v6985_v1  ;;  %2398 = vmatprep.mubr.bf16.mxu1 %v6985_v1 }
 0x5f4   :  { %2328 = vmatpush1.bf16.msra.mxu0 %v7196_v26  ;;  %2369 = vmatpush1.bf16.msra.mxu1 %v7197_v47  ;;  %v7209_v26 = vld [vmem:[#allocation50_spill] sm:$0xff]  ;;  %v7210_v47 = vld [vmem:[#allocation51_spill] sm:$0xff] }
 0x5f5   :  { %2329 = vmatprep.subr.bf16.mxu0 %v7198_v18  ;;  %2370 = vmatprep.subr.bf16.mxu1 %v7199_v25  ;;  %v7211_v18 = vld [vmem:[#allocation52_spill] sm:$0xff]  ;;  %v7212_v25 = vld [vmem:[#allocation53_spill] sm:$0xff] }
 0x5f8   :  { %2330 = vmatpush1.bf16.msra.mxu0 %v7200_v24  ;;  %2371 = vmatpush1.bf16.msra.mxu1 %v7201_v29  ;;  %v7213_v24 = vld [vmem:[#allocation54_spill] sm:$0xff]  ;;  %v7214_v29 = vld [vmem:[#allocation3_spill] sm:$0xff] }
 0x5f9   :  { %2331 = vmatprep.subr.bf16.mxu0 %v7202_v43  ;;  %2372 = vmatprep.subr.bf16.mxu1 %v7203_v38  ;;  %v7215_v43 = vld [vmem:[#allocation11_spill] sm:$0xff]  ;;  %v7216_v38 = vld [vmem:[#allocation13_spill] sm:$0xff] }
 0x5fc   :  { %2332 = vmatpush1.bf16.msra.mxu0 %v7204_v35  ;;  %2373 = vmatpush1.bf16.msra.mxu1 %v7205_v22  ;;  %v7217_v35 = vld [vmem:[#allocation12_spill] sm:$0xff]  ;;  %v7218_v22 = vld [vmem:[#allocation14_spill] sm:$0xff] }
 0x5fd   :  { %2333 = vmatprep.subr.bf16.mxu0 %v7206_v37  ;;  %2374 = vmatprep.subr.bf16.mxu1 %v7207_v31  ;;  %v7219_v37 = vld [vmem:[#allocation15_spill] sm:$0xff]  ;;  %v7220_v31 = vld [vmem:[#allocation17_spill] sm:$0xff] }
 0x600   :  { %2334 = vmatpush1.bf16.msra.mxu0 %v7208_v21  ;;  %2375 = vmatpush1.bf16.msra.mxu1 %v7209_v26  ;;  %v7221_v21 = vld [vmem:[#allocation16_spill] sm:$0xff]  ;;  %v7222_v26 = vld [vmem:[#allocation18_spill] sm:$0xff] }
 0x601   :  { %2335 = vmatprep.subr.bf16.mxu0 %v7210_v47  ;;  %2376 = vmatprep.subr.bf16.mxu1 %v7211_v18  ;;  %v7223_v47 = vld [vmem:[#allocation19_spill] sm:$0xff] }
 0x604   :  { %2336 = vmatpush1.bf16.msra.mxu0 %v7212_v25  ;;  %2377 = vmatpush1.bf16.msra.mxu1 %v7213_v24 }
 0x605   :  { %2337 = vmatprep.subr.bf16.mxu0 %v7214_v29  ;;  %2378 = vmatprep.subr.bf16.mxu1 %v7215_v43 }
 0x608   :  { %2338 = vmatpush1.bf16.msra.mxu0 %v7216_v38  ;;  %2379 = vmatpush1.bf16.msra.mxu1 %v7217_v35 }
 0x609   :  { %2339 = vmatprep.subr.bf16.mxu0 %v7218_v22  ;;  %2380 = vmatprep.subr.bf16.mxu1 %v7219_v37 }
 0x60c   :  { %2340 = vmatpush1.bf16.msra.mxu0 %v7220_v31  ;;  %2381 = vmatpush1.bf16.msra.mxu1 %v7221_v21 }
 0x60d   :  { %2407 = vmatprep.subr.bf16.mxu0 %v7222_v26  ;;  %2448 = vmatprep.subr.bf16.mxu1 %v7223_v47 }
 0x682   :  { %v2046_v18 = vpop.f32.mrb[48].mxu0  ;;  %v2087_v25 = vpop.f32.mrb[56].mxu1 }
 0x683   :  { %v2048_v24 = vpop.f32.mrb[49].mxu0  ;;  %v2089_v29 = vpop.f32.mrb[57].mxu1 }
 0x684   :  { %v2050_v43 = vpop.f32.mrb[50].mxu0  ;;  %v2091_v38 = vpop.f32.mrb[58].mxu1 }
 0x685   :  { %v2051_v34 = vpop.f32.mrb[51].mxu0  ;;  %v2092_v35 = vpop.f32.mrb[59].mxu1 }
 0x6a2   :  { %v2128_v32 = vpop.f32.mrb[52].mxu0  ;;  %v2169_v22 = vpop.f32.mrb[60].mxu1 }
 0x6a3   :  { %v2129_v33 = vadd.f32 %v2128_v32, %v2046_v18  ;;  %v2170_v37 = vadd.f32 %v2169_v22, %v2087_v25  ;;  %v2130_v52 = vpop.f32.mrb[53].mxu0  ;;  %v2171_v31 = vpop.f32.mrb[61].mxu1 }
 0x6a4   :  { %v2131_v56 = vadd.f32 %v2130_v52, %v2048_v24  ;;  %v2172_v21 = vadd.f32 %v2171_v31, %v2089_v29  ;;  %v2132_v9 = vpop.f32.mrb[54].mxu0  ;;  %v2173_v26 = vpop.f32.mrb[62].mxu1 }
 0x6a5   :  { %v2176_v47 = vadd.f32 %v2129_v33, %v4906_v13  ;;  %v2133_v8 = vpop.f32.mrb[55].mxu0  ;;  %v2174_v63 = vpop.f32.mrb[63].mxu1  ;;  %v2178_v18 = vadd.f32 %v2170_v37, %v4915_v10 }
 0x6a6   :  { %v2177_v48 = vadd.f32 %v2131_v56, %v4908_v55  ;;  %v2179_v34 = vadd.f32 %v2172_v21, %v4912_v11  ;;  %v3482_v63 = vld [vmem:[%s6699_s0 + $0x50] sm:$0xff] }
 0x6a7   :  { %v3479_v43 = vmul.f32 -1.442695, %v2176_v47  ;;  %v2210_v56 = vunpack.c.l.bf16 %v3482_v63  ;;  %v2211_v29 = vunpack.c.h.bf16 %v3482_v63 }
 0x6a8   :  { %v3480_v38 = vmul.f32 -1.442695, %v2177_v48  ;;  %v3481_v32 = vmul.f32 -1.442695, %v2179_v34 }
 0x6a9   :  { %3882 = vpow2.f32 %v3479_v43  ;;  %v3483_v43 = vld [vmem:[%s6699_s0 + $0x58] sm:$0xff] }
 0x6aa   :  { %3884 = vpow2.f32 %v3480_v38 }
 0x6ab   :  { %3886 = vpow2.f32 %v3481_v32 }
 0x6ac   :  { %3888 = vtanh.f32 %v2178_v18 }
 0x6b3   :  { %v3883_v25 = vpop.eup %3882 }
 0x6b4   :  { %v3885_v52 = vpop.eup %3884  ;;  %v2183_v24 = vadd.f32 1.0, %v3883_v25 }
 0x6b5   :  { %v2189_v9 = vadd.f32 1.0, %v3885_v52  ;;  %v3887_v48 = vpop.eup %3886 }
 0x6b6   :  { %3890 = vrcp.f32 %v2183_v24  ;;  %v3889_v8 = vpop.eup %3888  ;;  %v2196_v37 = vadd.f32 1.0, %v3887_v48 }
 0x6b7   :  { %3892 = vrcp.f32 %v2189_v9 }
 0x6b8   :  { %3894 = vrcp.f32 %v2196_v37 }
 0x6c0   :  { %v3891_v33 = vpop.eup %3890 }
 0x6c1   :  { %v3893_v35 = vpop.eup %3892  ;;  %v2200_v22 = vmul.f32 %v3891_v33, %v3889_v8 }
 0x6c2   :  { %v2199_v31 = vmul.f32 %v3893_v35, %v5764_v19  ;;  %v2248_v21 = vpop.f32.mrb[56].mxu0  ;;  %v2289_v26 = vpop.f32.mrb[64].mxu1  ;;  %v2213_v19 = vunpack.c.h.bf16 %v3483_v43 }
 0x6c3   :  { %v2296_v47 = vadd.f32 %v2248_v21, %v2210_v56  ;;  %v2250_v38 = vpop.f32.mrb[57].mxu0  ;;  %v2291_v34 = vpop.f32.mrb[65].mxu1  ;;  %v2212_v56 = vunpack.c.l.bf16 %v3483_v43  ;;  %v5970_v43 = vld [vmem:[%s6698_s2] ss:$16 sps:$4 sm:$0xff]  }
 0x6c4   :  { %v5964_v32 = vadd.f32 %v2200_v22, %v2199_v31  ;;  %v2297_v18 = vadd.f32 %v2250_v38, %v2211_v29  ;;  %v2252_v25 = vpop.f32.mrb[58].mxu0  ;;  %v2293_v52 = vpop.f32.mrb[66].mxu1  ;;  %v2299_v8 = vadd.f32 %v2291_v34, %v2213_v19  ;;  %v6124_v19 = vld [vmem:[%s6696_s1 + $0xe8] ss:$16 sps:$4 sm:$0xff]  }
 0x6c5   :  { %v3484_v24 = vmul.f32 -1.442695, %v2296_v47  ;;  %v2253_v9 = vpop.f32.mrb[59].mxu0  ;;  %v2294_v63 = vpop.f32.mrb[67].mxu1  ;;  %v2298_v21 = vadd.f32 %v2289_v26, %v2212_v56  ;;  %v5976_v26 = vld [vmem:[%s6698_s2 + $0x8] ss:$16 sps:$4 sm:$0xff]  }
 0x6c6   :  { %v3485_v48 = vmul.f32 -1.442695, %v2297_v18  ;;  %3896 = vtanh.f32 %v5964_v32  ;;  %v3486_v33 = vmul.f32 -1.442695, %v2299_v8  ;;  %v3895_v35 = vpop.eup %3894  ;;  %v7231_v9 = vld [vmem:[#allocation21_spill] sm:$0xff] }
 0x6c7   :  { %3898 = vpow2.f32 %v3484_v24  ;;  %v6117_v63 = vld [vmem:[%s6696_s1 + $0xec] ss:$16 sps:$4 sm:$0xff]   ;;  %v6130_v8 = vld [vmem:[%s6697_s3 + $0x4] ss:$16 sps:$4 sm:$0xff]  }
 0x6c8   :  { %3900 = vpow2.f32 %v3485_v48  ;;  %v7232_v48 = vld [vmem:[#allocation20_spill] sm:$0xff] }
 0x6c9   :  { %3902 = vpow2.f32 %v3486_v33  ;;  %v6136_v56 = vld [vmem:[%s6697_s3 + $0xc] ss:$16 sps:$4 sm:$0xff]   ;;  %v6142_v33 = vld [vmem:[%s6697_s3] ss:$16 sps:$4 sm:$0xff]  }
 0x6ca   :  { %3904 = vtanh.f32 %v2298_v21  ;;  %7233 = vst [vmem:[#allocation22_spill] sm:$0xff] %v6136_v56  ;;  %7234 = vst [vmem:[#allocation23_spill] sm:$0xff] %v6142_v33  ;;  %v6154_v21 = vld [vmem:[%s6697_s3 + $0x24] ss:$16 sps:$4 sm:$0xff]  }
 0x6cb   :  { %7236 = vst [vmem:[#allocation37_spill] sm:$0xff] %v6154_v21 }
 0x6d0   :  { %v3897_v22 = vpop.eup %3896 }
 0x6d1   :  { %v3899_v31 = vpop.eup %3898  ;;  %v2203_v29 = vmul.f32 %v3897_v22, %v3895_v35  ;;  %v6148_v35 = vld [vmem:[%s6697_s3 + $0x8] ss:$16 sps:$4 sm:$0xff]   ;;  %v6160_v22 = vld [vmem:[%s6697_s3 + $0x2c] ss:$16 sps:$4 sm:$0xff]  }
 0x6d2   :  { %v3901_v38 = vpop.eup %3900  ;;  %v2303_v25 = vadd.f32 1.0, %v3899_v31  ;;  %7235 = vst [vmem:[#allocation24_spill] sm:$0xff] %v6148_v35  ;;  %7237 = vst [vmem:[#allocation38_spill] sm:$0xff] %v6160_v22  ;;  %v6168_v31 = vld [vmem:[%s6697_s3 + $0x20] ss:$16 sps:$4 sm:$0xff]  }
 0x6d3   :  { %v2309_v37 = vadd.f32 1.0, %v3901_v38  ;;  %v2204_v47 = vpack.c.bf16 %v2203_v29, %v2203_v29  ;;  %v3903_v34 = vpop.eup %3902  ;;  %7238 = vst [vmem:[#allocation39_spill] sm:$0xff] %v6168_v31  ;;  %v6174_v29 = vld [vmem:[%s6697_s3 + $0x28] ss:$16 sps:$4 sm:$0xff]   ;;  %v6180_v38 = vld [vmem:[%s6697_s3 + $0x44] ss:$16 sps:$4 sm:$0xff]  }
 0x6d4   :  { %3906 = vrcp.f32 %v2303_v25  ;;  %v3905_v18 = vpop.eup %3904  ;;  %v2316_v24 = vadd.f32 1.0, %v3903_v34  ;;  %7239 = vst [vmem:[#allocation40_spill] sm:$0xff] %v6174_v29  ;;  %7240 = vst [vmem:[#allocation41_spill] sm:$0xff] %v6180_v38  ;;  %v6186_v25 = vld [vmem:[%s6697_s3 + $0x4c] ss:$16 sps:$4 sm:$0xff]  }
 0x6d5   :  { %3908 = vrcp.f32 %v2309_v37  ;;  %2206 = vst [vmem:[#allocation2 + $0x10] sm:$0xf] %v2204_v47  ;;  %2358 = vmatmul.mubr.bf16.vlgmr.msra.gmra.mrb[60].mxu0 %v2204_v47  ;;  %2399 = vmatmul.mubr.bf16.vlgmr.msra.gmra.mrb[68].mxu1 %v2204_v47  ;;  %7241 = vst [vmem:[#allocation5_spill] sm:$0xff] %v6186_v25  ;;  %v6192_v37 = vld [vmem:[%s6697_s3 + $0x40] ss:$16 sps:$4 sm:$0xff]  }
 0x6d6   :  { %2408 = vmatpush1.bf16.msra.mxu0 %v5970_v43  ;;  %2449 = vmatpush1.bf16.msra.mxu1 %v5976_v26  ;;  %3910 = vrcp.f32 %v2316_v24  ;;  %7242 = vst [vmem:[#allocation4_spill] sm:$0xff] %v6192_v37  ;;  %v6198_v47 = vld [vmem:[%s6697_s3 + $0x48] ss:$16 sps:$4 sm:$0xff]   ;;  %v6204_v34 = vld [vmem:[%s6697_s3 + $0x64] ss:$16 sps:$4 sm:$0xff]  }
 0x6d7   :  { %2409 = vmatprep.subr.bf16.mxu0 %v5512_v5  ;;  %2450 = vmatprep.subr.bf16.mxu1 %v5518_v45  ;;  %7243 = vst [vmem:[#allocation6_spill] sm:$0xff] %v6198_v47  ;;  %7244 = vst [vmem:[#allocation7_spill] sm:$0xff] %v6204_v34  ;;  %v6234_v24 = vld [vmem:[%s6697_s3 + $0x8c] ss:$16 sps:$4 sm:$0xff]  }
 0x6d8   :  { %2439 = vmatprep.mubr.bf16.mxu0 %v6985_v1  ;;  %2480 = vmatprep.mubr.bf16.mxu1 %v6985_v1  ;;  %7249 = vst [vmem:[#allocation26_spill] sm:$0xff] %v6234_v24 }
 0x6da   :  { %2410 = vmatpush1.bf16.msra.mxu0 %v5526_v59  ;;  %2451 = vmatpush1.bf16.msra.mxu1 %v5532_v20 }
 0x6db   :  { %2411 = vmatprep.subr.bf16.mxu0 %v5538_v4  ;;  %2452 = vmatprep.subr.bf16.mxu1 %v5544_v61 }
 0x6de   :  { %v3907_v52 = vpop.eup %3906  ;;  %2412 = vmatpush1.bf16.msra.mxu0 %v5550_v42  ;;  %2453 = vmatpush1.bf16.msra.mxu1 %v5556_v7 }
 0x6df   :  { %v3909_v5 = vpop.eup %3908  ;;  %v2320_v45 = vmul.f32 %v3907_v52, %v3905_v18  ;;  %2413 = vmatprep.subr.bf16.mxu0 %v5562_v14  ;;  %2454 = vmatprep.subr.bf16.mxu1 %v5568_v46  ;;  %v6017_v14 = vld [vmem:[%s6696_s1 + $0xc] ss:$16 sps:$4 sm:$0xff]   ;;  %v6024_v46 = vld [vmem:[%s6696_s1 + $0x8] ss:$16 sps:$4 sm:$0xff]   ;;  %v6216_v52 = vld [vmem:[%s6697_s3 + $0x60] ss:$16 sps:$4 sm:$0xff]  }
 0x6e0   :  { %v2319_v59 = vmul.f32 %v3909_v5, %v5782_v23  ;;  %v3911_v4 = vpop.eup %3910  ;;  %v6075_v23 = vld [vmem:[%s6696_s1 + $0x8c] ss:$16 sps:$4 sm:$0xff]   ;;  %7246 = vst [vmem:[#allocation8_spill] sm:$0xff] %v6216_v52  ;;  %v6222_v5 = vld [vmem:[%s6697_s3 + $0x68] ss:$16 sps:$4 sm:$0xff]  }
 0x6e1   :  { %v6210_v18 = vld [vmem:[%s6697_s3 + $0x6c] ss:$16 sps:$4 sm:$0xff]   ;;  %7247 = vst [vmem:[#allocation10_spill] sm:$0xff] %v6222_v5 }
 0x6e2   :  { %v5992_v20 = vadd.f32 %v2320_v45, %v2319_v59  ;;  %2414 = vmatpush1.bf16.msra.mxu0 %v5577_v3  ;;  %2455 = vmatpush1.bf16.msra.mxu1 %v5583_v54  ;;  %v6031_v3 = vld [vmem:[%s6696_s1 + $0x2c] ss:$16 sps:$4 sm:$0xff]   ;;  %v6040_v54 = vld [vmem:[%s6696_s1 + $0x28] ss:$16 sps:$4 sm:$0xff]   ;;  %7245 = vst [vmem:[#allocation9_spill] sm:$0xff] %v6210_v18 }
 0x6e3   :  { %2415 = vmatprep.subr.bf16.mxu0 %v5589_v60  ;;  %2456 = vmatprep.subr.bf16.mxu1 %v5595_v44  ;;  %v6047_v60 = vld [vmem:[%s6696_s1 + $0x4c] ss:$16 sps:$4 sm:$0xff]   ;;  %v6054_v44 = vld [vmem:[%s6696_s1 + $0x48] ss:$16 sps:$4 sm:$0xff]   ;;  %v6228_v45 = vld [vmem:[%s6697_s3 + $0x84] ss:$16 sps:$4 sm:$0xff]  }
 0x6e4   :  { %3912 = vtanh.f32 %v5992_v20  ;;  %7248 = vst [vmem:[#allocation25_spill] sm:$0xff] %v6228_v45  ;;  %v6240_v59 = vld [vmem:[%s6697_s3 + $0x80] ss:$16 sps:$4 sm:$0xff]  }
 0x6e5   :  { %7250 = vst [vmem:[#allocation27_spill] sm:$0xff] %v6240_v59 }
 0x6e6   :  { %2416 = vmatpush1.bf16.msra.mxu0 %v5602_v6  ;;  %2457 = vmatpush1.bf16.msra.mxu1 %v7170_v16  ;;  %v6061_v6 = vld [vmem:[%s6696_s1 + $0x6c] ss:$16 sps:$4 sm:$0xff]  }
 0x6e7   :  { %2417 = vmatprep.subr.bf16.mxu0 %v7171_v39  ;;  %2458 = vmatprep.subr.bf16.mxu1 %v7172_v57  ;;  %v7226_v16 = vld [vmem:[#allocation44_spill] sm:$0xff]  ;;  %v7227_v57 = vld [vmem:[#allocation45_spill] sm:$0xff] }
 0x6e8   :  { %v6082_v39 = vld [vmem:[%s6696_s1 + $0x88] ss:$16 sps:$4 sm:$0xff]  }
 0x6ea   :  { %2418 = vmatpush1.bf16.msra.mxu0 %v7173_v36  ;;  %2459 = vmatpush1.bf16.msra.mxu1 %v7174_v49  ;;  %v6089_v36 = vld [vmem:[%s6696_s1 + $0xac] ss:$16 sps:$4 sm:$0xff]  }
 0x6eb   :  { %2419 = vmatprep.subr.bf16.mxu0 %v7175_v51  ;;  %2460 = vmatprep.subr.bf16.mxu1 %v7176_v17  ;;  %v7228_v49 = vld [vmem:[#allocation46_spill] sm:$0xff]  ;;  %v7229_v17 = vld [vmem:[#allocation48_spill] sm:$0xff] }
 0x6ec   :  { %v6096_v51 = vld [vmem:[%s6696_s1 + $0xa8] ss:$16 sps:$4 sm:$0xff]  }
 0x6ee   :  { %v3913_v61 = vpop.eup %3912  ;;  %2420 = vmatpush1.bf16.msra.mxu0 %v7177_v40  ;;  %2461 = vmatpush1.bf16.msra.mxu1 %v7178_v28  ;;  %v6103_v40 = vld [vmem:[%s6696_s1 + $0xcc] ss:$16 sps:$4 sm:$0xff]   ;;  %v7230_v28 = vld [vmem:[#allocation49_spill] sm:$0xff] }
 0x6ef   :  { %2421 = vmatprep.subr.bf16.mxu0 %v7179_v15  ;;  %2462 = vmatprep.subr.bf16.mxu1 %v5668_v41  ;;  %v2323_v42 = vmul.f32 %v3913_v61, %v3911_v4  ;;  %v7224_v41 = vld [vmem:[#allocation42_spill] sm:$0xff]  ;;  %v6252_v61 = vld [vmem:[%s6697_s3 + $0xa4] ss:$16 sps:$4 sm:$0xff]  }
 0x6f0   :  { %v6110_v15 = vld [vmem:[%s6696_s1 + $0xc8] ss:$16 sps:$4 sm:$0xff]   ;;  %7252 = vst [vmem:[#allocation29_spill] sm:$0xff] %v6252_v61 }
 0x6f1   :  { %v2324_v7 = vpack.c.bf16 %v2323_v42, %v2323_v42  ;;  %v6246_v4 = vld [vmem:[%s6697_s3 + $0x88] ss:$16 sps:$4 sm:$0xff]   ;;  %v6258_v42 = vld [vmem:[%s6697_s3 + $0xac] ss:$16 sps:$4 sm:$0xff]  }
 0x6f2   :  { %2422 = vmatpush1.bf16.msra.mxu0 %v5674_v53  ;;  %2463 = vmatpush1.bf16.msra.mxu1 %v5680_v2  ;;  %v6068_v53 = vld [vmem:[%s6696_s1 + $0x68] ss:$16 sps:$4 sm:$0xff]   ;;  %v7225_v2 = vld [vmem:[#allocation43_spill] sm:$0xff]  ;;  %7251 = vst [vmem:[#allocation28_spill] sm:$0xff] %v6246_v4  ;;  %7253 = vst [vmem:[#allocation30_spill] sm:$0xff] %v6258_v42 }
 0x6f3   :  { %2527 = vmatprep.subr.bf16.mxu0 %v5806_v27  ;;  %2568 = vmatprep.subr.bf16.mxu1 %v6017_v14 }
 0x6f5   :  { %2440 = vmatmul.mubr.bf16.vlgmr.msra.gmra.mrb[64].mxu0 %v2324_v7  ;;  %2481 = vmatmul.mubr.bf16.vlgmr.msra.gmra.mrb[72].mxu1 %v2324_v7 }
 0x6f6   :  { %2528 = vmatpush1.bf16.msra.mxu0 %v5813_v30  ;;  %2569 = vmatpush1.bf16.msra.mxu1 %v6024_v46 }
 0x6f7   :  { %2529 = vmatprep.subr.bf16.mxu0 %v5820_v58  ;;  %2570 = vmatprep.subr.bf16.mxu1 %v6031_v3 }
 0x6f8   :  { %2559 = vmatprep.mubr.bf16.mxu0 %v6985_v1  ;;  %2600 = vmatprep.mubr.bf16.mxu1 %v6985_v1 }
 0x6fa   :  { %2530 = vmatpush1.bf16.msra.mxu0 %v5829_v50  ;;  %2571 = vmatpush1.bf16.msra.mxu1 %v6040_v54 }
 0x6fb   :  { %2531 = vmatprep.subr.bf16.mxu0 %v5836_v62  ;;  %2572 = vmatprep.subr.bf16.mxu1 %v6047_v60 }
 0x6fe   :  { %2532 = vmatpush1.bf16.msra.mxu0 %v5843_v0  ;;  %2573 = vmatpush1.bf16.msra.mxu1 %v6054_v44 }
 0x6ff   :  { %2533 = vmatprep.subr.bf16.mxu0 %v5850_v12  ;;  %2574 = vmatprep.subr.bf16.mxu1 %v6061_v6 }
 0x702   :  { %2534 = vmatpush1.bf16.msra.mxu0 %v7224_v41  ;;  %2575 = vmatpush1.bf16.msra.mxu1 %v6068_v53 }
 0x703   :  { %2535 = vmatprep.subr.bf16.mxu0 %v7225_v2  ;;  %2576 = vmatprep.subr.bf16.mxu1 %v6075_v23 }
 0x706   :  { %2536 = vmatpush1.bf16.msra.mxu0 %v7226_v16  ;;  %2577 = vmatpush1.bf16.msra.mxu1 %v6082_v39 }
 0x707   :  { %2537 = vmatprep.subr.bf16.mxu0 %v7227_v57  ;;  %2578 = vmatprep.subr.bf16.mxu1 %v6089_v36 }
 0x70a   :  { %2538 = vmatpush1.bf16.msra.mxu0 %v7228_v49  ;;  %2579 = vmatpush1.bf16.msra.mxu1 %v6096_v51 }
 0x70b   :  { %2539 = vmatprep.subr.bf16.mxu0 %v7229_v17  ;;  %2580 = vmatprep.subr.bf16.mxu1 %v6103_v40 }
 0x70e   :  { %2540 = vmatpush1.bf16.msra.mxu0 %v7230_v28  ;;  %2581 = vmatpush1.bf16.msra.mxu1 %v6110_v15 }
 0x70f   :  { %2541 = vmatprep.subr.bf16.mxu0 %v7231_v9  ;;  %2582 = vmatprep.subr.bf16.mxu1 %v6117_v63 }
 0x712   :  { %2542 = vmatpush1.bf16.msra.mxu0 %v7232_v48  ;;  %2583 = vmatpush1.bf16.msra.mxu1 %v6124_v19 }
 0x713   :  { %2638 = vmatprep.subr.bf16.mxu0 %v6130_v8  ;;  %2679 = vmatprep.subr.bf16.mxu1 %v6136_v56 }
 0x715   :  { %2560 = vmatmul.mubr.bf16.vlgmr.msra.gmra.mrb[68].mxu0 %v2324_v7  ;;  %2601 = vmatmul.mubr.bf16.vlgmr.msra.gmra.mrb[76].mxu1 %v2324_v7  ;;  %v6264_v7 = vld [vmem:[%s6697_s3 + $0xa0] ss:$16 sps:$4 sm:$0xff]  }
 0x716   :  { %2639 = vmatpush1.bf16.msra.mxu0 %v6142_v33  ;;  %2680 = vmatpush1.bf16.msra.mxu1 %v6148_v35  ;;  %7254 = vst [vmem:[#allocation31_spill] sm:$0xff] %v6264_v7 }
 0x717   :  { %2640 = vmatprep.subr.bf16.mxu0 %v6154_v21  ;;  %2681 = vmatprep.subr.bf16.mxu1 %v6160_v22 }
 0x718   :  { %2670 = vmatprep.mubr.bf16.mxu0 %v6985_v1  ;;  %2711 = vmatprep.mubr.bf16.mxu1 %v6985_v1 }
 0x71a   :  { %2641 = vmatpush1.bf16.msra.mxu0 %v6168_v31  ;;  %2682 = vmatpush1.bf16.msra.mxu1 %v6174_v29 }
 0x71b   :  { %2642 = vmatprep.subr.bf16.mxu0 %v6180_v38  ;;  %2683 = vmatprep.subr.bf16.mxu1 %v6186_v25 }
 0x71e   :  { %2643 = vmatpush1.bf16.msra.mxu0 %v6192_v37  ;;  %2684 = vmatpush1.bf16.msra.mxu1 %v6198_v47 }
 0x71f   :  { %2644 = vmatprep.subr.bf16.mxu0 %v6204_v34  ;;  %2685 = vmatprep.subr.bf16.mxu1 %v6210_v18 }
 0x722   :  { %2645 = vmatpush1.bf16.msra.mxu0 %v6216_v52  ;;  %2686 = vmatpush1.bf16.msra.mxu1 %v6222_v5 }
 0x723   :  { %2646 = vmatprep.subr.bf16.mxu0 %v6228_v45  ;;  %2687 = vmatprep.subr.bf16.mxu1 %v6234_v24 }
 0x726   :  { %2647 = vmatpush1.bf16.msra.mxu0 %v6240_v59  ;;  %2688 = vmatpush1.bf16.msra.mxu1 %v6246_v4  ;;  %v6270_v4 = vld [vmem:[%s6697_s3 + $0xa8] ss:$16 sps:$4 sm:$0xff]  }
 0x727   :  { %2648 = vmatprep.subr.bf16.mxu0 %v6252_v61  ;;  %2689 = vmatprep.subr.bf16.mxu1 %v6258_v42  ;;  %7255 = vst [vmem:[#allocation32_spill] sm:$0xff] %v6270_v4  ;;  %v6276_v61 = vld [vmem:[%s6697_s3 + $0xc4] ss:$16 sps:$4 sm:$0xff]   ;;  %v6282_v42 = vld [vmem:[%s6697_s3 + $0xcc] ss:$16 sps:$4 sm:$0xff]  }
 0x728   :  { %7256 = vst [vmem:[#allocation33_spill] sm:$0xff] %v6276_v61  ;;  %7257 = vst [vmem:[#allocation34_spill] sm:$0xff] %v6282_v42 }
 0x72a   :  { %2649 = vmatpush1.bf16.msra.mxu0 %v6264_v7  ;;  %2690 = vmatpush1.bf16.msra.mxu1 %v6270_v4  ;;  %v6288_v7 = vld [vmem:[%s6697_s3 + $0xc0] ss:$16 sps:$4 sm:$0xff]   ;;  %v6294_v4 = vld [vmem:[%s6697_s3 + $0xc8] ss:$16 sps:$4 sm:$0xff]  }
 0x72b   :  { %2650 = vmatprep.subr.bf16.mxu0 %v6276_v61  ;;  %2691 = vmatprep.subr.bf16.mxu1 %v6282_v42  ;;  %7258 = vst [vmem:[#allocation35_spill] sm:$0xff] %v6288_v7  ;;  %7259 = vst [vmem:[#allocation36_spill] sm:$0xff] %v6294_v4  ;;  %v6300_v61 = vld [vmem:[%s6697_s3 + $0xe4] ss:$16 sps:$4 sm:$0xff]   ;;  %v6306_v42 = vld [vmem:[%s6697_s3 + $0xec] ss:$16 sps:$4 sm:$0xff]  }
 0x72c   :  { %7260 = vst [vmem:[#allocation47_spill] sm:$0xff] %v6300_v61  ;;  %7261 = vst [vmem:[#allocation50_spill] sm:$0xff] %v6306_v42 }
 0x72e   :  { %2651 = vmatpush1.bf16.msra.mxu0 %v6288_v7  ;;  %2692 = vmatpush1.bf16.msra.mxu1 %v6294_v4  ;;  %v6312_v7 = vld [vmem:[%s6697_s3 + $0xe0] ss:$16 sps:$4 sm:$0xff]   ;;  %v6318_v4 = vld [vmem:[%s6697_s3 + $0xe8] ss:$16 sps:$4 sm:$0xff]  }
 0x72f   :  { %2652 = vmatprep.subr.bf16.mxu0 %v6300_v61  ;;  %2693 = vmatprep.subr.bf16.mxu1 %v6306_v42  ;;  %7262 = vst [vmem:[#allocation51_spill] sm:$0xff] %v6312_v7  ;;  %7263 = vst [vmem:[#allocation52_spill] sm:$0xff] %v6318_v4  ;;  %v6324_v61 = vld [vmem:[%s6698_s2 + $0x4] ss:$16 sps:$4 sm:$0xff]   ;;  %v6330_v42 = vld [vmem:[%s6698_s2 + $0xc] ss:$16 sps:$4 sm:$0xff]  }
 0x730   :  { %7264 = vst [vmem:[#allocation53_spill] sm:$0xff] %v6324_v61  ;;  %7265 = vst [vmem:[#allocation54_spill] sm:$0xff] %v6330_v42 }
 0x732   :  { %2653 = vmatpush1.bf16.msra.mxu0 %v6312_v7  ;;  %2694 = vmatpush1.bf16.msra.mxu1 %v6318_v4 }
 0x733   :  { %2720 = vmatprep.subr.bf16.mxu0 %v6324_v61  ;;  %2761 = vmatprep.subr.bf16.mxu1 %v6330_v42 }
 0x7a8   :  { %v2359_v7 = vpop.f32.mrb[60].mxu0  ;;  %v2400_v59 = vpop.f32.mrb[68].mxu1 }
 0x7a9   :  { %v2361_v24 = vpop.f32.mrb[61].mxu0  ;;  %v2402_v45 = vpop.f32.mrb[69].mxu1 }
 0x7aa   :  { %v2363_v5 = vpop.f32.mrb[62].mxu0  ;;  %v2404_v4 = vpop.f32.mrb[70].mxu1 }
 0x7ab   :  { %v2364_v52 = vpop.f32.mrb[63].mxu0  ;;  %v2405_v18 = vpop.f32.mrb[71].mxu1 }
 0x7c8   :  { %v2441_v34 = vpop.f32.mrb[64].mxu0  ;;  %v2482_v47 = vpop.f32.mrb[72].mxu1 }
 0x7c9   :  { %v2442_v37 = vadd.f32 %v2441_v34, %v2359_v7  ;;  %v2483_v25 = vadd.f32 %v2482_v47, %v2400_v59  ;;  %v2443_v61 = vpop.f32.mrb[65].mxu0  ;;  %v2484_v38 = vpop.f32.mrb[73].mxu1 }
 0x7ca   :  { %v2444_v29 = vadd.f32 %v2443_v61, %v2361_v24  ;;  %v2485_v31 = vadd.f32 %v2484_v38, %v2402_v45  ;;  %v2445_v22 = vpop.f32.mrb[66].mxu0  ;;  %v2486_v21 = vpop.f32.mrb[74].mxu1 }
 0x7cb   :  { %v2489_v42 = vadd.f32 %v2442_v37, %v4906_v13  ;;  %v2446_v35 = vpop.f32.mrb[67].mxu0  ;;  %v2487_v33 = vpop.f32.mrb[75].mxu1  ;;  %v2491_v47 = vadd.f32 %v2483_v25, %v4915_v10 }
 0x7cc   :  { %v2490_v56 = vadd.f32 %v2444_v29, %v4908_v55  ;;  %v2492_v18 = vadd.f32 %v2485_v31, %v4912_v11  ;;  %v3490_v33 = vld [vmem:[%s6699_s0 + $0x60] sm:$0xff] }
 0x7cd   :  { %v3487_v5 = vmul.f32 -1.442695, %v2489_v42  ;;  %v2523_v22 = vunpack.c.l.bf16 %v3490_v33  ;;  %v2524_v31 = vunpack.c.h.bf16 %v3490_v33 }
 0x7ce   :  { %v3488_v4 = vmul.f32 -1.442695, %v2490_v56  ;;  %v3489_v34 = vmul.f32 -1.442695, %v2492_v18 }
 0x7cf   :  { %3914 = vpow2.f32 %v3487_v5  ;;  %v3491_v5 = vld [vmem:[%s6699_s0 + $0x68] sm:$0xff] }
 0x7d0   :  { %3916 = vpow2.f32 %v3488_v4 }
 0x7d1   :  { %3918 = vpow2.f32 %v3489_v34 }
 0x7d2   :  { %3920 = vtanh.f32 %v2491_v47 }
 0x7d9   :  { %v3915_v52 = vpop.eup %3914 }
 0x7da   :  { %v3917_v24 = vpop.eup %3916  ;;  %v2496_v38 = vadd.f32 1.0, %v3915_v52 }
 0x7db   :  { %v2502_v21 = vadd.f32 1.0, %v3917_v24  ;;  %v3919_v56 = vpop.eup %3918 }
 0x7dc   :  { %3922 = vrcp.f32 %v2496_v38  ;;  %v3921_v35 = vpop.eup %3920  ;;  %v2509_v25 = vadd.f32 1.0, %v3919_v56 }
 0x7dd   :  { %3924 = vrcp.f32 %v2502_v21 }
 0x7de   :  { %3926 = vrcp.f32 %v2509_v25 }
 0x7e6   :  { %v3923_v29 = vpop.eup %3922 }
 0x7e7   :  { %v3925_v37 = vpop.eup %3924  ;;  %v2513_v45 = vmul.f32 %v3923_v29, %v3921_v35 }
 0x7e8   :  { %v2512_v59 = vmul.f32 %v3925_v37, %v5964_v32  ;;  %v2561_v61 = vpop.f32.mrb[68].mxu0  ;;  %v2602_v42 = vpop.f32.mrb[76].mxu1  ;;  %v2526_v32 = vunpack.c.h.bf16 %v3491_v5 }
 0x7e9   :  { %v2609_v7 = vadd.f32 %v2561_v61, %v2523_v22  ;;  %v2563_v4 = vpop.f32.mrb[69].mxu0  ;;  %v2604_v18 = vpop.f32.mrb[77].mxu1  ;;  %v2525_v22 = vunpack.c.l.bf16 %v3491_v5  ;;  %v6358_v5 = vld [vmem:[%s6698_s2 + $0x2c] ss:$16 sps:$4 sm:$0xff]  }
 0x7ea   :  { %v6344_v34 = vadd.f32 %v2513_v45, %v2512_v59  ;;  %v2610_v47 = vadd.f32 %v2563_v4, %v2524_v31  ;;  %v2565_v52 = vpop.f32.mrb[70].mxu0  ;;  %v2606_v24 = vpop.f32.mrb[78].mxu1  ;;  %v2612_v35 = vadd.f32 %v2604_v18, %v2526_v32  ;;  %v6366_v18 = vld [vmem:[%s6698_s2 + $0x20] ss:$16 sps:$4 sm:$0xff]  }
 0x7eb   :  { %v3492_v38 = vmul.f32 -1.442695, %v2609_v7  ;;  %v2566_v21 = vpop.f32.mrb[71].mxu0  ;;  %v2607_v33 = vpop.f32.mrb[79].mxu1  ;;  %v2611_v61 = vadd.f32 %v2602_v42, %v2525_v22  ;;  %v6352_v42 = vld [vmem:[%s6698_s2 + $0x24] ss:$16 sps:$4 sm:$0xff]  }
 0x7ec   :  { %v3493_v56 = vmul.f32 -1.442695, %v2610_v47  ;;  %3928 = vtanh.f32 %v6344_v34  ;;  %v3494_v29 = vmul.f32 -1.442695, %v2612_v35  ;;  %v3927_v37 = vpop.eup %3926  ;;  %v6372_v47 = vld [vmem:[%s6698_s2 + $0x28] ss:$16 sps:$4 sm:$0xff]  }
 0x7ed   :  { %3930 = vpow2.f32 %v3492_v38  ;;  %v6378_v24 = vld [vmem:[%s6698_s2 + $0x44] ss:$16 sps:$4 sm:$0xff]   ;;  %v6384_v38 = vld [vmem:[%s6698_s2 + $0x4c] ss:$16 sps:$4 sm:$0xff]   ;;  %v6390_v32 = vld [vmem:[%s6698_s2 + $0x40] ss:$16 sps:$4 sm:$0xff]  }
 0x7ee   :  { %3932 = vpow2.f32 %v3493_v56  ;;  %v6396_v35 = vld [vmem:[%s6698_s2 + $0x48] ss:$16 sps:$4 sm:$0xff]  }
 0x7ef   :  { %3934 = vpow2.f32 %v3494_v29 }
 0x7f0   :  { %3936 = vtanh.f32 %v2611_v61  ;;  %v6402_v61 = vld [vmem:[%s6698_s2 + $0x64] ss:$16 sps:$4 sm:$0xff]  }
 0x7f6   :  { %v3929_v45 = vpop.eup %3928 }
 0x7f7   :  { %v3931_v59 = vpop.eup %3930  ;;  %v2516_v31 = vmul.f32 %v3929_v45, %v3927_v37  ;;  %v6408_v45 = vld [vmem:[%s6698_s2 + $0x6c] ss:$16 sps:$4 sm:$0xff]  }
 0x7f8   :  { %v3933_v4 = vpop.eup %3932  ;;  %v2616_v52 = vadd.f32 1.0, %v3931_v59 }
 0x7f9   :  { %v2622_v25 = vadd.f32 1.0, %v3933_v4  ;;  %v2517_v7 = vpack.c.bf16 %v2516_v31, %v2516_v31  ;;  %v3935_v21 = vpop.eup %3934  ;;  %v6417_v4 = vld [vmem:[%s6698_s2 + $0x60] ss:$16 sps:$4 sm:$0xff]  }
 0x7fa   :  { %3938 = vrcp.f32 %v2616_v52  ;;  %v3937_v33 = vpop.eup %3936  ;;  %v2629_v37 = vadd.f32 1.0, %v3935_v21  ;;  %v6423_v52 = vld [vmem:[%s6698_s2 + $0x68] ss:$16 sps:$4 sm:$0xff]  }
 0x7fb   :  { %3940 = vrcp.f32 %v2622_v25  ;;  %2519 = vst [vmem:[#allocation2 + $0x14] sm:$0xf] %v2517_v7  ;;  %2671 = vmatmul.mubr.bf16.vlgmr.msra.gmra.mrb[72].mxu0 %v2517_v7  ;;  %2712 = vmatmul.mubr.bf16.vlgmr.msra.gmra.mrb[80].mxu1 %v2517_v7  ;;  %v6435_v25 = vld [vmem:[%s6698_s2 + $0x8c] ss:$16 sps:$4 sm:$0xff]   ;;  %v6442_v7 = vld [vmem:[%s6698_s2 + $0x80] ss:$16 sps:$4 sm:$0xff]  }
 0x7fc   :  { %2721 = vmatpush1.bf16.msra.mxu0 %v5970_v43  ;;  %2762 = vmatpush1.bf16.msra.mxu1 %v5976_v26  ;;  %3942 = vrcp.f32 %v2629_v37  ;;  %v6448_v21 = vld [vmem:[%s6698_s2 + $0x88] ss:$16 sps:$4 sm:$0xff]   ;;  %v6478_v37 = vld [vmem:[%s6698_s2 + $0xc4] ss:$16 sps:$4 sm:$0xff]  }
 0x7fd   :  { %2722 = vmatprep.subr.bf16.mxu0 %v6352_v42  ;;  %2763 = vmatprep.subr.bf16.mxu1 %v6358_v5  ;;  %7266 = vst [vmem:[#allocation3_spill] sm:$0xff] %v6448_v21  ;;  %7271 = vst [vmem:[#allocation15_spill] sm:$0xff] %v6478_v37 }
 0x7fe   :  { %2752 = vmatprep.mubr.bf16.mxu0 %v6985_v1  ;;  %2793 = vmatprep.mubr.bf16.mxu1 %v6985_v1 }
 0x800   :  { %2723 = vmatpush1.bf16.msra.mxu0 %v6366_v18  ;;  %2764 = vmatpush1.bf16.msra.mxu1 %v6372_v47 }
 0x801   :  { %2724 = vmatprep.subr.bf16.mxu0 %v6378_v24  ;;  %2765 = vmatprep.subr.bf16.mxu1 %v6384_v38 }
 0x804   :  { %v3939_v56 = vpop.eup %3938  ;;  %2725 = vmatpush1.bf16.msra.mxu0 %v6390_v32  ;;  %2766 = vmatpush1.bf16.msra.mxu1 %v6396_v35 }
 0x805   :  { %v3941_v22 = vpop.eup %3940  ;;  %v2633_v29 = vmul.f32 %v3939_v56, %v3937_v33  ;;  %2726 = vmatprep.subr.bf16.mxu0 %v6402_v61  ;;  %2767 = vmatprep.subr.bf16.mxu1 %v6408_v45  ;;  %v6454_v33 = vld [vmem:[%s6698_s2 + $0xa4] ss:$16 sps:$4 sm:$0xff]   ;;  %v6460_v56 = vld [vmem:[%s6698_s2 + $0xac] ss:$16 sps:$4 sm:$0xff]  }
 0x806   :  { %v2632_v59 = vmul.f32 %v3941_v22, %v5992_v20  ;;  %v6429_v20 = vld [vmem:[%s6698_s2 + $0x84] ss:$16 sps:$4 sm:$0xff]   ;;  %7267 = vst [vmem:[#allocation11_spill] sm:$0xff] %v6454_v33  ;;  %7268 = vst [vmem:[#allocation13_spill] sm:$0xff] %v6460_v56  ;;  %v6466_v22 = vld [vmem:[%s6698_s2 + $0xa0] ss:$16 sps:$4 sm:$0xff]  }
 0x807   :  { %7269 = vst [vmem:[#allocation12_spill] sm:$0xff] %v6466_v22 }
 0x808   :  { %v6412_v31 = vadd.f32 %v2633_v29, %v2632_v59  ;;  %2727 = vmatpush1.bf16.msra.mxu0 %v6417_v4  ;;  %2768 = vmatpush1.bf16.msra.mxu1 %v6423_v52  ;;  %v6472_v29 = vld [vmem:[%s6698_s2 + $0xa8] ss:$16 sps:$4 sm:$0xff]   ;;  %v6484_v59 = vld [vmem:[%s6698_s2 + $0xcc] ss:$16 sps:$4 sm:$0xff]  }
 0x809   :  { %2728 = vmatprep.subr.bf16.mxu0 %v6429_v20  ;;  %2769 = vmatprep.subr.bf16.mxu1 %v6435_v25  ;;  %7270 = vst [vmem:[#allocation14_spill] sm:$0xff] %v6472_v29  ;;  %7272 = vst [vmem:[#allocation17_spill] sm:$0xff] %v6484_v59 }
 0x80a   :  { %3944 = vtanh.f32 %v6412_v31 }
 0x80c   :  { %2729 = vmatpush1.bf16.msra.mxu0 %v6442_v7  ;;  %2770 = vmatpush1.bf16.msra.mxu1 %v6448_v21 }
 0x80d   :  { %2730 = vmatprep.subr.bf16.mxu0 %v6454_v33  ;;  %2771 = vmatprep.subr.bf16.mxu1 %v6460_v56  ;;  %v6508_v33 = vld [vmem:[%s6698_s2 + $0xec] ss:$16 sps:$4 sm:$0xff]  }
 0x810   :  { %2731 = vmatpush1.bf16.msra.mxu0 %v6466_v22  ;;  %2772 = vmatpush1.bf16.msra.mxu1 %v6472_v29  ;;  %v3943_v22 = vpop.eup %3942  ;;  %v6490_v29 = vld [vmem:[%s6698_s2 + $0xc0] ss:$16 sps:$4 sm:$0xff]  }
 0x811   :  { %2732 = vmatprep.subr.bf16.mxu0 %v6478_v37  ;;  %2773 = vmatprep.subr.bf16.mxu1 %v6484_v59  ;;  %7273 = vst [vmem:[#allocation16_spill] sm:$0xff] %v6490_v29  ;;  %v6496_v37 = vld [vmem:[%s6698_s2 + $0xc8] ss:$16 sps:$4 sm:$0xff]   ;;  %v6502_v59 = vld [vmem:[%s6698_s2 + $0xe4] ss:$16 sps:$4 sm:$0xff]  }
 0x812   :  { %7274 = vst [vmem:[#allocation18_spill] sm:$0xff] %v6496_v37  ;;  %7275 = vst [vmem:[#allocation19_spill] sm:$0xff] %v6502_v59 }
 0x814   :  { %v3945_v56 = vpop.eup %3944  ;;  %2733 = vmatpush1.bf16.msra.mxu0 %v6490_v29  ;;  %2774 = vmatpush1.bf16.msra.mxu1 %v6496_v37  ;;  %v6514_v37 = vld [vmem:[%s6698_s2 + $0xe0] ss:$16 sps:$4 sm:$0xff]  }
 0x815   :  { %2734 = vmatprep.subr.bf16.mxu0 %v6502_v59  ;;  %2775 = vmatprep.subr.bf16.mxu1 %v6508_v33  ;;  %v2636_v29 = vmul.f32 %v3945_v56, %v3943_v22  ;;  %v6520_v59 = vld [vmem:[%s6698_s2 + $0xe8] ss:$16 sps:$4 sm:$0xff]  }
 0x817   :  { %v2637_v21 = vpack.c.bf16 %v2636_v29, %v2636_v29 }
 0x818   :  { %2735 = vmatpush1.bf16.msra.mxu0 %v6514_v37  ;;  %2776 = vmatpush1.bf16.msra.mxu1 %v6520_v59 }
 0x819   :  { %2840 = vmatprep.subr.bf16.mxu0 %v5806_v27  ;;  %2881 = vmatprep.subr.bf16.mxu1 %v6017_v14  ;;  %v7276_v27 = vld [vmem:[#allocation22_spill] sm:$0xff]  ;;  %v7283_v14 = vld [vmem:[#allocation41_spill] sm:$0xff] }
 0x81b   :  { %2753 = vmatmul.mubr.bf16.vlgmr.msra.gmra.mrb[76].mxu0 %v2637_v21  ;;  %2794 = vmatmul.mubr.bf16.vlgmr.msra.gmra.mrb[84].mxu1 %v2637_v21 }
 0x81c   :  { %2841 = vmatpush1.bf16.msra.mxu0 %v5813_v30  ;;  %2882 = vmatpush1.bf16.msra.mxu1 %v6024_v46  ;;  %v7277_v30 = vld [vmem:[#allocation23_spill] sm:$0xff]  ;;  %v7284_v46 = vld [vmem:[#allocation5_spill] sm:$0xff] }
 0x81d   :  { %2842 = vmatprep.subr.bf16.mxu0 %v5820_v58  ;;  %2883 = vmatprep.subr.bf16.mxu1 %v6031_v3  ;;  %v7278_v58 = vld [vmem:[#allocation24_spill] sm:$0xff] }
 0x81e   :  { %2872 = vmatprep.mubr.bf16.mxu0 %v6985_v1  ;;  %2913 = vmatprep.mubr.bf16.mxu1 %v6985_v1  ;;  %v7285_v3 = vld [vmem:[#allocation4_spill] sm:$0xff] }
 0x820   :  { %2843 = vmatpush1.bf16.msra.mxu0 %v5829_v50  ;;  %2884 = vmatpush1.bf16.msra.mxu1 %v6040_v54  ;;  %v7279_v50 = vld [vmem:[#allocation37_spill] sm:$0xff]  ;;  %v7286_v54 = vld [vmem:[#allocation6_spill] sm:$0xff] }
 0x821   :  { %2844 = vmatprep.subr.bf16.mxu0 %v5836_v62  ;;  %2885 = vmatprep.subr.bf16.mxu1 %v6047_v60  ;;  %v7280_v62 = vld [vmem:[#allocation38_spill] sm:$0xff]  ;;  %v7287_v60 = vld [vmem:[#allocation7_spill] sm:$0xff] }
 0x824   :  { %2845 = vmatpush1.bf16.msra.mxu0 %v5843_v0  ;;  %2886 = vmatpush1.bf16.msra.mxu1 %v6054_v44  ;;  %v7281_v0 = vld [vmem:[#allocation39_spill] sm:$0xff]  ;;  %v7288_v44 = vld [vmem:[#allocation9_spill] sm:$0xff] }
 0x825   :  { %2846 = vmatprep.subr.bf16.mxu0 %v5850_v12  ;;  %2887 = vmatprep.subr.bf16.mxu1 %v6061_v6  ;;  %v7282_v12 = vld [vmem:[#allocation40_spill] sm:$0xff] }
 0x826   :  { %v7289_v6 = vld [vmem:[#allocation8_spill] sm:$0xff] }
 0x828   :  { %2847 = vmatpush1.bf16.msra.mxu0 %v7224_v41  ;;  %2888 = vmatpush1.bf16.msra.mxu1 %v6068_v53  ;;  %v7290_v41 = vld [vmem:[#allocation10_spill] sm:$0xff]  ;;  %v7291_v53 = vld [vmem:[#allocation25_spill] sm:$0xff] }
 0x829   :  { %2848 = vmatprep.subr.bf16.mxu0 %v7225_v2  ;;  %2889 = vmatprep.subr.bf16.mxu1 %v6075_v23  ;;  %v7292_v2 = vld [vmem:[#allocation26_spill] sm:$0xff]  ;;  %v7293_v23 = vld [vmem:[#allocation27_spill] sm:$0xff] }
 0x82c   :  { %2849 = vmatpush1.bf16.msra.mxu0 %v7226_v16  ;;  %2890 = vmatpush1.bf16.msra.mxu1 %v6082_v39  ;;  %v7294_v16 = vld [vmem:[#allocation28_spill] sm:$0xff]  ;;  %v7295_v39 = vld [vmem:[#allocation29_spill] sm:$0xff] }
 0x82d   :  { %2850 = vmatprep.subr.bf16.mxu0 %v7227_v57  ;;  %2891 = vmatprep.subr.bf16.mxu1 %v6089_v36  ;;  %v7296_v57 = vld [vmem:[#allocation30_spill] sm:$0xff]  ;;  %v7297_v36 = vld [vmem:[#allocation31_spill] sm:$0xff] }
 0x830   :  { %2851 = vmatpush1.bf16.msra.mxu0 %v7228_v49  ;;  %2892 = vmatpush1.bf16.msra.mxu1 %v6096_v51  ;;  %v7298_v49 = vld [vmem:[#allocation32_spill] sm:$0xff]  ;;  %v7299_v51 = vld [vmem:[#allocation33_spill] sm:$0xff] }
 0x831   :  { %2852 = vmatprep.subr.bf16.mxu0 %v7229_v17  ;;  %2893 = vmatprep.subr.bf16.mxu1 %v6103_v40  ;;  %v7300_v17 = vld [vmem:[#allocation34_spill] sm:$0xff]  ;;  %v7301_v40 = vld [vmem:[#allocation35_spill] sm:$0xff] }
 0x834   :  { %2853 = vmatpush1.bf16.msra.mxu0 %v7230_v28  ;;  %2894 = vmatpush1.bf16.msra.mxu1 %v6110_v15  ;;  %v7302_v28 = vld [vmem:[#allocation36_spill] sm:$0xff]  ;;  %v7303_v15 = vld [vmem:[#allocation47_spill] sm:$0xff] }
 0x835   :  { %2854 = vmatprep.subr.bf16.mxu0 %v7231_v9  ;;  %2895 = vmatprep.subr.bf16.mxu1 %v6117_v63  ;;  %v7304_v9 = vld [vmem:[#allocation50_spill] sm:$0xff]  ;;  %v7305_v63 = vld [vmem:[#allocation51_spill] sm:$0xff] }
 0x838   :  { %2855 = vmatpush1.bf16.msra.mxu0 %v7232_v48  ;;  %2896 = vmatpush1.bf16.msra.mxu1 %v6124_v19  ;;  %v7306_v48 = vld [vmem:[#allocation52_spill] sm:$0xff]  ;;  %v7307_v19 = vld [vmem:[#allocation53_spill] sm:$0xff] }
 0x839   :  { %2951 = vmatprep.subr.bf16.mxu0 %v6130_v8  ;;  %2992 = vmatprep.subr.bf16.mxu1 %v7276_v27  ;;  %v7308_v8 = vld [vmem:[#allocation54_spill] sm:$0xff] }
 0x83b   :  { %2873 = vmatmul.mubr.bf16.vlgmr.msra.gmra.mrb[80].mxu0 %v2637_v21  ;;  %2914 = vmatmul.mubr.bf16.vlgmr.msra.gmra.mrb[88].mxu1 %v2637_v21 }
 0x83c   :  { %2952 = vmatpush1.bf16.msra.mxu0 %v7277_v30  ;;  %2993 = vmatpush1.bf16.msra.mxu1 %v7278_v58 }
 0x83d   :  { %2953 = vmatprep.subr.bf16.mxu0 %v7279_v50  ;;  %2994 = vmatprep.subr.bf16.mxu1 %v7280_v62 }
 0x83e   :  { %2983 = vmatprep.mubr.bf16.mxu0 %v6985_v1  ;;  %3024 = vmatprep.mubr.bf16.mxu1 %v6985_v1 }
 0x840   :  { %2954 = vmatpush1.bf16.msra.mxu0 %v7281_v0  ;;  %2995 = vmatpush1.bf16.msra.mxu1 %v7282_v12 }
 0x841   :  { %2955 = vmatprep.subr.bf16.mxu0 %v7283_v14  ;;  %2996 = vmatprep.subr.bf16.mxu1 %v7284_v46 }
 0x844   :  { %2956 = vmatpush1.bf16.msra.mxu0 %v7285_v3  ;;  %2997 = vmatpush1.bf16.msra.mxu1 %v7286_v54 }
 0x845   :  { %2957 = vmatprep.subr.bf16.mxu0 %v7287_v60  ;;  %2998 = vmatprep.subr.bf16.mxu1 %v7288_v44 }
 0x848   :  { %2958 = vmatpush1.bf16.msra.mxu0 %v7289_v6  ;;  %2999 = vmatpush1.bf16.msra.mxu1 %v7290_v41 }
 0x849   :  { %2959 = vmatprep.subr.bf16.mxu0 %v7291_v53  ;;  %3000 = vmatprep.subr.bf16.mxu1 %v7292_v2 }
 0x84c   :  { %2960 = vmatpush1.bf16.msra.mxu0 %v7293_v23  ;;  %3001 = vmatpush1.bf16.msra.mxu1 %v7294_v16 }
 0x84d   :  { %2961 = vmatprep.subr.bf16.mxu0 %v7295_v39  ;;  %3002 = vmatprep.subr.bf16.mxu1 %v7296_v57 }
 0x850   :  { %2962 = vmatpush1.bf16.msra.mxu0 %v7297_v36  ;;  %3003 = vmatpush1.bf16.msra.mxu1 %v7298_v49 }
 0x851   :  { %2963 = vmatprep.subr.bf16.mxu0 %v7299_v51  ;;  %3004 = vmatprep.subr.bf16.mxu1 %v7300_v17 }
 0x854   :  { %2964 = vmatpush1.bf16.msra.mxu0 %v7301_v40  ;;  %3005 = vmatpush1.bf16.msra.mxu1 %v7302_v28 }
 0x855   :  { %2965 = vmatprep.subr.bf16.mxu0 %v7303_v15  ;;  %3006 = vmatprep.subr.bf16.mxu1 %v7304_v9  ;;  %v3498_v15 = vld [vmem:[%s6699_s0 + $0x70] sm:$0xff] }
 0x858   :  { %2966 = vmatpush1.bf16.msra.mxu0 %v7305_v63  ;;  %3007 = vmatpush1.bf16.msra.mxu1 %v7306_v48  ;;  %v2836_v48 = vunpack.c.l.bf16 %v3498_v15 }
 0x859   :  { %3033 = vmatprep.subr.bf16.mxu0 %v7307_v19  ;;  %3074 = vmatprep.subr.bf16.mxu1 %v7308_v8  ;;  %v2837_v8 = vunpack.c.h.bf16 %v3498_v15 }
 0x8ce   :  { %v2672_v21 = vpop.f32.mrb[72].mxu0  ;;  %v2713_v56 = vpop.f32.mrb[80].mxu1 }
 0x8cf   :  { %v2674_v22 = vpop.f32.mrb[73].mxu0  ;;  %v2715_v29 = vpop.f32.mrb[81].mxu1 }
 0x8d0   :  { %v2676_v27 = vpop.f32.mrb[74].mxu0  ;;  %v2717_v30 = vpop.f32.mrb[82].mxu1 }
 0x8d1   :  { %v2677_v58 = vpop.f32.mrb[75].mxu0  ;;  %v2718_v50 = vpop.f32.mrb[83].mxu1 }
 0x8d2   :  { %v3499_v50 = vld [vmem:[%s6699_s0 + $0x78] sm:$0xff] }
 0x8ee   :  { %v2754_v62 = vpop.f32.mrb[76].mxu0  ;;  %v2795_v0 = vpop.f32.mrb[84].mxu1 }
 0x8ef   :  { %v2755_v12 = vadd.f32 %v2754_v62, %v2672_v21  ;;  %v2796_v14 = vadd.f32 %v2795_v0, %v2713_v56  ;;  %v2756_v46 = vpop.f32.mrb[77].mxu0  ;;  %v2797_v3 = vpop.f32.mrb[85].mxu1 }
 0x8f0   :  { %v2757_v54 = vadd.f32 %v2756_v46, %v2674_v22  ;;  %v2798_v60 = vadd.f32 %v2797_v3, %v2715_v29  ;;  %v2758_v44 = vpop.f32.mrb[78].mxu0  ;;  %v2799_v6 = vpop.f32.mrb[86].mxu1 }
 0x8f1   :  { %v2802_v41 = vadd.f32 %v2755_v12, %v4906_v13  ;;  %v2759_v53 = vpop.f32.mrb[79].mxu0  ;;  %v2800_v2 = vpop.f32.mrb[87].mxu1  ;;  %v2804_v49 = vadd.f32 %v2796_v14, %v4915_v10 }
 0x8f2   :  { %v2803_v23 = vadd.f32 %v2757_v54, %v4908_v55  ;;  %v2805_v57 = vadd.f32 %v2798_v60, %v4912_v11  ;;  %v2838_v53 = vunpack.c.l.bf16 %v3499_v50 }
 0x8f3   :  { %v3495_v16 = vmul.f32 -1.442695, %v2802_v41 }
 0x8f4   :  { %v3496_v39 = vmul.f32 -1.442695, %v2803_v23  ;;  %v3497_v36 = vmul.f32 -1.442695, %v2805_v57 }
 0x8f5   :  { %3946 = vpow2.f32 %v3495_v16 }
 0x8f6   :  { %3948 = vpow2.f32 %v3496_v39 }
 0x8f7   :  { %3950 = vpow2.f32 %v3497_v36 }
 0x8f8   :  { %3952 = vtanh.f32 %v2804_v49 }
 0x8ff   :  { %v3947_v51 = vpop.eup %3946 }
 0x900   :  { %v3949_v17 = vpop.eup %3948  ;;  %v2809_v40 = vadd.f32 1.0, %v3947_v51 }
 0x901   :  { %v2815_v28 = vadd.f32 1.0, %v3949_v17  ;;  %v3951_v9 = vpop.eup %3950 }
 0x902   :  { %3954 = vrcp.f32 %v2809_v40  ;;  %v3953_v63 = vpop.eup %3952  ;;  %v2822_v22 = vadd.f32 1.0, %v3951_v9  ;;  %v3726_v9 = vld [vmem:[%s6701_s5] sm:$0xff]  }
 0x903   :  { %3956 = vrcp.f32 %v2815_v28 }
 0x904   :  { %3958 = vrcp.f32 %v2822_v22  ;;  %v3735_v22 = vld [vmem:[#allocation2 + $0x8] sm:$0xff]  }
 0x90c   :  { %v3955_v19 = vpop.eup %3954 }
 0x90d   :  { %v3957_v21 = vpop.eup %3956  ;;  %v2826_v56 = vmul.f32 %v3955_v19, %v3953_v63  ;;  %v3729_v19 = vld [vmem:[%s6701_s5 + $0x10] sm:$0xff]  }
 0x90e   :  { %v2825_v29 = vmul.f32 %v3957_v21, %v6344_v34  ;;  %v2874_v27 = vpop.f32.mrb[80].mxu0  ;;  %v2915_v30 = vpop.f32.mrb[88].mxu1  ;;  %v2839_v34 = vunpack.c.h.bf16 %v3499_v50  ;;  %v3733_v21 = vld [vmem:[%s6701_s5 + $0x30] sm:$0xff]  }
 0x90f   :  { %v2922_v58 = vadd.f32 %v2874_v27, %v2836_v48  ;;  %v2876_v62 = vpop.f32.mrb[81].mxu0  ;;  %v2917_v0 = vpop.f32.mrb[89].mxu1  ;;  %v2924_v16 = vadd.f32 %v2915_v30, %v2838_v53  ;;  %v3728_v48 = vld [vmem:[%s6701_s5 + $0x8] sm:$0xff]  }
 0x910   :  { %v6604_v12 = vadd.f32 %v2826_v56, %v2825_v29  ;;  %v2923_v14 = vadd.f32 %v2876_v62, %v2837_v8  ;;  %v2878_v46 = vpop.f32.mrb[82].mxu0  ;;  %v2919_v3 = vpop.f32.mrb[90].mxu1  ;;  %v2925_v41 = vadd.f32 %v2917_v0, %v2839_v34  ;;  %v3732_v8 = vld [vmem:[%s6701_s5 + $0x28] sm:$0xff]   ;;  %v3734_v56 = vld [vmem:[%s6701_s5 + $0x38] sm:$0xff]   ;;  %v3736_v29 = vld [vmem:[#allocation2 + $0x10] sm:$0xff]  }
 0x911   :  { %v3500_v54 = vmul.f32 -1.442695, %v2922_v58  ;;  %v2879_v60 = vpop.f32.mrb[83].mxu0  ;;  %v2920_v44 = vpop.f32.mrb[91].mxu1 }
 0x912   :  { %v3501_v6 = vmul.f32 -1.442695, %v2923_v14  ;;  %3960 = vtanh.f32 %v6604_v12  ;;  %v3502_v2 = vmul.f32 -1.442695, %v2925_v41  ;;  %v3959_v23 = vpop.eup %3958 }
 0x913   :  { %3962 = vpow2.f32 %v3500_v54 }
 0x914   :  { %3964 = vpow2.f32 %v3501_v6 }
 0x915   :  { %3966 = vpow2.f32 %v3502_v2 }
 0x916   :  { %3968 = vtanh.f32 %v2924_v16 }
 0x91c   :  { %v3961_v39 = vpop.eup %3960 }
 0x91d   :  { %v3963_v57 = vpop.eup %3962  ;;  %v2829_v36 = vmul.f32 %v3961_v39, %v3959_v23 }
 0x91e   :  { %v3965_v49 = vpop.eup %3964  ;;  %v2929_v51 = vadd.f32 1.0, %v3963_v57 }
 0x91f   :  { %v2935_v17 = vadd.f32 1.0, %v3965_v49  ;;  %v2830_v40 = vpack.c.bf16 %v2829_v36, %v2829_v36  ;;  %v3967_v28 = vpop.eup %3966 }
 0x920   :  { %3970 = vrcp.f32 %v2929_v51 }
 0x921   :  { %3972 = vrcp.f32 %v2935_v17  ;;  %2832 = vst [vmem:[#allocation2 + $0x18] sm:$0xf] %v2830_v40  ;;  %2984 = vmatmul.mubr.bf16.vlgmr.msra.gmra.mrb[84].mxu0 %v2830_v40  ;;  %3025 = vmatmul.mubr.bf16.vlgmr.msra.gmra.mrb[92].mxu1 %v2830_v40 }
 0x922   :  { %3034 = vmatpush1.bf16.msra.mxu0 %v5970_v43  ;;  %3075 = vmatpush1.bf16.msra.mxu1 %v5976_v26  ;;  %v3969_v43 = vpop.eup %3968 }
 0x923   :  { %3035 = vmatprep.subr.bf16.mxu0 %v6352_v42  ;;  %3076 = vmatprep.subr.bf16.mxu1 %v6358_v5  ;;  %v2942_v5 = vadd.f32 1.0, %v3967_v28 }
 0x924   :  { %3065 = vmatprep.mubr.bf16.mxu0 %v6985_v1  ;;  %3106 = vmatprep.mubr.bf16.mxu1 %v6985_v1 }
 0x925   :  { %3974 = vrcp.f32 %v2942_v5 }
 0x926   :  { %3036 = vmatpush1.bf16.msra.mxu0 %v6366_v18  ;;  %3077 = vmatpush1.bf16.msra.mxu1 %v6372_v47  ;;  %v7309_v47 = vld [vmem:[#allocation3_spill] sm:$0xff] }
 0x927   :  { %3037 = vmatprep.subr.bf16.mxu0 %v6378_v24  ;;  %3078 = vmatprep.subr.bf16.mxu1 %v6384_v38  ;;  %v7310_v24 = vld [vmem:[#allocation11_spill] sm:$0xff]  ;;  %v7311_v38 = vld [vmem:[#allocation13_spill] sm:$0xff] }
 0x92a   :  { %v3971_v15 = vpop.eup %3970  ;;  %3038 = vmatpush1.bf16.msra.mxu0 %v6390_v32  ;;  %3079 = vmatpush1.bf16.msra.mxu1 %v6396_v35  ;;  %v7312_v32 = vld [vmem:[#allocation12_spill] sm:$0xff]  ;;  %v7313_v35 = vld [vmem:[#allocation14_spill] sm:$0xff] }
 0x92b   :  { %v3973_v26 = vpop.eup %3972  ;;  %v2946_v42 = vmul.f32 %v3971_v15, %v3969_v43  ;;  %3039 = vmatprep.subr.bf16.mxu0 %v6402_v61  ;;  %3080 = vmatprep.subr.bf16.mxu1 %v6408_v45  ;;  %v7314_v61 = vld [vmem:[#allocation15_spill] sm:$0xff]  ;;  %v7315_v45 = vld [vmem:[#allocation17_spill] sm:$0xff] }
 0x92c   :  { %v2945_v1 = vmul.f32 %v3973_v26, %v6412_v31 }
 0x92e   :  { %v2947_v18 = vadd.f32 %v2946_v42, %v2945_v1  ;;  %3040 = vmatpush1.bf16.msra.mxu0 %v6417_v4  ;;  %3081 = vmatpush1.bf16.msra.mxu1 %v6423_v52  ;;  %v7316_v52 = vld [vmem:[#allocation16_spill] sm:$0xff] }
 0x92f   :  { %3041 = vmatprep.subr.bf16.mxu0 %v6429_v20  ;;  %3082 = vmatprep.subr.bf16.mxu1 %v6435_v25  ;;  %v3975_v31 = vpop.eup %3974  ;;  %v7317_v20 = vld [vmem:[#allocation18_spill] sm:$0xff]  ;;  %v7318_v25 = vld [vmem:[#allocation19_spill] sm:$0xff] }
 0x930   :  { %3976 = vtanh.f32 %v2947_v18  ;;  %3147 = vst [vmem:[%s6702_s9] sm:$0xff] %v2947_v18 }
 0x932   :  { %3042 = vmatpush1.bf16.msra.mxu0 %v6442_v7  ;;  %3083 = vmatpush1.bf16.msra.mxu1 %v7309_v47 }
 0x933   :  { %3043 = vmatprep.subr.bf16.mxu0 %v7310_v24  ;;  %3084 = vmatprep.subr.bf16.mxu1 %v7311_v38 }
 0x936   :  { %3044 = vmatpush1.bf16.msra.mxu0 %v7312_v32  ;;  %3085 = vmatpush1.bf16.msra.mxu1 %v7313_v35 }
 0x937   :  { %3045 = vmatprep.subr.bf16.mxu0 %v7314_v61  ;;  %3086 = vmatprep.subr.bf16.mxu1 %v7315_v45 }
 0x93a   :  { %v3977_v4 = vpop.eup %3976  ;;  %3046 = vmatpush1.bf16.msra.mxu0 %v7316_v52  ;;  %3087 = vmatpush1.bf16.msra.mxu1 %v7317_v20 }
 0x93b   :  { %3047 = vmatprep.subr.bf16.mxu0 %v7318_v25  ;;  %3088 = vmatprep.subr.bf16.mxu1 %v6508_v33  ;;  %v2949_v7 = vmul.f32 %v3977_v4, %v3975_v31  ;;  %v3727_v33 = vld [vmem:[#allocation2] sm:$0xff]  }
 0x93d   :  { %v2950_v63 = vpack.c.bf16 %v2949_v7, %v2949_v7  ;;  %3146 = vst [vmem:[%s6703_s8] sm:$0xff] %v2949_v7 }
 0x93e   :  { %3048 = vmatpush1.bf16.msra.mxu0 %v6514_v37  ;;  %3089 = vmatpush1.bf16.msra.mxu1 %v6520_v59  ;;  %v3730_v37 = vld [vmem:[%s6701_s5 + $0x18] sm:$0xff]   ;;  %v3731_v59 = vld [vmem:[%s6701_s5 + $0x20] sm:$0xff]  }
 0x93f   :  { %3556 = vmatprep.subr.bf16.mxu0 %v3726_v9 }
 0x941   :  { %3066 = vmatmul.mubr.bf16.vlgmr.msra.gmra.mrb[88].mxu0 %v2950_v63  ;;  %3107 = vmatmul.mubr.bf16.vlgmr.msra.gmra.mrb[96].mxu1 %v2950_v63 }
 0x942   :  { %3557 = vmatpush3.bf16.msra.mxu0 %v3726_v9  ;;  %3572 = vmatprep.mubr.bf16.mxu0 %v3727_v33 }
 0x943   :  { %3558 = vmatprep.subr.bf16.mxu0 %v3728_v48 }
 0x946   :  { %3559 = vmatpush3.bf16.msra.mxu0 %v3728_v48 }
 0x947   :  { %3560 = vmatprep.subr.bf16.mxu0 %v3729_v19 }
 0x94a   :  { %3561 = vmatpush3.bf16.msra.mxu0 %v3729_v19 }
 0x94b   :  { %3562 = vmatprep.subr.bf16.mxu0 %v3730_v37 }
 0x94e   :  { %3563 = vmatpush3.bf16.msra.mxu0 %v3730_v37 }
 0x94f   :  { %3564 = vmatprep.subr.bf16.mxu0 %v3731_v59 }
 0x952   :  { %3565 = vmatpush3.bf16.msra.mxu0 %v3731_v59 }
 0x953   :  { %3566 = vmatprep.subr.bf16.mxu0 %v3732_v8 }
 0x956   :  { %3567 = vmatpush3.bf16.msra.mxu0 %v3732_v8 }
 0x957   :  { %3568 = vmatprep.subr.bf16.mxu0 %v3733_v21 }
 0x95a   :  { %3569 = vmatpush3.bf16.msra.mxu0 %v3733_v21 }
 0x95b   :  { %3570 = vmatprep.subr.bf16.mxu0 %v3734_v56 }
 0x95e   :  { %3571 = vmatpush3.bf16.msra.mxu0 %v3734_v56 }
 0x961   :  { %3573 = vmatmul.mubr.bf16.vlgmr.msra.gmra.mrb[92].mxu0 %v3735_v22 }
 0x962   :  { %3576 = vmatprep.mubr.bf16.mxu0 %v3736_v29 }
 0x9f4   :  { %v2985_v27 = vpop.f32.mrb[84].mxu0  ;;  %v3026_v30 = vpop.f32.mrb[92].mxu1 }
 0x9f5   :  { %v2987_v58 = vpop.f32.mrb[85].mxu0  ;;  %v3028_v50 = vpop.f32.mrb[93].mxu1 }
 0x9f6   :  { %v2989_v62 = vpop.f32.mrb[86].mxu0  ;;  %v3030_v0 = vpop.f32.mrb[94].mxu1 }
 0x9f7   :  { %v2990_v14 = vpop.f32.mrb[87].mxu0  ;;  %v3031_v46 = vpop.f32.mrb[95].mxu1 }
 0xa14   :  { %v3067_v3 = vpop.f32.mrb[88].mxu0  ;;  %v3108_v54 = vpop.f32.mrb[96].mxu1 }
 0xa15   :  { %v3068_v60 = vadd.f32 %v3067_v3, %v2985_v27  ;;  %v3109_v44 = vadd.f32 %v3108_v54, %v3026_v30  ;;  %v3069_v6 = vpop.f32.mrb[89].mxu0  ;;  %v3110_v34 = vpop.f32.mrb[97].mxu1 }
 0xa16   :  { %v3070_v41 = vadd.f32 %v3069_v6, %v2987_v58  ;;  %v3111_v53 = vadd.f32 %v3110_v34, %v3028_v50  ;;  %v3071_v2 = vpop.f32.mrb[90].mxu0  ;;  %v3112_v23 = vpop.f32.mrb[98].mxu1 }
 0xa17   :  { %v3115_v16 = vadd.f32 %v3068_v60, %v4906_v13  ;;  %v3072_v39 = vpop.f32.mrb[91].mxu0  ;;  %v3113_v57 = vpop.f32.mrb[99].mxu1  ;;  %v3117_v28 = vadd.f32 %v3109_v44, %v4915_v10  ;;  %v3508_v10 = vld [vmem:[%s6704_s6] ss:$0 sm:$0xff] }
 0xa18   :  { %v3116_v36 = vadd.f32 %v3070_v41, %v4908_v55  ;;  %v3118_v17 = vadd.f32 %v3111_v53, %v4912_v11 }
 0xa19   :  { %v3503_v49 = vmul.f32 -1.442695, %v3115_v16 }
 0xa1a   :  { %v3504_v51 = vmul.f32 -1.442695, %v3116_v36  ;;  %v3505_v40 = vmul.f32 -1.442695, %v3118_v17 }
 0xa1b   :  { %3978 = vpow2.f32 %v3503_v49 }
 0xa1c   :  { %3980 = vpow2.f32 %v3504_v51 }
 0xa1d   :  { %3982 = vpow2.f32 %v3505_v40 }
 0xa1e   :  { %3984 = vtanh.f32 %v3117_v28 }
 0xa25   :  { %v3979_v43 = vpop.eup %3978 }
 0xa26   :  { %v3981_v15 = vpop.eup %3980  ;;  %v3122_v26 = vadd.f32 1.0, %v3979_v43 }
 0xa27   :  { %v3128_v42 = vadd.f32 1.0, %v3981_v15  ;;  %v3983_v13 = vpop.eup %3982 }
 0xa28   :  { %3986 = vrcp.f32 %v3122_v26  ;;  %v3985_v5 = vpop.eup %3984  ;;  %v3135_v47 = vadd.f32 1.0, %v3983_v13 }
 0xa29   :  { %3988 = vrcp.f32 %v3128_v42 }
 0xa2a   :  { %3990 = vrcp.f32 %v3135_v47 }
 0xa32   :  { %v3987_v55 = vpop.eup %3986 }
 0xa33   :  { %v3989_v1 = vpop.eup %3988  ;;  %v3139_v18 = vmul.f32 %v3987_v55, %v3985_v5 }
 0xa34   :  { %v3138_v24 = vmul.f32 %v3989_v1, %v6604_v12  ;;  %v3574_v11 = vpop.f32.mrb[92].mxu0  ;;  %v3991_v25 = vpop.eup %3990 }
 0xa35   :  { %v3287_v38 = vpop.f32.mrb[93].mxu0  ;;  %v3296_v61 = vadd.f32 %v3574_v11, %v3508_v10 }
 0xa36   :  { %v3140_v32 = vadd.f32 %v3139_v18, %v3138_v24  ;;  %v3575_v35 = vpop.f32.mrb[94].mxu0  ;;  %v3288_v4 = vadd.f32 %v3508_v10, %v3287_v38 }
 0xa37   :  { %v3299_v45 = vadd.f32 %v3575_v35, %v3508_v10  ;;  %v3290_v31 = vpop.f32.mrb[95].mxu0 }
 0xa38   :  { %3992 = vtanh.f32 %v3140_v32  ;;  %3507 = vst [vmem:[%s6702_s9 + $0x8] sm:$0xff] %v3140_v32  ;;  %v3291_v52 = vadd.f32 %v3508_v10, %v3290_v31 }
 0xa39   :  { %v3529_v12 = vpack.c.bf16 %v3299_v45, %v3296_v61 }
 0xa3a   :  { %v3524_v20 = vpack.c.bf16 %v3291_v52, %v3288_v4 }
 0xa3b   :  { %3541 = vst [vmem:[%s6705_s7 + $0x8] sm:$0xff] %v3529_v12  }
 0xa3c   :  { %3525 = vst [vmem:[%s6705_s7] sm:$0xff] %v3524_v20  }
 0xa42   :  { %v3993_v7 = vpop.eup %3992 }
 0xa43   :  { %v3142_v9 = vmul.f32 %v3993_v7, %v3991_v25 }
 0xa45   :  { %v3143_v63 = vpack.c.bf16 %v3142_v9, %v3142_v9  ;;  %3506 = vst [vmem:[%s6703_s8 + $0x8] sm:$0xff] %v3142_v9 }
 0xa47   :  { %3145 = vst [vmem:[#allocation2 + $0x1c] sm:$0xf] %v3143_v63 }
 0xa4e   :  { %v3737_v48 = vld [vmem:[#allocation2 + $0x18] sm:$0xff]  }
 0xa4f   :  { %3577 = vmatmul.mubr.bf16.gmra.mrb[96].mxu0 %v3737_v48 }
 0xb22   :  { %v3578_v33 = vpop.f32.mrb[96].mxu0 }
 0xb23   :  { %v3303_v19 = vpop.f32.mrb[97].mxu0  ;;  %v3312_v59 = vadd.f32 %v3578_v33, %v3508_v10 }
 0xb24   :  { %v3579_v37 = vpop.f32.mrb[98].mxu0  ;;  %v3304_v56 = vadd.f32 %v3508_v10, %v3303_v19 }
 0xb25   :  { %v3315_v8 = vadd.f32 %v3579_v37, %v3508_v10  ;;  %v3306_v21 = vpop.f32.mrb[99].mxu0 }
 0xb26   :  { %v3307_v22 = vadd.f32 %v3508_v10, %v3306_v21 }
 0xb27   :  { %v3539_v29 = vpack.c.bf16 %v3315_v8, %v3312_v59 }
 0xb28   :  { %v3534_v27 = vpack.c.bf16 %v3307_v22, %v3304_v56 }
 0xb29   :  { %3543 = vst [vmem:[%s6705_s7 + $0x18] sm:$0xff] %v3539_v29  }
 0xb2a   :  { %3542 = vst [vmem:[%s6705_s7 + $0x10] sm:$0xff] %v3534_v27  }

</bundles_post_ra>
